<compile_context>
chip_gen: v7x
topology: tpu7x:2x2x1
jax: 0.10.0
libtpu: 0.0.40
codegen_flags: <defaults>
</compile_context>

<pallas_src>
import functools
import math
from typing import NamedTuple

import jax
import jax.numpy as jnp
from jax.experimental import pallas as pl
from jax.experimental.pallas import tpu as pltpu


_COMPILER_PARAMS = pltpu.CompilerParams(
    # TODO(synk): when batch grows, add a leading "parallel" grid axis over the
    # B*N rows so v7x's two TensorCores share the work; at B=2 one step is best.
    dimension_semantics=("arbitrary",),
    vmem_limit_bytes=32 * 1024 * 1024,   # working set is ~2 MiB; plenty of headroom
)


def _full_spec(shape):
    """Whole-array block for a grid=(1,) pallas_call."""
    zeros = (0,) * len(shape)
    return pl.BlockSpec(shape, lambda *_: zeros)


class _Dims(NamedTuple):
    B: int
    T: int
    N: int
    ci: int
    H: int
    dc: int
    HC: int
    te: int
    P: int
    n_agc: int
    n_star: int


# --------------------------------------------------------------------------- #
# In-kernel activations
# --------------------------------------------------------------------------- #
def _erf_approx(x):
    # TODO(synk): Abramowitz & Stegun 7.1.26 rational approximation
    # (|err| <= ~1.5e-7) used in-kernel instead of lax.erf; Mosaic lowering of
    # erf_p is unverified, so GELU is not bit-identical to PyTorch F.gelu.
    a1, a2, a3, a4, a5 = (0.254829592, -0.284496736, 1.421413741,
                          -1.453152027, 1.061405429)
    p = 0.3275911
    z = jnp.abs(x)
    t = 1.0 / (1.0 + p * z)
    poly = ((((a5 * t + a4) * t + a3) * t + a2) * t + a1) * t
    e = 1.0 - poly * jnp.exp(-z * z)
    return jnp.where(x < 0.0, -e, e)


def _gelu(x):
    return 0.5 * x * (1.0 + _erf_approx(x * (1.0 / math.sqrt(2.0))))


def _sigmoid(x):
    return 1.0 / (1.0 + jnp.exp(-x))


# --------------------------------------------------------------------------- #
# The single fused kernel
# --------------------------------------------------------------------------- #
def _fused_kernel(*refs, sd: _Dims):
    B, T, N, ci, H, dc, HC, te, P, n_agc, n_star = sd
    ddd = 2 * te + 2 * H

    refs = list(refs)
    o_ref = refs.pop()                                 # [B*N, P]
    data_rep_ref = refs.pop(0)                         # [B*N, N*ci]  AGC input (last step, row-replicated)
    data_tn_ref = refs.pop(0)                          # [B*N, T*ci]  cc input, (t, i) lanes
    emb_ref = refs.pop(0)                              # [B*N, ddd]   temporal embeddings, pre-placed
    bias_ref = refs.pop(0)                             # [rows, maxw] packed biases
    agc_w_refs = [refs.pop(0) for _ in range(n_agc)]   # [N*Cin, N*H] each
    nmask_ref = refs.pop(0)                            # [B*N, N*H]
    foldw_ref = refs.pop(0)                            # [N*H, ddd]
    cc_w_ref = refs.pop(0)                             # [T*ci, T*H]
    star_w_refs = [tuple(refs.pop(0) for _ in range(6)) for _ in range(n_star)]
    enc_w_ref = refs.pop(0)                            # [6, ddd, ddd]
    reg_w_ref = refs.pop(0)                            # [ddd, P]
    assert not refs

    # packed-bias row cursor; order MUST match prepare_params()
    row = [0]

    def nextb(width):
        r = row[0]
        row[0] += 1
        return bias_ref[r:r + 1, 0:width]

    b_cc = nextb(T * H)
    b_agc = [nextb(N * H) for _ in range(n_agc)]
    star_b = []
    for li in range(n_star):
        last = li == n_star - 1
        star_b.append((nextb(T * H), nextb(T * dc), nextb(T * HC), nextb(T * HC),
                       nextb(T * H), nextb(ddd if last else T * H)))
    enc_b = [(nextb(ddd), nextb(ddd)) for _ in range(3)]
    b_reg = nextb(P)

    def dot(a, b):
        return jnp.dot(a, b, preferred_element_type=jnp.float32)

    # ---- adaptive graph-conv stack (only the last time step feeds the head;
    #      AVWGCN is per-time-step independent, so we only compute t = T-1).
    h = data_rep_ref[...]
    for li in range(n_agc):
        h = dot(h, agc_w_refs[li][...]) + b_agc[li]
    # per-row node selection + fold into encoder columns [0, H)
    o1 = dot(h * nmask_ref[...], foldw_ref[...])                       # [B*N, ddd]

    # ---- cc 1x1 conv + STAR stack, all in lane-dense [B*N, (t, c)] layout ----
    x0 = dot(data_tn_ref[...], cc_w_ref[...]) + b_cc                   # [B*N, T*H]
    o2 = None
    for li in range(n_star):
        w1r, w2r, wfgr, w3ar, w3br, w4r = star_w_refs[li]
        b1, b2, bf, bg, b3, b4 = star_b[li]
        h1 = _gelu(dot(x0, w1r[...]) + b1)                             # conv1 + GELU
        cm = dot(h1, w2r[...]) + b2                                    # conv2 -> (t, d)
        # gated temporal conv (block-Toeplitz).  The PyTorch loop runs i=0,1 on
        # the unchanged residual and overwrites the result, so only the i==1
        # filter/gate convs matter -> single gated pass.
        f = dot(cm, wfgr[0]) + bf
        g = dot(cm, wfgr[1]) + bg
        gated = jnp.tanh(f) * _sigmoid(g)                              # [B*N, T*HC]
        # conv3 on concat([input, gated]) expressed as a split matmul + GELU
        h3 = _gelu(dot(x0, w3ar[...]) + dot(gated, w3br[...]) + b3)
        y = dot(h3, w4r[...]) + b4                                     # conv4
        if li == n_star - 1:
            # last layer: conv4 weight already folds the last-time-step slice
            # and the placement into encoder columns [H, 2H)
            o2 = y                                                     # [B*N, ddd]
        else:
            x0 = y                                                     # [B*N, T*H]

    hidden = o1 + o2 + emb_ref[...]                                    # [B*N, ddd]

    # ---- 3 residual MLP blocks (Dropout(p=0.15) is identity at inference) +
    #      regression head ----
    henc = hidden
    for i in range(3):
        eb1, eb2 = enc_b[i]
        t = jnp.maximum(dot(henc, enc_w_ref[2 * i]) + eb1, 0.0)
        henc = henc + dot(t, enc_w_ref[2 * i + 1]) + eb2
    o_ref[...] = dot(henc, reg_w_ref[...]) + b_reg


# --------------------------------------------------------------------------- #
# One-time parameter preparation (hoisted out of the per-forward path)
# --------------------------------------------------------------------------- #
def avwgcn_layer_weights(E, wpool, bpool, cheb_k):
    """Pre-contract Chebyshev supports with the per-node weight pool so an
    entire AVWGCN layer collapses to one matmul:
        out[(b),(n,o)] = sum_{m,i} x[(b),(m,i)] * big_w[(m,i),(n,o)] + bias[n,o]
    """
    N = E.shape[0]
    scores = jnp.maximum(E @ E.T, 0.0)
    supports = jax.nn.softmax(scores, axis=1)
    sset = [jnp.eye(N, dtype=jnp.float32), supports]
    for _ in range(2, cheb_k):
        sset.append(2.0 * supports @ sset[-1] - sset[-2])
    supports_k = jnp.stack(sset, axis=0)                          # [K, N, N]
    weights = jnp.einsum("nd,dkio->knio", E, wpool)               # [K, N, Cin, Cout]
    bias = E @ bpool                                              # [N, Cout]
    Cin, Cout = wpool.shape[2], wpool.shape[3]
    big_w = jnp.einsum("knm,knio->mino", supports_k, weights).reshape(N * Cin, N * Cout)
    return big_w, bias.reshape(-1)


def prepare_params(params, cfg, B, T):
    """Build every static kernel operand once (weights, masks, packed biases)."""
    N = cfg["num_node"]
    ci = cfg["input_dim"]
    H = cfg["hidden_dim"]
    te = cfg["time_embed"]
    dc = cfg["core_dim"]
    K = cfg["cheb_k"]
    P = cfg["predict_step"]
    KH = dc // 2 + 1
    HC = dc - KH + 1
    ddd = 2 * te + 2 * H
    BN = B * N
    eye_t = jnp.eye(T, dtype=jnp.float32)

    def blkdiag(w):
        # per-time-step 1x1 conv -> block-diagonal matmul over (t, c) lanes
        return jnp.kron(eye_t, jnp.asarray(w, jnp.float32))

    def toeplitz_fg(w):
        # w: [KH, T_out, T_in] (the i==1 conv of the PyTorch filter/gate pair)
        # -> big[(t_in, d), (t_out, h)] = w[d-h, t_out, t_in] if 0 <= d-h < KH
        rel = jnp.arange(dc)[:, None] - jnp.arange(HC)[None, :]          # d - h
        valid = (rel >= 0) & (rel < KH)
        wg = w[jnp.clip(rel, 0, KH - 1)]                                 # [dc, HC, To, Ti]
        wg = jnp.where(valid[:, :, None, None], wg, 0.0)
        return wg.transpose(3, 0, 2, 1).reshape(T * dc, T * HC)

    bias_rows = []

    def addb(v):
        bias_rows.append(jnp.asarray(v, jnp.float32).reshape(-1))

    # cc 1x1 conv (bias row 0)
    cc_w = blkdiag(params["cc_w"])                                       # [T*ci, T*H]
    addb(jnp.tile(params["cc_b"], T))

    # AGC pre-contraction
    E = params["node_embeddings"]
    agc_w = []
    for layer in params["agc"]:
        bw, bb = avwgcn_layer_weights(E, layer["wpool"], layer["bpool"], K)
        agc_w.append(bw)
        addb(bb)

    # STAR layers
    star_w = []
    n_star = len(params["stars"])
    for li, sp in enumerate(params["stars"]):
        last = li == n_star - 1
        w1b = blkdiag(sp["w1"])
        w2b = blkdiag(sp["w2"])
        wfg = jnp.stack([toeplitz_fg(sp["wf"]), toeplitz_fg(sp["wg"])], axis=0)
        w3a = blkdiag(sp["w3"][:H])
        w3b = blkdiag(sp["w3"][H:])
        if last:
            # fold last-time-step slice + encoder-column placement into conv4
            w4 = jnp.zeros((T * H, ddd), jnp.float32)
            w4 = w4.at[(T - 1) * H:, H:2 * H].set(sp["w4"])
            b4 = jnp.zeros((ddd,), jnp.float32).at[H:2 * H].set(sp["b4"])
        else:
            w4 = blkdiag(sp["w4"])
            b4 = jnp.tile(sp["b4"], T)
        star_w.append((w1b, w2b, wfg, w3a, w3b, w4))
        addb(jnp.tile(sp["b1"], T))
        addb(jnp.tile(sp["b2"], T))
        addb(jnp.repeat(sp["bf"].reshape(-1), HC))
        addb(jnp.repeat(sp["bg"].reshape(-1), HC))
        addb(jnp.tile(sp["b3"], T))
        addb(b4)

    # Encoder + regression head
    enc_w = jnp.stack([w for blk in params["encoder"] for w in (blk["w1"], blk["w2"])])
    for blk in params["encoder"]:
        addb(blk["b1"])
        addb(blk["b2"])
    addb(params["reg_b"])

    # node-selection mask + fold matrix: relayout of the AGC output
    # [B, (n, o)] -> [B*N, o] expressed as elementwise-mask + matmul.
    r_node = jnp.arange(BN)[:, None] % N
    c_node = jnp.arange(N * H)[None, :] // H
    nmask = (r_node == c_node).astype(jnp.float32)                       # [BN, N*H]
    k_mod = jnp.arange(N * H)[:, None] % H
    c_idx = jnp.arange(ddd)[None, :]
    foldw = ((c_idx < H) & (k_mod == c_idx)).astype(jnp.float32)         # [N*H, ddd]

    maxw = max(int(v.shape[0]) for v in bias_rows)
    bias_pack = jnp.stack([jnp.pad(v, (0, maxw - v.shape[0])) for v in bias_rows])

    return {
        "tid_table": params["time_in_day_emb"],
        "diw_table": params["day_in_week_emb"],
        "bias_pack": bias_pack,
        "agc_w": agc_w,
        "nmask": nmask,
        "foldw": foldw,
        "cc_w": cc_w,
        "star_w": star_w,
        "enc_w": enc_w,
        "reg_w": params["reg_w"],
    }


# --------------------------------------------------------------------------- #
# Model forward (per-call glue is slices / gathers / final reshape only)
# --------------------------------------------------------------------------- #
def mts_forward(prep, x, cfg):
    B, T, N, _ = x.shape
    ci = cfg["input_dim"]
    H = cfg["hidden_dim"]
    te = cfg["time_embed"]
    dc = cfg["core_dim"]
    P = cfg["predict_step"]
    KH = dc // 2 + 1
    HC = dc - KH + 1
    ddd = 2 * te + 2 * H
    BN = B * N
    n_agc = len(prep["agc_w"])
    n_star = len(prep["star_w"])
    assert n_star >= 1

    data = x[..., :ci]                                                  # [B, T, N, ci]
    data_tn = data.transpose(0, 2, 1, 3).reshape(BN, T * ci)            # (t, i) lanes
    d_last = data[:, -1].reshape(B, 1, N * ci)
    data_rep = jnp.broadcast_to(d_last, (B, N, N * ci)).reshape(BN, N * ci)

    # temporal-embedding gathers (clip guards the t==1.0 edge case)
    tid_idx = jnp.clip((x[:, -1, :, ci] * 288.0).astype(jnp.int32), 0, 287)
    diw_idx = jnp.clip((x[:, -1, :, ci + 1] * 7.0).astype(jnp.int32), 0, 6)
    tid = prep["tid_table"][tid_idx].reshape(BN, te)
    diw = prep["diw_table"][diw_idx].reshape(BN, te)
    emb_placed = jnp.concatenate(
        [jnp.zeros((BN, 2 * H), jnp.float32), tid, diw], axis=-1)       # [BN, ddd]

    operands = [data_rep, data_tn, emb_placed, prep["bias_pack"]]
    operands.extend(prep["agc_w"])
    operands.extend([prep["nmask"], prep["foldw"], prep["cc_w"]])
    for ws in prep["star_w"]:
        operands.extend(ws)
    operands.extend([prep["enc_w"], prep["reg_w"]])

    sd = _Dims(B=B, T=T, N=N, ci=ci, H=H, dc=dc, HC=HC, te=te, P=P,
               n_agc=n_agc, n_star=n_star)

    y = pl.pallas_call(
        functools.partial(_fused_kernel, sd=sd),
        out_shape=jax.ShapeDtypeStruct((BN, P), jnp.float32),
        grid=(1,),
        in_specs=[_full_spec(op.shape) for op in operands],
        out_specs=_full_spec((BN, P)),
        compiler_params=_COMPILER_PARAMS,
    )(*operands)

    return y.reshape(B, N, P).transpose(0, 2, 1)[..., None]             # [B, P, N, 1]


# --------------------------------------------------------------------------- #
# Deterministic parameter init (synthetic; shapes match the PyTorch __init__)
# --------------------------------------------------------------------------- #
def init_params(key, cfg, T=12):
    def nrm(k, shape, scale=0.1):
        return scale * jax.random.normal(k, shape, dtype=jnp.float32)

    keys = iter(jax.random.split(key, 64))
    N, ci, H = cfg["num_node"], cfg["input_dim"], cfg["hidden_dim"]
    te, ed, K = cfg["time_embed"], cfg["embed_dim"], cfg["cheb_k"]
    dc = cfg["core_dim"]
    kh = dc // 2 + 1
    ddd = 2 * te + 2 * H

    p = {
        "time_in_day_emb": nrm(next(keys), (288, te)),
        "day_in_week_emb": nrm(next(keys), (7, te)),
        "node_embeddings": nrm(next(keys), (N, ed), scale=1.0),
        "cc_w": nrm(next(keys), (ci, H)),
        "cc_b": nrm(next(keys), (H,)),
        "reg_w": nrm(next(keys), (ddd, cfg["predict_step"])),
        "reg_b": nrm(next(keys), (cfg["predict_step"],)),
    }
    agc, din = [], ci
    for _ in range(cfg["agc_layers"]):
        agc.append({"wpool": nrm(next(keys), (ed, K, din, H)),
                    "bpool": nrm(next(keys), (ed, H))})
        din = H
    p["agc"] = agc

    stars = []
    for _ in range(cfg["ad_layers"]):
        stars.append({
            "w1": nrm(next(keys), (H, H)), "b1": nrm(next(keys), (H,)),
            "w2": nrm(next(keys), (H, dc)), "b2": nrm(next(keys), (dc,)),
            "w3": nrm(next(keys), (H + dc // 2, H)), "b3": nrm(next(keys), (H,)),
            "w4": nrm(next(keys), (H, H)), "b4": nrm(next(keys), (H,)),
            # wf/wg are the i==1 filter/gate convs of the PyTorch loop
            # ([KH, T_out, T_in] layout of the Conv2d weight [12, 12, kh, 1]).
            "wf": nrm(next(keys), (kh, T, T)), "bf": nrm(next(keys), (T, 1)),
            "wg": nrm(next(keys), (kh, T, T)), "bg": nrm(next(keys), (T, 1)),
        })
    p["stars"] = stars

    enc = []
    for _ in range(3):
        enc.append({"w1": nrm(next(keys), (ddd, ddd)), "b1": nrm(next(keys), (ddd,)),
                    "w2": nrm(next(keys), (ddd, ddd)), "b2": nrm(next(keys), (ddd,))})
    p["encoder"] = enc
    return p


if __name__ == "__main__":
    cfg = dict(num_node=8, input_dim=1, output_dim=1, horizon=12,
               ad_layers=1, agc_layers=2, embed_dim=8, hidden_dim=32,
               time_embed=8, core_dim=8, cheb_k=3, predict_step=12)
    B, T, N = 2, 12, cfg["num_node"]   # T must be 12 (STAR hard-codes 12 channels)

    key = jax.random.PRNGKey(0)
    pkey, xkey = jax.random.split(key)
    params = init_params(pkey, cfg, T=T)
    prep = prepare_params(params, cfg, B=B, T=T)          # hoisted, one-time
    prep = jax.tree_util.tree_map(lambda a: jax.block_until_ready(a), prep)

    # last two feature channels are the time-in-day / day-in-week fractions in [0, 1)
    x = jax.random.uniform(xkey, (B, T, N, cfg["input_dim"] + 2), dtype=jnp.float32)

    fwd = jax.jit(functools.partial(mts_forward, cfg=cfg))
    out = fwd(prep, x)
    jax.block_until_ready(out)
    assert out.shape == (B, cfg["predict_step"], N, 1), out.shape
    assert bool(jnp.all(jnp.isfinite(out)))
    print("KERNEL_OK")
</pallas_src>

<mosaic_0001>
module attributes {stable_mosaic.version = 11 : i64} {
  func.func @_fused_kernel(%arg0: i32, %arg1: memref<16x8xf32, #tpu.memory_space<vmem>>, %arg2: memref<16x12xf32, #tpu.memory_space<vmem>>, %arg3: memref<16x80xf32, #tpu.memory_space<vmem>>, %arg4: memref<16x384xf32, #tpu.memory_space<vmem>>, %arg5: memref<8x256xf32, #tpu.memory_space<vmem>>, %arg6: memref<256x256xf32, #tpu.memory_space<vmem>>, %arg7: memref<16x256xf32, #tpu.memory_space<vmem>>, %arg8: memref<256x80xf32, #tpu.memory_space<vmem>>, %arg9: memref<12x384xf32, #tpu.memory_space<vmem>>, %arg10: memref<384x384xf32, #tpu.memory_space<vmem>>, %arg11: memref<384x96xf32, #tpu.memory_space<vmem>>, %arg12: memref<2x96x48xf32, #tpu.memory_space<vmem>>, %arg13: memref<384x384xf32, #tpu.memory_space<vmem>>, %arg14: memref<48x384xf32, #tpu.memory_space<vmem>>, %arg15: memref<384x80xf32, #tpu.memory_space<vmem>>, %arg16: memref<6x80x80xf32, #tpu.memory_space<vmem>>, %arg17: memref<80x12xf32, #tpu.memory_space<vmem>>, %arg18: memref<16x12xf32, #tpu.memory_space<vmem>>) attributes {dimension_semantics = [#tpu.dimension_semantics<arbitrary>], iteration_bounds = array<i64: 1>, scalar_prefetch = 0 : i64, scratch_operands = 0 : i64, tpu.core_type = #tpu.core_type<tc>, window_params = [{pipeline_mode = #tpu.pipeline_mode<synchronous>, transform_indices = @transform_0, window_bounds = array<i64: 16, 8>}, {pipeline_mode = #tpu.pipeline_mode<synchronous>, transform_indices = @transform_1, window_bounds = array<i64: 16, 12>}, {pipeline_mode = #tpu.pipeline_mode<synchronous>, transform_indices = @transform_2, window_bounds = array<i64: 16, 80>}, {pipeline_mode = #tpu.pipeline_mode<synchronous>, transform_indices = @transform_3, window_bounds = array<i64: 16, 384>}, {pipeline_mode = #tpu.pipeline_mode<synchronous>, transform_indices = @transform_4, window_bounds = array<i64: 8, 256>}, {pipeline_mode = #tpu.pipeline_mode<synchronous>, transform_indices = @transform_5, window_bounds = array<i64: 256, 256>}, {pipeline_mode = #tpu.pipeline_mode<synchronous>, transform_indices = @transform_6, window_bounds = array<i64: 16, 256>}, {pipeline_mode = #tpu.pipeline_mode<synchronous>, transform_indices = @transform_7, window_bounds = array<i64: 256, 80>}, {pipeline_mode = #tpu.pipeline_mode<synchronous>, transform_indices = @transform_8, window_bounds = array<i64: 12, 384>}, {pipeline_mode = #tpu.pipeline_mode<synchronous>, transform_indices = @transform_9, window_bounds = array<i64: 384, 384>}, {pipeline_mode = #tpu.pipeline_mode<synchronous>, transform_indices = @transform_10, window_bounds = array<i64: 384, 96>}, {pipeline_mode = #tpu.pipeline_mode<synchronous>, transform_indices = @transform_11, window_bounds = array<i64: 2, 96, 48>}, {pipeline_mode = #tpu.pipeline_mode<synchronous>, transform_indices = @transform_12, window_bounds = array<i64: 384, 384>}, {pipeline_mode = #tpu.pipeline_mode<synchronous>, transform_indices = @transform_13, window_bounds = array<i64: 48, 384>}, {pipeline_mode = #tpu.pipeline_mode<synchronous>, transform_indices = @transform_14, window_bounds = array<i64: 384, 80>}, {pipeline_mode = #tpu.pipeline_mode<synchronous>, transform_indices = @transform_15, window_bounds = array<i64: 6, 80, 80>}, {pipeline_mode = #tpu.pipeline_mode<synchronous>, transform_indices = @transform_16, window_bounds = array<i64: 80, 12>}, {pipeline_mode = #tpu.pipeline_mode<synchronous>, transform_indices = @transform_17, window_bounds = array<i64: 16, 12>}]} {
    %c0 = arith.constant 0 : index
    %c0_0 = arith.constant 0 : index
    %0 = vector.load %arg4[%c0, %c0_0] : memref<16x384xf32, #tpu.memory_space<vmem>>, vector<1x384xf32>
    %c1 = arith.constant 1 : index
    %c0_1 = arith.constant 0 : index
    %1 = vector.load %arg4[%c1, %c0_1] : memref<16x384xf32, #tpu.memory_space<vmem>>, vector<1x256xf32>
    %c2 = arith.constant 2 : index
    %c0_2 = arith.constant 0 : index
    %2 = vector.load %arg4[%c2, %c0_2] : memref<16x384xf32, #tpu.memory_space<vmem>>, vector<1x256xf32>
    %c3 = arith.constant 3 : index
    %c0_3 = arith.constant 0 : index
    %3 = vector.load %arg4[%c3, %c0_3] : memref<16x384xf32, #tpu.memory_space<vmem>>, vector<1x384xf32>
    %c4 = arith.constant 4 : index
    %c0_4 = arith.constant 0 : index
    %4 = vector.load %arg4[%c4, %c0_4] : memref<16x384xf32, #tpu.memory_space<vmem>>, vector<1x96xf32>
    %c5 = arith.constant 5 : index
    %c0_5 = arith.constant 0 : index
    %5 = vector.load %arg4[%c5, %c0_5] : memref<16x384xf32, #tpu.memory_space<vmem>>, vector<1x48xf32>
    %c6 = arith.constant 6 : index
    %c0_6 = arith.constant 0 : index
    %6 = vector.load %arg4[%c6, %c0_6] : memref<16x384xf32, #tpu.memory_space<vmem>>, vector<1x48xf32>
    %c7 = arith.constant 7 : index
    %c0_7 = arith.constant 0 : index
    %7 = vector.load %arg4[%c7, %c0_7] : memref<16x384xf32, #tpu.memory_space<vmem>>, vector<1x384xf32>
    %c8 = arith.constant 8 : index
    %c0_8 = arith.constant 0 : index
    %8 = vector.load %arg4[%c8, %c0_8] : memref<16x384xf32, #tpu.memory_space<vmem>>, vector<1x80xf32>
    %c9 = arith.constant 9 : index
    %c0_9 = arith.constant 0 : index
    %9 = vector.load %arg4[%c9, %c0_9] : memref<16x384xf32, #tpu.memory_space<vmem>>, vector<1x80xf32>
    %c10 = arith.constant 10 : index
    %c0_10 = arith.constant 0 : index
    %10 = vector.load %arg4[%c10, %c0_10] : memref<16x384xf32, #tpu.memory_space<vmem>>, vector<1x80xf32>
    %c11 = arith.constant 11 : index
    %c0_11 = arith.constant 0 : index
    %11 = vector.load %arg4[%c11, %c0_11] : memref<16x384xf32, #tpu.memory_space<vmem>>, vector<1x80xf32>
    %c12 = arith.constant 12 : index
    %c0_12 = arith.constant 0 : index
    %12 = vector.load %arg4[%c12, %c0_12] : memref<16x384xf32, #tpu.memory_space<vmem>>, vector<1x80xf32>
    %c13 = arith.constant 13 : index
    %c0_13 = arith.constant 0 : index
    %13 = vector.load %arg4[%c13, %c0_13] : memref<16x384xf32, #tpu.memory_space<vmem>>, vector<1x80xf32>
    %c14 = arith.constant 14 : index
    %c0_14 = arith.constant 0 : index
    %14 = vector.load %arg4[%c14, %c0_14] : memref<16x384xf32, #tpu.memory_space<vmem>>, vector<1x80xf32>
    %c15 = arith.constant 15 : index
    %c0_15 = arith.constant 0 : index
    %15 = vector.load %arg4[%c15, %c0_15] : memref<16x384xf32, #tpu.memory_space<vmem>>, vector<1x12xf32>
    %c0_16 = arith.constant 0 : index
    %c0_17 = arith.constant 0 : index
    %16 = vector.load %arg1[%c0_16, %c0_17] : memref<16x8xf32, #tpu.memory_space<vmem>>, vector<16x8xf32>
    %c0_18 = arith.constant 0 : index
    %c0_19 = arith.constant 0 : index
    %17 = vector.load %arg5[%c0_18, %c0_19] : memref<8x256xf32, #tpu.memory_space<vmem>>, vector<8x256xf32>
    %cst = arith.constant dense<0.000000e+00> : vector<16x256xf32>
    %18 = tpu.matmul %16, %17, %cst {dimension_numbers = #tpu.dot_dimension_numbers<[1], [0], [0], [1], [0, 0, 1, 1], [], []>} : vector<16x8xf32>, vector<8x256xf32>, vector<16x256xf32> -> vector<16x256xf32>
    %19 = vector.broadcast %1 : vector<1x256xf32> to vector<16x256xf32>
    %20 = arith.addf %18, %19 : vector<16x256xf32>
    %c0_20 = arith.constant 0 : index
    %c0_21 = arith.constant 0 : index
    %21 = vector.load %arg6[%c0_20, %c0_21] : memref<256x256xf32, #tpu.memory_space<vmem>>, vector<256x256xf32>
    %cst_22 = arith.constant dense<0.000000e+00> : vector<16x256xf32>
    %22 = tpu.matmul %20, %21, %cst_22 {dimension_numbers = #tpu.dot_dimension_numbers<[1], [0], [0], [1], [0, 0, 1, 1], [], []>} : vector<16x256xf32>, vector<256x256xf32>, vector<16x256xf32> -> vector<16x256xf32>
    %23 = vector.broadcast %2 : vector<1x256xf32> to vector<16x256xf32>
    %24 = arith.addf %22, %23 : vector<16x256xf32>
    %c0_23 = arith.constant 0 : index
    %c0_24 = arith.constant 0 : index
    %25 = vector.load %arg7[%c0_23, %c0_24] : memref<16x256xf32, #tpu.memory_space<vmem>>, vector<16x256xf32>
    %26 = arith.mulf %24, %25 : vector<16x256xf32>
    %c0_25 = arith.constant 0 : index
    %c0_26 = arith.constant 0 : index
    %27 = vector.load %arg8[%c0_25, %c0_26] : memref<256x80xf32, #tpu.memory_space<vmem>>, vector<256x80xf32>
    %cst_27 = arith.constant dense<0.000000e+00> : vector<16x80xf32>
    %28 = tpu.matmul %26, %27, %cst_27 {dimension_numbers = #tpu.dot_dimension_numbers<[1], [0], [0], [1], [0, 0, 1, 1], [], []>} : vector<16x256xf32>, vector<256x80xf32>, vector<16x80xf32> -> vector<16x80xf32>
    %c0_28 = arith.constant 0 : index
    %c0_29 = arith.constant 0 : index
    %29 = vector.load %arg2[%c0_28, %c0_29] : memref<16x12xf32, #tpu.memory_space<vmem>>, vector<16x12xf32>
    %c0_30 = arith.constant 0 : index
    %c0_31 = arith.constant 0 : index
    %30 = vector.load %arg9[%c0_30, %c0_31] : memref<12x384xf32, #tpu.memory_space<vmem>>, vector<12x384xf32>
    %cst_32 = arith.constant dense<0.000000e+00> : vector<16x384xf32>
    %31 = tpu.matmul %29, %30, %cst_32 {dimension_numbers = #tpu.dot_dimension_numbers<[1], [0], [0], [1], [0, 0, 1, 1], [], []>} : vector<16x12xf32>, vector<12x384xf32>, vector<16x384xf32> -> vector<16x384xf32>
    %32 = vector.broadcast %0 : vector<1x384xf32> to vector<16x384xf32>
    %33 = arith.addf %31, %32 : vector<16x384xf32>
    %c0_33 = arith.constant 0 : index
    %c0_34 = arith.constant 0 : index
    %34 = vector.load %arg10[%c0_33, %c0_34] : memref<384x384xf32, #tpu.memory_space<vmem>>, vector<384x384xf32>
    %cst_35 = arith.constant dense<0.000000e+00> : vector<16x384xf32>
    %35 = tpu.matmul %33, %34, %cst_35 {dimension_numbers = #tpu.dot_dimension_numbers<[1], [0], [0], [1], [0, 0, 1, 1], [], []>} : vector<16x384xf32>, vector<384x384xf32>, vector<16x384xf32> -> vector<16x384xf32>
    %36 = vector.broadcast %3 : vector<1x384xf32> to vector<16x384xf32>
    %37 = arith.addf %35, %36 : vector<16x384xf32>
    %cst_36 = arith.constant 5.000000e-01 : f32
    %38 = vector.broadcast %cst_36 : f32 to vector<16x384xf32>
    %39 = arith.mulf %38, %37 : vector<16x384xf32>
    %cst_37 = arith.constant 0.707106769 : f32
    %40 = vector.broadcast %cst_37 : f32 to vector<16x384xf32>
    %41 = arith.mulf %37, %40 : vector<16x384xf32>
    %42 = math.absf %41 : vector<16x384xf32>
    %cst_38 = arith.constant 0.327591091 : f32
    %43 = vector.broadcast %cst_38 : f32 to vector<16x384xf32>
    %44 = arith.mulf %43, %42 : vector<16x384xf32>
    %cst_39 = arith.constant 1.000000e+00 : f32
    %45 = vector.broadcast %cst_39 : f32 to vector<16x384xf32>
    %46 = arith.addf %45, %44 : vector<16x384xf32>
    %cst_40 = arith.constant 1.000000e+00 : f32
    %47 = vector.broadcast %cst_40 : f32 to vector<16x384xf32>
    %48 = arith.divf %47, %46 : vector<16x384xf32>
    %cst_41 = arith.constant 1.06140542 : f32
    %49 = vector.broadcast %cst_41 : f32 to vector<16x384xf32>
    %50 = arith.mulf %49, %48 : vector<16x384xf32>
    %cst_42 = arith.constant -1.45315206 : f32
    %51 = vector.broadcast %cst_42 : f32 to vector<16x384xf32>
    %52 = arith.addf %50, %51 : vector<16x384xf32>
    %53 = arith.mulf %52, %48 : vector<16x384xf32>
    %cst_43 = arith.constant 1.42141378 : f32
    %54 = vector.broadcast %cst_43 : f32 to vector<16x384xf32>
    %55 = arith.addf %53, %54 : vector<16x384xf32>
    %56 = arith.mulf %55, %48 : vector<16x384xf32>
    %cst_44 = arith.constant -0.284496725 : f32
    %57 = vector.broadcast %cst_44 : f32 to vector<16x384xf32>
    %58 = arith.addf %56, %57 : vector<16x384xf32>
    %59 = arith.mulf %58, %48 : vector<16x384xf32>
    %cst_45 = arith.constant 0.254829586 : f32
    %60 = vector.broadcast %cst_45 : f32 to vector<16x384xf32>
    %61 = arith.addf %59, %60 : vector<16x384xf32>
    %62 = arith.mulf %61, %48 : vector<16x384xf32>
    %cst_46 = arith.constant 0.000000e+00 : f32
    %63 = vector.broadcast %cst_46 : f32 to vector<16x384xf32>
    %64 = arith.subf %63, %42 : vector<16x384xf32>
    %65 = arith.mulf %64, %42 : vector<16x384xf32>
    %66 = math.exp %65 : vector<16x384xf32>
    %67 = arith.mulf %62, %66 : vector<16x384xf32>
    %cst_47 = arith.constant 1.000000e+00 : f32
    %68 = vector.broadcast %cst_47 : f32 to vector<16x384xf32>
    %69 = arith.subf %68, %67 : vector<16x384xf32>
    %cst_48 = arith.constant 0.000000e+00 : f32
    %70 = vector.broadcast %cst_48 : f32 to vector<16x384xf32>
    %71 = arith.cmpf olt, %41, %70 : vector<16x384xf32>
    %cst_49 = arith.constant 0.000000e+00 : f32
    %72 = vector.broadcast %cst_49 : f32 to vector<16x384xf32>
    %73 = arith.subf %72, %69 : vector<16x384xf32>
    %74 = arith.select %71, %73, %69 : vector<16x384xi1>, vector<16x384xf32>
    %cst_50 = arith.constant 1.000000e+00 : f32
    %75 = vector.broadcast %cst_50 : f32 to vector<16x384xf32>
    %76 = arith.addf %75, %74 : vector<16x384xf32>
    %77 = arith.mulf %39, %76 : vector<16x384xf32>
    %c0_51 = arith.constant 0 : index
    %c0_52 = arith.constant 0 : index
    %78 = vector.load %arg11[%c0_51, %c0_52] : memref<384x96xf32, #tpu.memory_space<vmem>>, vector<384x96xf32>
    %cst_53 = arith.constant dense<0.000000e+00> : vector<16x96xf32>
    %79 = tpu.matmul %77, %78, %cst_53 {dimension_numbers = #tpu.dot_dimension_numbers<[1], [0], [0], [1], [0, 0, 1, 1], [], []>} : vector<16x384xf32>, vector<384x96xf32>, vector<16x96xf32> -> vector<16x96xf32>
    %80 = vector.broadcast %4 : vector<1x96xf32> to vector<16x96xf32>
    %81 = arith.addf %79, %80 : vector<16x96xf32>
    %c0_54 = arith.constant 0 : index
    %c0_55 = arith.constant 0 : index
    %c0_56 = arith.constant 0 : index
    %82 = vector.load %arg12[%c0_54, %c0_55, %c0_56] : memref<2x96x48xf32, #tpu.memory_space<vmem>>, vector<1x96x48xf32>
    %83 = vector.shape_cast %82 : vector<1x96x48xf32> to vector<96x48xf32>
    %cst_57 = arith.constant dense<0.000000e+00> : vector<16x48xf32>
    %84 = tpu.matmul %81, %83, %cst_57 {dimension_numbers = #tpu.dot_dimension_numbers<[1], [0], [0], [1], [0, 0, 1, 1], [], []>} : vector<16x96xf32>, vector<96x48xf32>, vector<16x48xf32> -> vector<16x48xf32>
    %85 = vector.broadcast %5 : vector<1x48xf32> to vector<16x48xf32>
    %86 = arith.addf %84, %85 : vector<16x48xf32>
    %c1_58 = arith.constant 1 : index
    %c0_59 = arith.constant 0 : index
    %c0_60 = arith.constant 0 : index
    %87 = vector.load %arg12[%c1_58, %c0_59, %c0_60] : memref<2x96x48xf32, #tpu.memory_space<vmem>>, vector<1x96x48xf32>
    %88 = vector.shape_cast %87 : vector<1x96x48xf32> to vector<96x48xf32>
    %cst_61 = arith.constant dense<0.000000e+00> : vector<16x48xf32>
    %89 = tpu.matmul %81, %88, %cst_61 {dimension_numbers = #tpu.dot_dimension_numbers<[1], [0], [0], [1], [0, 0, 1, 1], [], []>} : vector<16x96xf32>, vector<96x48xf32>, vector<16x48xf32> -> vector<16x48xf32>
    %90 = vector.broadcast %6 : vector<1x48xf32> to vector<16x48xf32>
    %91 = arith.addf %89, %90 : vector<16x48xf32>
    %92 = math.tanh %86 : vector<16x48xf32>
    %cst_62 = arith.constant 0.000000e+00 : f32
    %93 = vector.broadcast %cst_62 : f32 to vector<16x48xf32>
    %94 = arith.subf %93, %91 : vector<16x48xf32>
    %95 = math.exp %94 : vector<16x48xf32>
    %cst_63 = arith.constant 1.000000e+00 : f32
    %96 = vector.broadcast %cst_63 : f32 to vector<16x48xf32>
    %97 = arith.addf %96, %95 : vector<16x48xf32>
    %cst_64 = arith.constant 1.000000e+00 : f32
    %98 = vector.broadcast %cst_64 : f32 to vector<16x48xf32>
    %99 = arith.divf %98, %97 : vector<16x48xf32>
    %100 = arith.mulf %92, %99 : vector<16x48xf32>
    %c0_65 = arith.constant 0 : index
    %c0_66 = arith.constant 0 : index
    %101 = vector.load %arg13[%c0_65, %c0_66] : memref<384x384xf32, #tpu.memory_space<vmem>>, vector<384x384xf32>
    %cst_67 = arith.constant dense<0.000000e+00> : vector<16x384xf32>
    %102 = tpu.matmul %33, %101, %cst_67 {dimension_numbers = #tpu.dot_dimension_numbers<[1], [0], [0], [1], [0, 0, 1, 1], [], []>} : vector<16x384xf32>, vector<384x384xf32>, vector<16x384xf32> -> vector<16x384xf32>
    %c0_68 = arith.constant 0 : index
    %c0_69 = arith.constant 0 : index
    %103 = vector.load %arg14[%c0_68, %c0_69] : memref<48x384xf32, #tpu.memory_space<vmem>>, vector<48x384xf32>
    %cst_70 = arith.constant dense<0.000000e+00> : vector<16x384xf32>
    %104 = tpu.matmul %100, %103, %cst_70 {dimension_numbers = #tpu.dot_dimension_numbers<[1], [0], [0], [1], [0, 0, 1, 1], [], []>} : vector<16x48xf32>, vector<48x384xf32>, vector<16x384xf32> -> vector<16x384xf32>
    %105 = arith.addf %102, %104 : vector<16x384xf32>
    %106 = vector.broadcast %7 : vector<1x384xf32> to vector<16x384xf32>
    %107 = arith.addf %105, %106 : vector<16x384xf32>
    %cst_71 = arith.constant 5.000000e-01 : f32
    %108 = vector.broadcast %cst_71 : f32 to vector<16x384xf32>
    %109 = arith.mulf %108, %107 : vector<16x384xf32>
    %cst_72 = arith.constant 0.707106769 : f32
    %110 = vector.broadcast %cst_72 : f32 to vector<16x384xf32>
    %111 = arith.mulf %107, %110 : vector<16x384xf32>
    %112 = math.absf %111 : vector<16x384xf32>
    %cst_73 = arith.constant 0.327591091 : f32
    %113 = vector.broadcast %cst_73 : f32 to vector<16x384xf32>
    %114 = arith.mulf %113, %112 : vector<16x384xf32>
    %cst_74 = arith.constant 1.000000e+00 : f32
    %115 = vector.broadcast %cst_74 : f32 to vector<16x384xf32>
    %116 = arith.addf %115, %114 : vector<16x384xf32>
    %cst_75 = arith.constant 1.000000e+00 : f32
    %117 = vector.broadcast %cst_75 : f32 to vector<16x384xf32>
    %118 = arith.divf %117, %116 : vector<16x384xf32>
    %cst_76 = arith.constant 1.06140542 : f32
    %119 = vector.broadcast %cst_76 : f32 to vector<16x384xf32>
    %120 = arith.mulf %119, %118 : vector<16x384xf32>
    %cst_77 = arith.constant -1.45315206 : f32
    %121 = vector.broadcast %cst_77 : f32 to vector<16x384xf32>
    %122 = arith.addf %120, %121 : vector<16x384xf32>
    %123 = arith.mulf %122, %118 : vector<16x384xf32>
    %cst_78 = arith.constant 1.42141378 : f32
    %124 = vector.broadcast %cst_78 : f32 to vector<16x384xf32>
    %125 = arith.addf %123, %124 : vector<16x384xf32>
    %126 = arith.mulf %125, %118 : vector<16x384xf32>
    %cst_79 = arith.constant -0.284496725 : f32
    %127 = vector.broadcast %cst_79 : f32 to vector<16x384xf32>
    %128 = arith.addf %126, %127 : vector<16x384xf32>
    %129 = arith.mulf %128, %118 : vector<16x384xf32>
    %cst_80 = arith.constant 0.254829586 : f32
    %130 = vector.broadcast %cst_80 : f32 to vector<16x384xf32>
    %131 = arith.addf %129, %130 : vector<16x384xf32>
    %132 = arith.mulf %131, %118 : vector<16x384xf32>
    %cst_81 = arith.constant 0.000000e+00 : f32
    %133 = vector.broadcast %cst_81 : f32 to vector<16x384xf32>
    %134 = arith.subf %133, %112 : vector<16x384xf32>
    %135 = arith.mulf %134, %112 : vector<16x384xf32>
    %136 = math.exp %135 : vector<16x384xf32>
    %137 = arith.mulf %132, %136 : vector<16x384xf32>
    %cst_82 = arith.constant 1.000000e+00 : f32
    %138 = vector.broadcast %cst_82 : f32 to vector<16x384xf32>
    %139 = arith.subf %138, %137 : vector<16x384xf32>
    %cst_83 = arith.constant 0.000000e+00 : f32
    %140 = vector.broadcast %cst_83 : f32 to vector<16x384xf32>
    %141 = arith.cmpf olt, %111, %140 : vector<16x384xf32>
    %cst_84 = arith.constant 0.000000e+00 : f32
    %142 = vector.broadcast %cst_84 : f32 to vector<16x384xf32>
    %143 = arith.subf %142, %139 : vector<16x384xf32>
    %144 = arith.select %141, %143, %139 : vector<16x384xi1>, vector<16x384xf32>
    %cst_85 = arith.constant 1.000000e+00 : f32
    %145 = vector.broadcast %cst_85 : f32 to vector<16x384xf32>
    %146 = arith.addf %145, %144 : vector<16x384xf32>
    %147 = arith.mulf %109, %146 : vector<16x384xf32>
    %c0_86 = arith.constant 0 : index
    %c0_87 = arith.constant 0 : index
    %148 = vector.load %arg15[%c0_86, %c0_87] : memref<384x80xf32, #tpu.memory_space<vmem>>, vector<384x80xf32>
    %cst_88 = arith.constant dense<0.000000e+00> : vector<16x80xf32>
    %149 = tpu.matmul %147, %148, %cst_88 {dimension_numbers = #tpu.dot_dimension_numbers<[1], [0], [0], [1], [0, 0, 1, 1], [], []>} : vector<16x384xf32>, vector<384x80xf32>, vector<16x80xf32> -> vector<16x80xf32>
    %150 = vector.broadcast %8 : vector<1x80xf32> to vector<16x80xf32>
    %151 = arith.addf %149, %150 : vector<16x80xf32>
    %152 = arith.addf %28, %151 : vector<16x80xf32>
    %c0_89 = arith.constant 0 : index
    %c0_90 = arith.constant 0 : index
    %153 = vector.load %arg3[%c0_89, %c0_90] : memref<16x80xf32, #tpu.memory_space<vmem>>, vector<16x80xf32>
    %154 = arith.addf %152, %153 : vector<16x80xf32>
    %c0_91 = arith.constant 0 : index
    %c0_92 = arith.constant 0 : index
    %c0_93 = arith.constant 0 : index
    %155 = vector.load %arg16[%c0_91, %c0_92, %c0_93] : memref<6x80x80xf32, #tpu.memory_space<vmem>>, vector<1x80x80xf32>
    %156 = vector.shape_cast %155 : vector<1x80x80xf32> to vector<80x80xf32>
    %cst_94 = arith.constant dense<0.000000e+00> : vector<16x80xf32>
    %157 = tpu.matmul %154, %156, %cst_94 {dimension_numbers = #tpu.dot_dimension_numbers<[1], [0], [0], [1], [0, 0, 1, 1], [], []>} : vector<16x80xf32>, vector<80x80xf32>, vector<16x80xf32> -> vector<16x80xf32>
    %158 = vector.broadcast %9 : vector<1x80xf32> to vector<16x80xf32>
    %159 = arith.addf %157, %158 : vector<16x80xf32>
    %cst_95 = arith.constant 0.000000e+00 : f32
    %160 = vector.broadcast %cst_95 : f32 to vector<16x80xf32>
    %161 = arith.maximumf %159, %160 : vector<16x80xf32>
    %c1_96 = arith.constant 1 : index
    %c0_97 = arith.constant 0 : index
    %c0_98 = arith.constant 0 : index
    %162 = vector.load %arg16[%c1_96, %c0_97, %c0_98] : memref<6x80x80xf32, #tpu.memory_space<vmem>>, vector<1x80x80xf32>
    %163 = vector.shape_cast %162 : vector<1x80x80xf32> to vector<80x80xf32>
    %cst_99 = arith.constant dense<0.000000e+00> : vector<16x80xf32>
    %164 = tpu.matmul %161, %163, %cst_99 {dimension_numbers = #tpu.dot_dimension_numbers<[1], [0], [0], [1], [0, 0, 1, 1], [], []>} : vector<16x80xf32>, vector<80x80xf32>, vector<16x80xf32> -> vector<16x80xf32>
    %165 = arith.addf %154, %164 : vector<16x80xf32>
    %166 = vector.broadcast %10 : vector<1x80xf32> to vector<16x80xf32>
    %167 = arith.addf %165, %166 : vector<16x80xf32>
    %c2_100 = arith.constant 2 : index
    %c0_101 = arith.constant 0 : index
    %c0_102 = arith.constant 0 : index
    %168 = vector.load %arg16[%c2_100, %c0_101, %c0_102] : memref<6x80x80xf32, #tpu.memory_space<vmem>>, vector<1x80x80xf32>
    %169 = vector.shape_cast %168 : vector<1x80x80xf32> to vector<80x80xf32>
    %cst_103 = arith.constant dense<0.000000e+00> : vector<16x80xf32>
    %170 = tpu.matmul %167, %169, %cst_103 {dimension_numbers = #tpu.dot_dimension_numbers<[1], [0], [0], [1], [0, 0, 1, 1], [], []>} : vector<16x80xf32>, vector<80x80xf32>, vector<16x80xf32> -> vector<16x80xf32>
    %171 = vector.broadcast %11 : vector<1x80xf32> to vector<16x80xf32>
    %172 = arith.addf %170, %171 : vector<16x80xf32>
    %cst_104 = arith.constant 0.000000e+00 : f32
    %173 = vector.broadcast %cst_104 : f32 to vector<16x80xf32>
    %174 = arith.maximumf %172, %173 : vector<16x80xf32>
    %c3_105 = arith.constant 3 : index
    %c0_106 = arith.constant 0 : index
    %c0_107 = arith.constant 0 : index
    %175 = vector.load %arg16[%c3_105, %c0_106, %c0_107] : memref<6x80x80xf32, #tpu.memory_space<vmem>>, vector<1x80x80xf32>
    %176 = vector.shape_cast %175 : vector<1x80x80xf32> to vector<80x80xf32>
    %cst_108 = arith.constant dense<0.000000e+00> : vector<16x80xf32>
    %177 = tpu.matmul %174, %176, %cst_108 {dimension_numbers = #tpu.dot_dimension_numbers<[1], [0], [0], [1], [0, 0, 1, 1], [], []>} : vector<16x80xf32>, vector<80x80xf32>, vector<16x80xf32> -> vector<16x80xf32>
    %178 = arith.addf %167, %177 : vector<16x80xf32>
    %179 = vector.broadcast %12 : vector<1x80xf32> to vector<16x80xf32>
    %180 = arith.addf %178, %179 : vector<16x80xf32>
    %c4_109 = arith.constant 4 : index
    %c0_110 = arith.constant 0 : index
    %c0_111 = arith.constant 0 : index
    %181 = vector.load %arg16[%c4_109, %c0_110, %c0_111] : memref<6x80x80xf32, #tpu.memory_space<vmem>>, vector<1x80x80xf32>
    %182 = vector.shape_cast %181 : vector<1x80x80xf32> to vector<80x80xf32>
    %cst_112 = arith.constant dense<0.000000e+00> : vector<16x80xf32>
    %183 = tpu.matmul %180, %182, %cst_112 {dimension_numbers = #tpu.dot_dimension_numbers<[1], [0], [0], [1], [0, 0, 1, 1], [], []>} : vector<16x80xf32>, vector<80x80xf32>, vector<16x80xf32> -> vector<16x80xf32>
    %184 = vector.broadcast %13 : vector<1x80xf32> to vector<16x80xf32>
    %185 = arith.addf %183, %184 : vector<16x80xf32>
    %cst_113 = arith.constant 0.000000e+00 : f32
    %186 = vector.broadcast %cst_113 : f32 to vector<16x80xf32>
    %187 = arith.maximumf %185, %186 : vector<16x80xf32>
    %c5_114 = arith.constant 5 : index
    %c0_115 = arith.constant 0 : index
    %c0_116 = arith.constant 0 : index
    %188 = vector.load %arg16[%c5_114, %c0_115, %c0_116] : memref<6x80x80xf32, #tpu.memory_space<vmem>>, vector<1x80x80xf32>
    %189 = vector.shape_cast %188 : vector<1x80x80xf32> to vector<80x80xf32>
    %cst_117 = arith.constant dense<0.000000e+00> : vector<16x80xf32>
    %190 = tpu.matmul %187, %189, %cst_117 {dimension_numbers = #tpu.dot_dimension_numbers<[1], [0], [0], [1], [0, 0, 1, 1], [], []>} : vector<16x80xf32>, vector<80x80xf32>, vector<16x80xf32> -> vector<16x80xf32>
    %191 = arith.addf %180, %190 : vector<16x80xf32>
    %192 = vector.broadcast %14 : vector<1x80xf32> to vector<16x80xf32>
    %193 = arith.addf %191, %192 : vector<16x80xf32>
    %c0_118 = arith.constant 0 : index
    %c0_119 = arith.constant 0 : index
    %194 = vector.load %arg17[%c0_118, %c0_119] : memref<80x12xf32, #tpu.memory_space<vmem>>, vector<80x12xf32>
    %cst_120 = arith.constant dense<0.000000e+00> : vector<16x12xf32>
    %195 = tpu.matmul %193, %194, %cst_120 {dimension_numbers = #tpu.dot_dimension_numbers<[1], [0], [0], [1], [0, 0, 1, 1], [], []>} : vector<16x80xf32>, vector<80x12xf32>, vector<16x12xf32> -> vector<16x12xf32>
    %196 = vector.broadcast %15 : vector<1x12xf32> to vector<16x12xf32>
    %197 = arith.addf %195, %196 : vector<16x12xf32>
    %c0_121 = arith.constant 0 : index
    %c0_122 = arith.constant 0 : index
    %198 = vector.load %arg18[%c0_121, %c0_122] : memref<16x12xf32, #tpu.memory_space<vmem>>, vector<16x12xf32>
    tpu.vector_store %arg18[%c0_121, %c0_122], %197 {strides = array<i32>} : memref<16x12xf32, #tpu.memory_space<vmem>>, vector<16x12xf32>,
    return
  }
  func.func @transform_0(%arg0: i32) -> (i32, i32) {
    %c0_i32 = arith.constant 0 : i32
    %c0_i32_0 = arith.constant 0 : i32
    %c0_i32_1 = arith.constant 0 : i32
    return %c0_i32, %c0_i32_0 : i32, i32
  }
  func.func @transform_1(%arg0: i32) -> (i32, i32) {
    %c0_i32 = arith.constant 0 : i32
    %c0_i32_0 = arith.constant 0 : i32
    %c0_i32_1 = arith.constant 0 : i32
    return %c0_i32, %c0_i32_0 : i32, i32
  }
  func.func @transform_2(%arg0: i32) -> (i32, i32) {
    %c0_i32 = arith.constant 0 : i32
    %c0_i32_0 = arith.constant 0 : i32
    %c0_i32_1 = arith.constant 0 : i32
    return %c0_i32, %c0_i32_0 : i32, i32
  }
  func.func @transform_3(%arg0: i32) -> (i32, i32) {
    %c0_i32 = arith.constant 0 : i32
    %c0_i32_0 = arith.constant 0 : i32
    %c0_i32_1 = arith.constant 0 : i32
    return %c0_i32, %c0_i32_0 : i32, i32
  }
  func.func @transform_4(%arg0: i32) -> (i32, i32) {
    %c0_i32 = arith.constant 0 : i32
    %c0_i32_0 = arith.constant 0 : i32
    %c0_i32_1 = arith.constant 0 : i32
    return %c0_i32, %c0_i32_0 : i32, i32
  }
  func.func @transform_5(%arg0: i32) -> (i32, i32) {
    %c0_i32 = arith.constant 0 : i32
    %c0_i32_0 = arith.constant 0 : i32
    %c0_i32_1 = arith.constant 0 : i32
    return %c0_i32, %c0_i32_0 : i32, i32
  }
  func.func @transform_6(%arg0: i32) -> (i32, i32) {
    %c0_i32 = arith.constant 0 : i32
    %c0_i32_0 = arith.constant 0 : i32
    %c0_i32_1 = arith.constant 0 : i32
    return %c0_i32, %c0_i32_0 : i32, i32
  }
  func.func @transform_7(%arg0: i32) -> (i32, i32) {
    %c0_i32 = arith.constant 0 : i32
    %c0_i32_0 = arith.constant 0 : i32
    %c0_i32_1 = arith.constant 0 : i32
    return %c0_i32, %c0_i32_0 : i32, i32
  }
  func.func @transform_8(%arg0: i32) -> (i32, i32) {
    %c0_i32 = arith.constant 0 : i32
    %c0_i32_0 = arith.constant 0 : i32
    %c0_i32_1 = arith.constant 0 : i32
    return %c0_i32, %c0_i32_0 : i32, i32
  }
  func.func @transform_9(%arg0: i32) -> (i32, i32) {
    %c0_i32 = arith.constant 0 : i32
    %c0_i32_0 = arith.constant 0 : i32
    %c0_i32_1 = arith.constant 0 : i32
    return %c0_i32, %c0_i32_0 : i32, i32
  }
  func.func @transform_10(%arg0: i32) -> (i32, i32) {
    %c0_i32 = arith.constant 0 : i32
    %c0_i32_0 = arith.constant 0 : i32
    %c0_i32_1 = arith.constant 0 : i32
    return %c0_i32, %c0_i32_0 : i32, i32
  }
  func.func @transform_11(%arg0: i32) -> (i32, i32, i32) {
    %c0_i32 = arith.constant 0 : i32
    %c0_i32_0 = arith.constant 0 : i32
    %c0_i32_1 = arith.constant 0 : i32
    %c0_i32_2 = arith.constant 0 : i32
    return %c0_i32, %c0_i32_0, %c0_i32_1 : i32, i32, i32
  }
  func.func @transform_12(%arg0: i32) -> (i32, i32) {
    %c0_i32 = arith.constant 0 : i32
    %c0_i32_0 = arith.constant 0 : i32
    %c0_i32_1 = arith.constant 0 : i32
    return %c0_i32, %c0_i32_0 : i32, i32
  }
  func.func @transform_13(%arg0: i32) -> (i32, i32) {
    %c0_i32 = arith.constant 0 : i32
    %c0_i32_0 = arith.constant 0 : i32
    %c0_i32_1 = arith.constant 0 : i32
    return %c0_i32, %c0_i32_0 : i32, i32
  }
  func.func @transform_14(%arg0: i32) -> (i32, i32) {
    %c0_i32 = arith.constant 0 : i32
    %c0_i32_0 = arith.constant 0 : i32
    %c0_i32_1 = arith.constant 0 : i32
    return %c0_i32, %c0_i32_0 : i32, i32
  }
  func.func @transform_15(%arg0: i32) -> (i32, i32, i32) {
    %c0_i32 = arith.constant 0 : i32
    %c0_i32_0 = arith.constant 0 : i32
    %c0_i32_1 = arith.constant 0 : i32
    %c0_i32_2 = arith.constant 0 : i32
    return %c0_i32, %c0_i32_0, %c0_i32_1 : i32, i32, i32
  }
  func.func @transform_16(%arg0: i32) -> (i32, i32) {
    %c0_i32 = arith.constant 0 : i32
    %c0_i32_0 = arith.constant 0 : i32
    %c0_i32_1 = arith.constant 0 : i32
    return %c0_i32, %c0_i32_0 : i32, i32
  }
  func.func @transform_17(%arg0: i32) -> (i32, i32) {
    %c0_i32 = arith.constant 0 : i32
    %c0_i32_0 = arith.constant 0 : i32
    %c0_i32_1 = arith.constant 0 : i32
    return %c0_i32, %c0_i32_0 : i32, i32
  }
}

</mosaic_0001>

<bundles_post_ra>
// kernel: mts_forward.1
= control target key start
LH: loop header
LB: loop body
LE: loop exit
PB: predicated region body
PF: predicated region fallthrough
CT: control target
= control target key end

     0   :  { %s7323_s0 = inlined_call_operand.vmem [shape: f32[16,8], index: 0, kind: input, shape index: {}]   ;;  %s7324_s1 = inlined_call_operand.vmem [shape: f32[16,12], index: 1, kind: input, shape index: {}]   ;;  %s7325_s2 = inlined_call_operand.vmem [shape: f32[16,80], index: 2, kind: input, shape index: {}]   ;;  %s7326_s3 = inlined_call_operand.hbm [shape: f32[16,384], index: 3, kind: input, shape index: {}]   ;;  %s7327_s4 = inlined_call_operand.hbm [shape: f32[8,256], index: 4, kind: input, shape index: {}]   ;;  %s7328_s5 = inlined_call_operand.vmem [shape: f32[256,256], index: 5, kind: input, shape index: {}]   ;;  %s7329_s6 = inlined_call_operand.hbm [shape: f32[16,256], index: 6, kind: input, shape index: {}]   ;;  %s7330_s7 = inlined_call_operand.vmem [shape: f32[256,80], index: 7, kind: input, shape index: {}]   ;;  %s7331_s8 = inlined_call_operand.hbm [shape: f32[12,384], index: 8, kind: input, shape index: {}]   ;;  %s7332_s9 = inlined_call_operand.vmem [shape: f32[384,384], index: 9, kind: input, shape index: {}]   ;;  %s7333_s10 = inlined_call_operand.vmem [shape: f32[384,96], index: 10, kind: input, shape index: {}]   ;;  %s7334_s11 = inlined_call_operand.vmem [shape: f32[2,96,48], index: 11, kind: input, shape index: {}]   ;;  %s7335_s12 = inlined_call_operand.vmem [shape: f32[384,384], index: 12, kind: input, shape index: {}]   ;;  %s7336_s13 = inlined_call_operand.hbm [shape: f32[48,384], index: 13, kind: input, shape index: {}]   ;;  %s7337_s14 = inlined_call_operand.vmem [shape: f32[384,80], index: 14, kind: input, shape index: {}]   ;;  %s7338_s15 = inlined_call_operand.hbm [shape: f32[6,80,80], index: 15, kind: input, shape index: {}]   ;;  %s7339_s16 = inlined_call_operand.vmem [shape: f32[80,12], index: 16, kind: input, shape index: {}]   ;;  %s7340_s17 = inlined_call_operand.hbm [shape: f32[16,12], index: 17, kind: output, shape index: {}]  }
   0x1   :  { %7343 = sst [smem:[#allocation19_spill]] %s7323_s0 }
   0x2   :  { %7344 = sst [smem:[#allocation20_spill]] %s7324_s1 }
   0x3   :  { %22 = vsyncpa [#allocation3], 0 }
   0x4   :  { %23 = vsyncpa [#allocation6], 0 }
   0x5   :  { %24 = vsyncpa [#allocation9], 0 }
   0x6   :  { %25 = vsyncpa [#allocation12], 0 }
   0x7   :  { %26 = vsyncpa [#allocation4], 0  ;;  %s5265_s24 = smov [#allocation5]   ;;  %s5101_s28 = scalar_lea.hbm %s7327_s4, 256 }
   0x8   :  { %s51_s25 = sshll.u32 %s5265_s24, 4  ;;  %p5102_p0 = scmp.ne.s32.totalorder %s7327_s4, %s5101_s28  ;;  %s52_s25 = int_to_ptr.vmem [resolvable:$true] %s51_s25 }
   0x9   :  { %p5105_p1 = scmp.lt.u32.totalorder %s5101_s28, %s7327_s4 }
   0xb   :  { %p5107_p2 = pnand %p5105_p1, %p5102_p0 }
   0xd   :  { %5110 = shalt.err (!%p5107_p2)
}
   0xe   :  { %s5111_s19 = scalar_lea.vmem %s52_s25, 256  ;;  %p5116_p4 = scmp.lt.s32.totalorder %s52_s25, %s52_s25 }
   0xf   :  { %p5112_p3 = scmp.ne.s32.totalorder %s52_s25, %s5111_s19  ;;  %p5117_p5 = scmp.lt.s32.totalorder %s5111_s19, %s5111_s19 }
  0x11   :  { %p5118_p6 = por %p5117_p5, %p5116_p4 }
  0x13   :  { %p5119_p7 = pnand %p5118_p6, %p5112_p3 }
  0x15   :  { %5122 = shalt.err (!%p5119_p7)
}
  0x16   :  { %54 = dma.hbm_to_vmem [thread:$0]  %s7327_s4, 256, %s52_s25, [#allocation6]  }
  0x17   :  { %s5266_s21 = smov [#allocation8]   ;;  %s5267_s23 = smov [#allocation2]  }
  0x18   :  { %s76_s22 = sshll.u32 %s5266_s21, 4  ;;  %s38_s24 = sshll.u32 %s5267_s23, 4  ;;  %s77_s22 = int_to_ptr.vmem [resolvable:$true] %s76_s22  ;;  %s39_s24 = int_to_ptr.vmem [resolvable:$true] %s38_s24 }
  0x19   :  { %s5123_s28 = scalar_lea.hbm %s7331_s8, 768 }
  0x1a   :  { %p5124_p8 = scmp.ne.s32.totalorder %s7331_s8, %s5123_s28  ;;  %p5127_p9 = scmp.lt.u32.totalorder %s5123_s28, %s7331_s8 }
  0x1c   :  { %p5129_p10 = pnand %p5127_p9, %p5124_p8 }
  0x1e   :  { %5132 = shalt.err (!%p5129_p10)
}
  0x1f   :  { %s5133_s4 = scalar_lea.vmem %s77_s22, 768  ;;  %p5138_p12 = scmp.lt.s32.totalorder %s77_s22, %s77_s22 }
  0x20   :  { %p5134_p11 = scmp.ne.s32.totalorder %s77_s22, %s5133_s4  ;;  %p5139_p13 = scmp.lt.s32.totalorder %s5133_s4, %s5133_s4 }
  0x22   :  { %p5140_p0 = por %p5139_p13, %p5138_p12 }
  0x24   :  { %p5141_p1 = pnand %p5140_p0, %p5134_p11 }
  0x26   :  { %5144 = shalt.err (!%p5141_p1)
}
  0x27   :  { %s5268_s25 = smov 384   ;;  %s5269_s19 = smov 24  }
  0x28   :  { %82 = dma.hbm_to_vmem [thread:$0]  %s7331_s8, 768, %s77_s22, [#allocation9], %s5268_s25, %s5268_s25, %s5269_s19  }
  0x29   :  { %s5145_s26 = scalar_lea.hbm %s7326_s3, 768 }
  0x2a   :  { %p5146_p2 = scmp.ne.s32.totalorder %s7326_s3, %s5145_s26  ;;  %p5149_p3 = scmp.lt.u32.totalorder %s5145_s26, %s7326_s3 }
  0x2c   :  { %p5151_p4 = pnand %p5149_p3, %p5146_p2 }
  0x2e   :  { %5154 = shalt.err (!%p5151_p4)
}
  0x2f   :  { %s5155_s30 = scalar_lea.vmem %s39_s24, 768  ;;  %p5160_p6 = scmp.lt.s32.totalorder %s39_s24, %s39_s24 }
  0x30   :  { %p5156_p5 = scmp.ne.s32.totalorder %s39_s24, %s5155_s30  ;;  %p5161_p7 = scmp.lt.s32.totalorder %s5155_s30, %s5155_s30 }
  0x32   :  { %p5162_p8 = por %p5161_p7, %p5160_p6 }
  0x34   :  { %p5163_p9 = pnand %p5162_p8, %p5156_p5 }
  0x36   :  { %5166 = shalt.err (!%p5163_p9)
}
  0x37   :  { %44 = dma.hbm_to_vmem [thread:$0]  %s7326_s3, 768, %s39_s24, [#allocation3], %s5268_s25, %s5268_s25, %s5269_s19  }
  0x38   :  { %s5270_s18 = smov [#allocation7]   ;;  %s5167_s21 = scalar_lea.hbm %s7329_s6, 512 }
  0x39   :  { %s62_s4 = sshll.u32 %s5270_s18, 4  ;;  %p5168_p10 = scmp.ne.s32.totalorder %s7329_s6, %s5167_s21  ;;  %s63_s4 = int_to_ptr.vmem [resolvable:$true] %s62_s4 }
  0x3a   :  { %p5171_p11 = scmp.lt.u32.totalorder %s5167_s21, %s7329_s6 }
  0x3c   :  { %p5173_p12 = pnand %p5171_p11, %p5168_p10 }
  0x3e   :  { %5176 = shalt.err (!%p5173_p12)
}
  0x3f   :  { %s5177_s29 = scalar_lea.vmem %s63_s4, 512  ;;  %p5182_p0 = scmp.lt.s32.totalorder %s63_s4, %s63_s4 }
  0x40   :  { %p5178_p13 = scmp.ne.s32.totalorder %s63_s4, %s5177_s29  ;;  %p5183_p1 = scmp.lt.s32.totalorder %s5177_s29, %s5177_s29 }
  0x42   :  { %p5184_p2 = por %p5183_p1, %p5182_p0 }
  0x44   :  { %p5185_p3 = pnand %p5184_p2, %p5178_p13 }
  0x46   :  { %5188 = shalt.err (!%p5185_p3)
}
  0x47   :  { %s5271_s3 = smov 256   ;;  %s5272_s24 = smov 16  }
  0x48   :  { %68 = dma.hbm_to_vmem [thread:$0]  %s7329_s6, 512, %s63_s4, [#allocation6], %s5271_s3, %s5271_s3, %s5272_s24  }
  0x49   :  { %s5273_s8 = smov [#allocation10]   ;;  %s5274_s18 = smov [#allocation11]  }
  0x4a   :  { %s96_s22 = sshll.u32 %s5273_s8, 4  ;;  %s110_s1 = sshll.u32 %s5274_s18, 4  ;;  %s97_s22 = int_to_ptr.vmem [resolvable:$true] %s96_s22  ;;  %s5424_s1 = int_to_ptr.vmem [resolvable:$true] %s110_s1 }
  0x4b   :  { %s5189_s23 = scalar_lea.hbm %s7336_s13, 2304 }
  0x4c   :  { %p5190_p4 = scmp.ne.s32.totalorder %s7336_s13, %s5189_s23  ;;  %p5193_p5 = scmp.lt.u32.totalorder %s5189_s23, %s7336_s13 }
  0x4e   :  { %p5195_p6 = pnand %p5193_p5, %p5190_p4 }
  0x50   :  { %5198 = shalt.err (!%p5195_p6)
}
  0x51   :  { %s5199_s6 = scalar_lea.vmem %s97_s22, 2304  ;;  %p5204_p8 = scmp.lt.s32.totalorder %s97_s22, %s97_s22 }
  0x52   :  { %p5200_p7 = scmp.ne.s32.totalorder %s97_s22, %s5199_s6  ;;  %p5205_p9 = scmp.lt.s32.totalorder %s5199_s6, %s5199_s6 }
  0x54   :  { %p5206_p10 = por %p5205_p9, %p5204_p8 }
  0x56   :  { %p5207_p11 = pnand %p5206_p10, %p5200_p7 }
  0x58   :  { %5210 = shalt.err (!%p5207_p11)
}
  0x59   :  { %102 = dma.hbm_to_vmem [thread:$0]  %s7336_s13, 2304, %s97_s22, [#allocation9], %s5268_s25, %s5268_s25, %s5269_s19  }
  0x5a   :  { %s5211_s30 = scalar_lea.hbm %s7338_s15, 7680 }
  0x5b   :  { %p5212_p12 = scmp.ne.s32.totalorder %s7338_s15, %s5211_s30  ;;  %p5215_p13 = scmp.lt.u32.totalorder %s5211_s30, %s7338_s15 }
  0x5d   :  { %p5217_p0 = pnand %p5215_p13, %p5212_p12 }
  0x5f   :  { %5220 = shalt.err (!%p5217_p0)
}
  0x60   :  { %s5221_s23 = scalar_lea.vmem %s5424_s1, 7680  ;;  %p5226_p2 = scmp.lt.s32.totalorder %s5424_s1, %s5424_s1 }
  0x61   :  { %p5222_p1 = scmp.ne.s32.totalorder %s5424_s1, %s5221_s23  ;;  %p5227_p3 = scmp.lt.s32.totalorder %s5221_s23, %s5221_s23 }
  0x63   :  { %p5228_p4 = por %p5227_p3, %p5226_p2 }
  0x65   :  { %p5229_p5 = pnand %p5228_p4, %p5222_p1 }
  0x67   :  { %5232 = shalt.err (!%p5229_p5)
}
  0x68   :  { %s5275_s13 = smov 128   ;;  %s5276_s25 = smov 8  }
  0x69   :  { %116 = dma.hbm_to_vmem [thread:$0]  %s7338_s15, 7680, %s5424_s1, [#allocation12], %s5275_s13, %s5275_s13, %s5276_s25  }
  0x6a   :  { %5255 = dma.done.wait [#allocation3], 768  }
  0x6b   :  { %5256 = vsyncadd [#allocation3], 4294966528 }
  0x6c   :  { %5257 = dma.done.wait [#allocation6], 768  }
  0x6d   :  { %5258 = vsyncadd [#allocation6], 4294966528 }
  0x6e   :  { %5259 = dma.done.wait [#allocation9], 3072  }
  0x6f   :  { %5260 = vsyncadd [#allocation9], 4294964224 }
  0x70   :  { %5261 = dma.done.wait [#allocation12], 7680  }
  0x71   :  { %5262 = vsyncadd [#allocation12], 4294959616  ;;  %v5277_v0 = vmov 0.0   ;;  %vm479_vm0 = vcmask 1043456   ;;  %v160_v1 = vld [vmem:[#allocation5 + $0x8] sm:$0xff]  ;;  %v159_v2 = vld [vmem:[#allocation5] sm:$0xff] }
  0x72   :  { %243 = vmatprep.mubr.f32.mxu0 %v5277_v0  ;;  %s7345_s28 = sld [smem:[#allocation19_spill]]  ;;  %vm172_vm1 = vcmask 64512   ;;  %179 = vmatprep.subr.mxu0 %v160_v1  ;;  %v451_v4 = vld [vmem:[#allocation8 + $0x8] sm:$0xff]  ;;  %v454_v5 = vld [vmem:[#allocation8 + $0x20] sm:$0xf]  ;;  %vm5278_vm2 = vmmov 1  }
  0x73   :  { %vm5465_vm3 = vmpackc.low %vm479_vm0, %vm5278_vm2  ;;  %180 = vmatpush1.msra.mxu0 %v159_v2  ;;  %v4302_v7 = vpack.c.bf16 %v454_v5, %v451_v4  ;;  %v450_v8 = vld [vmem:[#allocation8] sm:$0xff]  ;;  %v453_v9 = vld [vmem:[#allocation8 + $0x18] sm:$0xf]  ;;  %s7348_s8 = sld [smem:[#allocation20_spill]]  ;;  %vm472_vm4 = vcmask 97280   ;;  %vm1477_vm11 = vcmask 785408  }
  0x74   :  { %v4305_v11 = vpack.c.bf16 %v453_v9, %v450_v8  ;;  %v452_v12 = vld [vmem:[#allocation8 + $0x10] sm:$0xff]  ;;  %v455_v13 = vld [vmem:[#allocation8 + $0x28] sm:$0xf]  ;;  %v259_v16 = vld [vmem:[%s7328_s5 + $0x18] sm:$0xff]  ;;  %vm1825_vm12 = vcmask 392192   ;;  %s5279_s0 = smov [#allocation13]  }
  0x75   :  { %4304 = vmatprep.subr.msk.bf16.mxu0 %vm5465_vm3, %v4302_v7  ;;  %v4308_v14 = vpack.c.bf16 %v455_v13, %v452_v12  ;;  %v257_v15 = vld [vmem:[%s7328_s5 + $0x8] sm:$0xff]  ;;  %v256_v17 = vld [vmem:[%s7328_s5] sm:$0xff]  ;;  %v258_v19 = vld [vmem:[%s7328_s5 + $0x10] sm:$0xff]  ;;  %s3417_s30 = sshll.u32 %s5279_s0, 4  ;;  %s3418_s30 = int_to_ptr.vmem [resolvable:$true] %s3417_s30 }
  0x76   :  { %v4238_v18 = vpack.c.bf16 %v259_v16, %v257_v15  ;;  %v261_v20 = vld [vmem:[%s7328_s5 + $0x28] sm:$0xff]  ;;  %v263_v21 = vld [vmem:[%s7328_s5 + $0x38] sm:$0xff]  ;;  %v4240_v22 = vpack.c.bf16 %v258_v19, %v256_v17  ;;  %v260_v24 = vld [vmem:[%s7328_s5 + $0x20] sm:$0xff]  ;;  %p5238_p7 = scmp.lt.s32.totalorder %s3418_s30, %s3418_s30 }
  0x77   :  { %v4242_v23 = vpack.c.bf16 %v263_v21, %v261_v20  ;;  %v262_v25 = vld [vmem:[%s7328_s5 + $0x30] sm:$0xff]  ;;  %v265_v26 = vld [vmem:[%s7328_s5 + $0x48] sm:$0xff]  ;;  %v267_v27 = vld [vmem:[%s7328_s5 + $0x58] sm:$0xff] }
  0x78   :  { %v157_v3 = vld [vmem:[%s7345_s28] sm:$0xff]  ;;  %v158_v10 = vld [vmem:[%s7345_s28 + $0x8] sm:$0xff]  ;;  %4239 = vmatprep.subr.bf16.mxu1 %v4238_v18  ;;  %v4244_v31 = vpack.c.bf16 %v262_v25, %v260_v24  ;;  %v4246_v33 = vpack.c.bf16 %v267_v27, %v265_v26  ;;  %v266_v35 = vld [vmem:[%s7328_s5 + $0x50] sm:$0xff] }
  0x79   :  { %3432 = vmatmul.mubr.msk.f32.vlgmr.msra.gmra.mrb[0].mxu0 %vm172_vm1, %v157_v3  ;;  %v642_v28 = vld [vmem:[%s7332_s9 + $0x8] sm:$0xff]  ;;  %v645_v29 = vld [vmem:[%s7332_s9 + $0x20] sm:$0xff]  ;;  %4241 = vmatpush1.bf16.msra.mxu1 %v4240_v22  ;;  %v271_v37 = vld [vmem:[%s7328_s5 + $0x78] sm:$0xff] }
  0x7a   :  { %249 = vmatprep.mubr.f32.mxu0 %v5277_v0  ;;  %4307 = vmatpush1.bf16.msk.msra.mxu0 %vm5465_vm3, %v4305_v11  ;;  %v448_v30 = vld [vmem:[%s7348_s8] sm:$0xff]  ;;  %v4314_v32 = vpack.c.bf16 %v645_v29, %v642_v28  ;;  %v269_v36 = vld [vmem:[%s7328_s5 + $0x68] sm:$0xff]  ;;  %v644_v41 = vld [vmem:[%s7332_s9 + $0x18] sm:$0xff] }
  0x7b   :  { %4310 = vmatprep.subr.msk.bf16.mxu0 %vm5465_vm3, %v4308_v14  ;;  %4243 = vmatprep.subr.bf16.mxu1 %v4242_v23  ;;  %v264_v34 = vld [vmem:[%s7328_s5 + $0x40] sm:$0xff]  ;;  %v449_v38 = vld [vmem:[%s7348_s8 + $0x8] sm:$0xff]  ;;  %v648_v42 = vld [vmem:[%s7332_s9 + $0x38] sm:$0xff]  ;;  %v4250_v43 = vpack.c.bf16 %v271_v37, %v269_v36 }
  0x7c   :  { %v4248_v39 = vpack.c.bf16 %v266_v35, %v264_v34  ;;  %v641_v40 = vld [vmem:[%s7332_s9] sm:$0xff]  ;;  %v651_v44 = vld [vmem:[%s7332_s9 + $0x50] sm:$0xff]  ;;  %v273_v47 = vld [vmem:[%s7328_s5 + $0x88] sm:$0xff] }
  0x7d   :  { %3433 = vmatmul.mubr.msk.f32.gmra.mrb[2].mxu0 %vm172_vm1, %v158_v10  ;;  %4245 = vmatpush1.bf16.msra.mxu1 %v4244_v31  ;;  %v268_v45 = vld [vmem:[%s7328_s5 + $0x60] sm:$0xff]  ;;  %v270_v46 = vld [vmem:[%s7328_s5 + $0x70] sm:$0xff]  ;;  %v275_v48 = vld [vmem:[%s7328_s5 + $0x98] sm:$0xff]  ;;  %v4316_v49 = vpack.c.bf16 %v644_v41, %v641_v40  ;;  %v4318_v50 = vpack.c.bf16 %v651_v44, %v648_v42 }
  0x7e   :  { %553 = vmatprep.mubr.f32.mxu0 %v5277_v0  ;;  %4247 = vmatprep.subr.bf16.mxu1 %v4246_v33  ;;  %v4252_v51 = vpack.c.bf16 %v270_v46, %v268_v45  ;;  %v647_v52 = vld [vmem:[%s7332_s9 + $0x30] sm:$0xff]  ;;  %v650_v53 = vld [vmem:[%s7332_s9 + $0x48] sm:$0xff]  ;;  %v4254_v55 = vpack.c.bf16 %v275_v48, %v273_v47  ;;  %v657_v56 = vld [vmem:[%s7332_s9 + $0x80] sm:$0xff] }
  0x7f   :  { %v654_v54 = vld [vmem:[%s7332_s9 + $0x68] sm:$0xff]  ;;  %v272_v57 = vld [vmem:[%s7328_s5 + $0x80] sm:$0xff]  ;;  %v274_v58 = vld [vmem:[%s7328_s5 + $0x90] sm:$0xff]  ;;  %v4320_v61 = vpack.c.bf16 %v650_v53, %v647_v52 }
  0x80   :  { %v277_v59 = vld [vmem:[%s7328_s5 + $0xa8] sm:$0xff]  ;;  %v279_v60 = vld [vmem:[%s7328_s5 + $0xb8] sm:$0xff]  ;;  %v4322_v62 = vpack.c.bf16 %v657_v56, %v654_v54  ;;  %v4256_v63 = vpack.c.bf16 %v274_v58, %v272_v57  ;;  %v653_v1 = vld [vmem:[%s7332_s9 + $0x60] sm:$0xff] }
  0x81   :  { %3436 = vmatmul.mubr.msk.f32.vlgmr.msra.gmra.mrb[4].mxu0 %vm472_vm4, %v448_v30  ;;  %4249 = vmatpush1.bf16.msra.mxu1 %v4248_v39  ;;  %v656_v2 = vld [vmem:[%s7332_s9 + $0x78] sm:$0xff]  ;;  %v4258_v4 = vpack.c.bf16 %v279_v60, %v277_v59  ;;  %v663_v5 = vld [vmem:[%s7332_s9 + $0xb0] sm:$0xff]  ;;  %v276_v6 = vld [vmem:[%s7328_s5 + $0xa0] sm:$0xff] }
  0x82   :  { %559 = vmatprep.mubr.f32.mxu0 %v5277_v0  ;;  %4313 = vmatpush3.bf16.msk.msra.mxu0 %vm5465_vm3, %v4308_v14  ;;  %v660_v3 = vld [vmem:[%s7332_s9 + $0x98] sm:$0xff]  ;;  %v278_v7 = vld [vmem:[%s7328_s5 + $0xb0] sm:$0xff]  ;;  %v281_v8 = vld [vmem:[%s7328_s5 + $0xc8] sm:$0xff]  ;;  %v4324_v10 = vpack.c.bf16 %v656_v2, %v653_v1  ;;  %vm2759_vm3 = vcmask 654336  }
  0x83   :  { %4315 = vmatprep.subr.bf16.mxu0 %v4314_v32  ;;  %4251 = vmatprep.subr.bf16.mxu1 %v4250_v43  ;;  %v283_v9 = vld [vmem:[%s7328_s5 + $0xd8] sm:$0xff]  ;;  %v4326_v11 = vpack.c.bf16 %v663_v5, %v660_v3  ;;  %v4260_v12 = vpack.c.bf16 %v278_v7, %v276_v6  ;;  %v659_v13 = vld [vmem:[%s7332_s9 + $0x90] sm:$0xff]  ;;  %v662_v14 = vld [vmem:[%s7332_s9 + $0xa8] sm:$0xff] }
  0x84   :  { %v666_v15 = vld [vmem:[%s7332_s9 + $0xc8] sm:$0xff]  ;;  %v4262_v16 = vpack.c.bf16 %v283_v9, %v281_v8  ;;  %v669_v17 = vld [vmem:[%s7332_s9 + $0xe0] sm:$0xff]  ;;  %v282_v19 = vld [vmem:[%s7328_s5 + $0xd0] sm:$0xff]  ;;  %v4328_v22 = vpack.c.bf16 %v662_v14, %v659_v13 }
  0x85   :  { %3437 = vmatmul.mubr.msk.f32.gmra.mrb[6].mxu0 %vm472_vm4, %v449_v38  ;;  %4253 = vmatpush1.bf16.msra.mxu1 %v4252_v51  ;;  %v280_v18 = vld [vmem:[%s7328_s5 + $0xc0] sm:$0xff]  ;;  %v285_v20 = vld [vmem:[%s7328_s5 + $0xe8] sm:$0xff]  ;;  %v287_v21 = vld [vmem:[%s7328_s5 + $0xf8] sm:$0xff]  ;;  %v4330_v23 = vpack.c.bf16 %v669_v17, %v666_v15 }
  0x86   :  { %3865 = vmatprep.mubr.msk.f32.mxu0 %vm472_vm4, %v448_v30  ;;  %4255 = vmatprep.subr.bf16.mxu1 %v4254_v55  ;;  %v4264_v24 = vpack.c.bf16 %v282_v19, %v280_v18  ;;  %v665_v25 = vld [vmem:[%s7332_s9 + $0xc0] sm:$0xff]  ;;  %v668_v26 = vld [vmem:[%s7332_s9 + $0xd8] sm:$0xff]  ;;  %v4266_v28 = vpack.c.bf16 %v287_v21, %v285_v20  ;;  %v675_v29 = vld [vmem:[%s7332_s9 + $0x110] sm:$0xff] }
  0x87   :  { %v672_v27 = vld [vmem:[%s7332_s9 + $0xf8] sm:$0xff]  ;;  %v284_v30 = vld [vmem:[%s7328_s5 + $0xe0] sm:$0xff]  ;;  %v286_v31 = vld [vmem:[%s7328_s5 + $0xf0] sm:$0xff]  ;;  %v4332_v34 = vpack.c.bf16 %v668_v26, %v665_v25 }
  0x88   :  { %v289_v32 = vld [vmem:[%s7328_s5 + $0x108] sm:$0xff]  ;;  %v291_v33 = vld [vmem:[%s7328_s5 + $0x118] sm:$0xff]  ;;  %v4334_v35 = vpack.c.bf16 %v675_v29, %v672_v27  ;;  %v4268_v36 = vpack.c.bf16 %v286_v31, %v284_v30  ;;  %v671_v37 = vld [vmem:[%s7332_s9 + $0xf0] sm:$0xff] }
  0x89   :  { %3866 = vmatmul.mubr.msk.f32.vlgmr.msra.gmra.mrb[8].mxu0 %vm472_vm4, %v449_v38  ;;  %4257 = vmatpush1.bf16.msra.mxu1 %v4256_v63  ;;  %v674_v38 = vld [vmem:[%s7332_s9 + $0x108] sm:$0xff]  ;;  %v4270_v40 = vpack.c.bf16 %v291_v33, %v289_v32  ;;  %v681_v41 = vld [vmem:[%s7332_s9 + $0x140] sm:$0xff]  ;;  %v290_v43 = vld [vmem:[%s7328_s5 + $0x110] sm:$0xff] }
  0x8a   :  { %4317 = vmatpush1.bf16.msra.mxu0 %v4316_v49  ;;  %4259 = vmatprep.subr.bf16.mxu1 %v4258_v4  ;;  %v678_v39 = vld [vmem:[%s7332_s9 + $0x128] sm:$0xff]  ;;  %v288_v42 = vld [vmem:[%s7328_s5 + $0x100] sm:$0xff]  ;;  %v295_v45 = vld [vmem:[%s7328_s5 + $0x138] sm:$0xff]  ;;  %v4336_v46 = vpack.c.bf16 %v674_v38, %v671_v37 }
  0x8b   :  { %4319 = vmatprep.subr.bf16.mxu0 %v4318_v50  ;;  %v293_v44 = vld [vmem:[%s7328_s5 + $0x128] sm:$0xff]  ;;  %v4338_v47 = vpack.c.bf16 %v681_v41, %v678_v39  ;;  %v4272_v48 = vpack.c.bf16 %v290_v43, %v288_v42  ;;  %v677_v49 = vld [vmem:[%s7332_s9 + $0x120] sm:$0xff]  ;;  %v680_v50 = vld [vmem:[%s7332_s9 + $0x138] sm:$0xff] }
  0x8c   :  { %v684_v51 = vld [vmem:[%s7332_s9 + $0x158] sm:$0xff]  ;;  %v4274_v52 = vpack.c.bf16 %v295_v45, %v293_v44  ;;  %v687_v53 = vld [vmem:[%s7332_s9 + $0x170] sm:$0xff]  ;;  %v292_v54 = vld [vmem:[%s7328_s5 + $0x120] sm:$0xff]  ;;  %v4340_v58 = vpack.c.bf16 %v680_v50, %v677_v49 }
  0x8d   :  { %4261 = vmatpush1.bf16.msra.mxu1 %v4260_v12  ;;  %v294_v55 = vld [vmem:[%s7328_s5 + $0x130] sm:$0xff]  ;;  %v297_v56 = vld [vmem:[%s7328_s5 + $0x148] sm:$0xff]  ;;  %v299_v57 = vld [vmem:[%s7328_s5 + $0x158] sm:$0xff]  ;;  %v4342_v59 = vpack.c.bf16 %v687_v53, %v684_v51 }
  0x8e   :  { %4321 = vmatpush1.bf16.msra.mxu0 %v4320_v61  ;;  %4263 = vmatprep.subr.bf16.mxu1 %v4262_v16  ;;  %v4276_v60 = vpack.c.bf16 %v294_v55, %v292_v54  ;;  %v683_v61 = vld [vmem:[%s7332_s9 + $0x150] sm:$0xff]  ;;  %v690_v63 = vld [vmem:[%s7332_s9 + $0x188] sm:$0xff]  ;;  %v4278_v1 = vpack.c.bf16 %v299_v57, %v297_v56  ;;  %v693_v2 = vld [vmem:[%s7332_s9 + $0x1a0] sm:$0xff] }
  0x8f   :  { %4323 = vmatprep.subr.bf16.mxu0 %v4322_v62  ;;  %v686_v62 = vld [vmem:[%s7332_s9 + $0x168] sm:$0xff]  ;;  %v296_v3 = vld [vmem:[%s7328_s5 + $0x140] sm:$0xff]  ;;  %v298_v4 = vld [vmem:[%s7328_s5 + $0x150] sm:$0xff]  ;;  %v4346_v8 = vpack.c.bf16 %v693_v2, %v690_v63 }
  0x90   :  { %v301_v5 = vld [vmem:[%s7328_s5 + $0x168] sm:$0xff]  ;;  %v303_v6 = vld [vmem:[%s7328_s5 + $0x178] sm:$0xff]  ;;  %v4344_v7 = vpack.c.bf16 %v686_v62, %v683_v61  ;;  %v4280_v9 = vpack.c.bf16 %v298_v4, %v296_v3  ;;  %v699_v14 = vld [vmem:[%s7332_s9 + $0x1d0] sm:$0xff] }
  0x91   :  { %4265 = vmatpush1.bf16.msra.mxu1 %v4264_v24  ;;  %v696_v12 = vld [vmem:[%s7332_s9 + $0x1b8] sm:$0xff]  ;;  %v4282_v13 = vpack.c.bf16 %v303_v6, %v301_v5  ;;  %v300_v15 = vld [vmem:[%s7328_s5 + $0x160] sm:$0xff]  ;;  %v302_v16 = vld [vmem:[%s7328_s5 + $0x170] sm:$0xff] }
  0x92   :  { %4325 = vmatpush1.bf16.msra.mxu0 %v4324_v10  ;;  %4267 = vmatprep.subr.bf16.mxu1 %v4266_v28  ;;  %v689_v10 = vld [vmem:[%s7332_s9 + $0x180] sm:$0xff]  ;;  %v305_v17 = vld [vmem:[%s7328_s5 + $0x188] sm:$0xff]  ;;  %v307_v18 = vld [vmem:[%s7328_s5 + $0x198] sm:$0xff]  ;;  %v4350_v20 = vpack.c.bf16 %v699_v14, %v696_v12  ;;  %v4284_v21 = vpack.c.bf16 %v302_v16, %v300_v15 }
  0x93   :  { %4327 = vmatprep.subr.bf16.mxu0 %v4326_v11  ;;  %v692_v11 = vld [vmem:[%s7332_s9 + $0x198] sm:$0xff]  ;;  %v702_v24 = vld [vmem:[%s7332_s9 + $0x1e8] sm:$0xff]  ;;  %v4286_v25 = vpack.c.bf16 %v307_v18, %v305_v17  ;;  %v705_v26 = vld [vmem:[%s7332_s9 + $0x200] sm:$0xff] }
  0x94   :  { %v4348_v19 = vpack.c.bf16 %v692_v11, %v689_v10  ;;  %v304_v27 = vld [vmem:[%s7328_s5 + $0x180] sm:$0xff]  ;;  %v306_v28 = vld [vmem:[%s7328_s5 + $0x190] sm:$0xff]  ;;  %v309_v29 = vld [vmem:[%s7328_s5 + $0x1a8] sm:$0xff]  ;;  %v4354_v32 = vpack.c.bf16 %v705_v26, %v702_v24  ;;  %v162_v26 = vlaneseq }
  0x95   :  { %4269 = vmatpush1.bf16.msra.mxu1 %v4268_v36  ;;  %v311_v30 = vld [vmem:[%s7328_s5 + $0x1b8] sm:$0xff]  ;;  %v4288_v33 = vpack.c.bf16 %v306_v28, %v304_v27  ;;  %v711_v38 = vld [vmem:[%s7332_s9 + $0x230] sm:$0xff]  ;;  %v308_v39 = vld [vmem:[%s7328_s5 + $0x1a0] sm:$0xff] }
  0x96   :  { %4329 = vmatpush1.bf16.msra.mxu0 %v4328_v22  ;;  %4271 = vmatprep.subr.bf16.mxu1 %v4270_v40  ;;  %v695_v22 = vld [vmem:[%s7332_s9 + $0x1b0] sm:$0xff]  ;;  %v708_v36 = vld [vmem:[%s7332_s9 + $0x218] sm:$0xff]  ;;  %v4290_v37 = vpack.c.bf16 %v311_v30, %v309_v29  ;;  %v313_v41 = vld [vmem:[%s7328_s5 + $0x1c8] sm:$0xff]  ;;  %v5891_v27 = vshrl.u32 %v162_v26, 7 }
  0x97   :  { %4331 = vmatprep.subr.bf16.mxu0 %v4330_v23  ;;  %v698_v23 = vld [vmem:[%s7332_s9 + $0x1c8] sm:$0xff]  ;;  %v310_v40 = vld [vmem:[%s7328_s5 + $0x1b0] sm:$0xff]  ;;  %v315_v42 = vld [vmem:[%s7328_s5 + $0x1d8] sm:$0xff]  ;;  %v4358_v44 = vpack.c.bf16 %v711_v38, %v708_v36 }
  0x98   :  { %v4352_v31 = vpack.c.bf16 %v698_v23, %v695_v22  ;;  %v4292_v45 = vpack.c.bf16 %v310_v40, %v308_v39  ;;  %v4294_v49 = vpack.c.bf16 %v315_v42, %v313_v41  ;;  %v717_v50 = vld [vmem:[%s7332_s9 + $0x260] sm:$0xff]  ;;  %v716_v57 = vld [vmem:[%s7332_s9 + $0x258] sm:$0xff]  ;;  %v723_v63 = vld [vmem:[%s7332_s9 + $0x290] sm:$0xff]  ;;  %v5894_v28 = vsub.s32 1, %v5891_v27 }
  0x99   :  { %4273 = vmatpush1.bf16.msra.mxu1 %v4272_v48  ;;  %v714_v48 = vld [vmem:[%s7332_s9 + $0x248] sm:$0xff]  ;;  %v312_v51 = vld [vmem:[%s7328_s5 + $0x1c0] sm:$0xff]  ;;  %v720_v61 = vld [vmem:[%s7332_s9 + $0x278] sm:$0xff]  ;;  %v5897_v30 = vsub.s32 0, %v5891_v27 }
  0x9a   :  { %4333 = vmatpush1.bf16.msra.mxu0 %v4332_v34  ;;  %4275 = vmatprep.subr.bf16.mxu1 %v4274_v52  ;;  %v701_v34 = vld [vmem:[%s7332_s9 + $0x1e0] sm:$0xff]  ;;  %v314_v52 = vld [vmem:[%s7328_s5 + $0x1d0] sm:$0xff]  ;;  %v4362_v54 = vpack.c.bf16 %v717_v50, %v714_v48  ;;  %v4366_v3 = vpack.c.bf16 %v723_v63, %v720_v61  ;;  %v722_v6 = vld [vmem:[%s7332_s9 + $0x288] sm:$0xff] }
  0x9b   :  { %4335 = vmatprep.subr.bf16.mxu0 %v4334_v35  ;;  %v704_v35 = vld [vmem:[%s7332_s9 + $0x1f8] sm:$0xff]  ;;  %v4296_v55 = vpack.c.bf16 %v314_v52, %v312_v51  ;;  %v713_v56 = vld [vmem:[%s7332_s9 + $0x240] sm:$0xff]  ;;  %v318_v2 = vld [vmem:[%s7328_s5 + $0x1f0] sm:$0xff] }
  0x9c   :  { %v4356_v43 = vpack.c.bf16 %v704_v35, %v701_v34  ;;  %v719_v5 = vld [vmem:[%s7332_s9 + $0x270] sm:$0xff]  ;;  %v694_v12 = vld [vmem:[%s7332_s9 + $0x1a8] sm:$0xff]  ;;  %v728_v14 = vld [vmem:[%s7332_s9 + $0x2b8] sm:$0xff] }
  0x9d   :  { %4277 = vmatpush1.bf16.msra.mxu1 %v4276_v60  ;;  %v319_v60 = vld [vmem:[%s7328_s5 + $0x1f8] sm:$0xff]  ;;  %v691_v10 = vld [vmem:[%s7332_s9 + $0x190] sm:$0xff]  ;;  %v738_v23 = vld [vmem:[%s7332_s9 + $0x308] sm:$0xff] }
  0x9e   :  { %4337 = vmatpush1.bf16.msra.mxu0 %v4336_v46  ;;  %4279 = vmatprep.subr.bf16.mxu1 %v4278_v1  ;;  %v707_v46 = vld [vmem:[%s7332_s9 + $0x210] sm:$0xff]  ;;  %v316_v1 = vld [vmem:[%s7328_s5 + $0x1e0] sm:$0xff]  ;;  %v4410_v15 = vpack.c.bf16 %v694_v12, %v691_v10  ;;  %v732_v17 = vld [vmem:[%s7332_s9 + $0x2d8] sm:$0xff] }
  0x9f   :  { %4339 = vmatprep.subr.bf16.mxu0 %v4338_v47  ;;  %v710_v47 = vld [vmem:[%s7332_s9 + $0x228] sm:$0xff]  ;;  %v4300_v4 = vpack.c.bf16 %v318_v2, %v316_v1  ;;  %v735_v18 = vld [vmem:[%s7332_s9 + $0x2f0] sm:$0xff]  ;;  %v741_v24 = vld [vmem:[%s7332_s9 + $0x320] sm:$0xff] }
  0xa0   :  { %v4360_v53 = vpack.c.bf16 %v710_v47, %v707_v46  ;;  %v139_v29 = vld [vmem:[#allocation2 + $0x1] ss:$8 sm:$0x3]  ;;  %v5913_v41 = vld [vmem:[#allocation2] ss:$8 sm:$0x7] }
  0xa1   :  { %4281 = vmatpush1.bf16.msra.mxu1 %v4280_v9  ;;  %v729_v9 = vld [vmem:[%s7332_s9 + $0x2c0] sm:$0xff]  ;;  %v646_v34 = vld [vmem:[%s7332_s9 + $0x28] sm:$0xff]  ;;  %v703_v47 = vld [vmem:[%s7332_s9 + $0x1f0] sm:$0xff]  ;;  %v460_v51 = vrot.slane %v5913_v41, %v5897_v30 }
  0xa2   :  { %4341 = vmatpush1.bf16.msra.mxu0 %v4340_v58  ;;  %4283 = vmatprep.subr.bf16.mxu1 %v4282_v13  ;;  %v4364_v58 = vpack.c.bf16 %v716_v57, %v713_v56  ;;  %v725_v13 = vld [vmem:[%s7332_s9 + $0x2a0] sm:$0xff]  ;;  %v706_v48 = vld [vmem:[%s7332_s9 + $0x208] sm:$0xff]  ;;  %v740_v56 = vld [vmem:[%s7332_s9 + $0x318] sm:$0xff] }
  0xa3   :  { %4343 = vmatprep.subr.bf16.mxu0 %v4342_v59  ;;  %v317_v59 = vld [vmem:[%s7328_s5 + $0x1e8] sm:$0xff]  ;;  %v4372_v16 = vpack.c.bf16 %v728_v14, %v725_v13  ;;  %v697_v36 = vld [vmem:[%s7332_s9 + $0x1c0] sm:$0xff]  ;;  %v4418_v57 = vpack.c.bf16 %v706_v48, %v703_v47  ;;  %v712_v1 = vld [vmem:[%s7332_s9 + $0x238] sm:$0xff] }
  0xa4   :  { %v4298_v62 = vpack.c.bf16 %v319_v60, %v317_v59  ;;  %v658_v59 = vld [vmem:[%s7332_s9 + $0x88] sm:$0xff]  ;;  %v744_v60 = vld [vmem:[%s7332_s9 + $0x338] sm:$0xff]  ;;  %v709_v63 = vld [vmem:[%s7332_s9 + $0x220] sm:$0xff] }
  0xa5   :  { %4285 = vmatpush1.bf16.msra.mxu1 %v4284_v21  ;;  %v734_v21 = vld [vmem:[%s7332_s9 + $0x2e8] sm:$0xff]  ;;  %v4422_v10 = vpack.c.bf16 %v712_v1, %v709_v63  ;;  %v664_v12 = vld [vmem:[%s7332_s9 + $0xb8] sm:$0xff]  ;;  %v753_v14 = vld [vmem:[%s7332_s9 + $0x380] sm:$0xff] }
  0xa6   :  { %4345 = vmatpush1.bf16.msra.mxu0 %v4344_v7  ;;  %4287 = vmatprep.subr.bf16.mxu1 %v4286_v25  ;;  %v4368_v7 = vpack.c.bf16 %v722_v6, %v719_v5  ;;  %v4378_v25 = vpack.c.bf16 %v741_v24, %v738_v23  ;;  %v750_v13 = vld [vmem:[%s7332_s9 + $0x368] sm:$0xff]  ;;  %v752_v23 = vld [vmem:[%s7332_s9 + $0x378] sm:$0xff]  ;;  %v765_v48 = vld [vmem:[%s7332_s9 + $0x3e0] sm:$0xff] }
  0xa7   :  { %4347 = vmatprep.subr.bf16.mxu0 %v4346_v8  ;;  %v726_v8 = vld [vmem:[%s7332_s9 + $0x2a8] sm:$0xff] }
  0xa8   :  { %v4370_v11 = vpack.c.bf16 %v729_v9, %v726_v8  ;;  %v746_v8 = vld [vmem:[%s7332_s9 + $0x348] sm:$0xff] }
  0xa9   :  { %4289 = vmatpush1.bf16.msra.mxu1 %v4288_v33  ;;  %v643_v33 = vld [vmem:[%s7332_s9 + $0x10] sm:$0xff]  ;;  %v762_v47 = vld [vmem:[%s7332_s9 + $0x3c8] sm:$0xff] }
  0xaa   :  { %4349 = vmatpush1.bf16.msra.mxu0 %v4348_v19  ;;  %4291 = vmatprep.subr.bf16.mxu1 %v4290_v37  ;;  %v4374_v19 = vpack.c.bf16 %v735_v18, %v732_v17  ;;  %v700_v37 = vld [vmem:[%s7332_s9 + $0x1d8] sm:$0xff]  ;;  %v4412_v40 = vpack.c.bf16 %v646_v34, %v643_v33  ;;  %v759_v33 = vld [vmem:[%s7332_s9 + $0x3b0] sm:$0xff]  ;;  %v721_v34 = vld [vmem:[%s7332_s9 + $0x280] sm:$0xff] }
  0xab   :  { %4351 = vmatprep.subr.bf16.mxu0 %v4350_v20  ;;  %v731_v20 = vld [vmem:[%s7332_s9 + $0x2d0] sm:$0xff] }
  0xac   :  { %v4376_v22 = vpack.c.bf16 %v734_v21, %v731_v20 }
  0xad   :  { %4293 = vmatpush1.bf16.msra.mxu1 %v4292_v45  ;;  %v652_v45 = vld [vmem:[%s7332_s9 + $0x58] sm:$0xff] }
  0xae   :  { %4353 = vmatpush1.bf16.msra.mxu0 %v4352_v31  ;;  %4295 = vmatprep.subr.bf16.mxu1 %v4294_v49  ;;  %v169_v31 = vrot.slane %v139_v29, %v5894_v28 }
  0xaf   :  { %4355 = vmatprep.subr.bf16.mxu0 %v4354_v32  ;;  %v165_v32 = vrot.slane %v139_v29, %v5897_v30  ;;  %v667_v29 = vld [vmem:[%s7332_s9 + $0xd0] sm:$0xff] }
  0xb1   :  { %4297 = vmatpush1.bf16.msra.mxu1 %v4296_v55  ;;  %v737_v55 = vld [vmem:[%s7332_s9 + $0x300] sm:$0xff] }
  0xb2   :  { %4357 = vmatpush1.bf16.msra.mxu0 %v4356_v43  ;;  %4299 = vmatprep.subr.bf16.mxu1 %v4298_v62  ;;  %v4414_v43 = vpack.c.bf16 %v700_v37, %v697_v36  ;;  %v747_v62 = vld [vmem:[%s7332_s9 + $0x350] sm:$0xff]  ;;  %v4380_v5 = vpack.c.bf16 %v740_v56, %v737_v55  ;;  %v4394_v55 = vpack.c.bf16 %v765_v48, %v762_v47  ;;  %v769_v48 = vld [vmem:[%s7332_s9 + $0x400] sm:$0xff] }
  0xb3   :  { %4359 = vmatprep.subr.bf16.mxu0 %v4358_v44  ;;  %v649_v44 = vld [vmem:[%s7332_s9 + $0x40] sm:$0xff]  ;;  %v4382_v9 = vpack.c.bf16 %v747_v62, %v744_v60  ;;  %v771_v60 = vld [vmem:[%s7332_s9 + $0x410] sm:$0xff]  ;;  %v736_v62 = vld [vmem:[%s7332_s9 + $0x2f8] sm:$0xff] }
  0xb5   :  { %4301 = vmatpush1.bf16.msra.mxu1 %v4300_v4 }
  0xb6   :  { %4361 = vmatpush1.bf16.msra.mxu0 %v4360_v53  ;;  %4411 = vmatprep.subr.bf16.mxu1 %v4410_v15  ;;  %v464_v53 = vrot.slane %v5913_v41, %v5894_v28  ;;  %v715_v15 = vld [vmem:[%s7332_s9 + $0x250] sm:$0xff] }
  0xb7   :  { %4363 = vmatprep.subr.bf16.mxu0 %v4362_v54  ;;  %v4416_v54 = vpack.c.bf16 %v652_v45, %v649_v44  ;;  %v673_v45 = vld [vmem:[%s7332_s9 + $0x100] sm:$0xff] }
  0xba   :  { %4365 = vmatpush1.bf16.msra.mxu0 %v4364_v58  ;;  %v655_v58 = vld [vmem:[%s7332_s9 + $0x70] sm:$0xff] }
  0xbb   :  { %4367 = vmatprep.subr.bf16.mxu0 %v4366_v3  ;;  %v4420_v6 = vpack.c.bf16 %v658_v59, %v655_v58  ;;  %v682_v58 = vld [vmem:[%s7332_s9 + $0x148] sm:$0xff]  ;;  %v768_v59 = vld [vmem:[%s7332_s9 + $0x3f8] sm:$0xff] }
  0xbe   :  { %4369 = vmatpush1.bf16.msra.mxu0 %v4368_v7  ;;  %v743_v7 = vld [vmem:[%s7332_s9 + $0x330] sm:$0xff] }
  0xbf   :  { %4371 = vmatprep.subr.bf16.mxu0 %v4370_v11  ;;  %v661_v11 = vld [vmem:[%s7332_s9 + $0xa0] sm:$0xff]  ;;  %v4384_v20 = vpack.c.bf16 %v746_v8, %v743_v7 }
  0xc0   :  { %v4424_v21 = vpack.c.bf16 %v664_v12, %v661_v11  ;;  %v685_v8 = vld [vmem:[%s7332_s9 + $0x160] sm:$0xff]  ;;  %v739_v12 = vld [vmem:[%s7332_s9 + $0x310] sm:$0xff] }
  0xc1   :  { %v777_v11 = vld [vmem:[%s7332_s9 + $0x440] sm:$0xff] }
  0xc2   :  { %4373 = vmatpush1.bf16.msra.mxu0 %v4372_v16  ;;  %v718_v16 = vld [vmem:[%s7332_s9 + $0x268] sm:$0xff] }
  0xc3   :  { %4375 = vmatprep.subr.bf16.mxu0 %v4374_v19  ;;  %v4426_v26 = vpack.c.bf16 %v718_v16, %v715_v15 }
  0xc6   :  { %4377 = vmatpush1.bf16.msra.mxu0 %v4376_v22  ;;  %v749_v22 = vld [vmem:[%s7332_s9 + $0x360] sm:$0xff] }
  0xc7   :  { %4379 = vmatprep.subr.bf16.mxu0 %v4378_v25  ;;  %v4386_v25 = vpack.c.bf16 %v753_v14, %v750_v13  ;;  %v742_v13 = vld [vmem:[%s7332_s9 + $0x328] sm:$0xff] }
 0x14c   :  { %v245_v35 = vpop.f32.mrb[0].mxu0 }
 0x14d   :  { %v247_v38 = vpop.f32.mrb[1].mxu0  ;;  %v246_v42 = vadd.f32 %v245_v35, %v165_v32  ;;  %v724_v35 = vld [vmem:[%s7332_s9 + $0x298] sm:$0xff] }
 0x14e   :  { %v248_v39 = vadd.f32 %v247_v38, %v169_v31  ;;  %v4388_v38 = vpack.c.bf16 %v752_v23, %v749_v22  ;;  %v4430_v44 = vpack.c.bf16 %v724_v35, %v721_v34  ;;  %v783_v22 = vld [vmem:[%s7332_s9 + $0x470] sm:$0xff]  ;;  %v745_v23 = vld [vmem:[%s7332_s9 + $0x340] sm:$0xff]  ;;  %v782_v34 = vld [vmem:[%s7332_s9 + $0x468] sm:$0xff] }
 0x14f   :  { %v754_v35 = vld [vmem:[%s7332_s9 + $0x388] sm:$0xff] }
 0x150   :  { %395 = vmatprep.mubr.f32.mxu1 %v248_v39  ;;  %v251_v46 = vpop.f32.mrb[2].mxu0 }
 0x151   :  { %396 = vmatmul.mubr.f32.vlgmr.msra.gmra.mrb[0].mxu1 %v246_v42  ;;  %v252_v49 = vadd.f32 %v251_v46, %v165_v32  ;;  %v253_v50 = vpop.f32.mrb[3].mxu0  ;;  %v756_v32 = vld [vmem:[%s7332_s9 + $0x398] sm:$0xff]  ;;  %v758_v42 = vld [vmem:[%s7332_s9 + $0x3a8] sm:$0xff] }
 0x152   :  { %4413 = vmatpush3.bf16.msra.mxu1 %v4412_v40  ;;  %v254_v52 = vadd.f32 %v253_v50, %v169_v31  ;;  %v670_v31 = vld [vmem:[%s7332_s9 + $0xe8] sm:$0xff]  ;;  %v755_v40 = vld [vmem:[%s7332_s9 + $0x390] sm:$0xff]  ;;  %v676_v46 = vld [vmem:[%s7332_s9 + $0x118] sm:$0xff] }
 0x153   :  { %4415 = vmatprep.subr.bf16.mxu1 %v4414_v43  ;;  %v4428_v39 = vpack.c.bf16 %v670_v31, %v667_v29  ;;  %v4390_v43 = vpack.c.bf16 %v759_v33, %v756_v32  ;;  %v730_v50 = vld [vmem:[%s7332_s9 + $0x2c8] sm:$0xff]  ;;  %v779_v33 = vld [vmem:[%s7332_s9 + $0x450] sm:$0xff] }
 0x154   :  { %v555_v61 = vpop.f32.mrb[4].mxu0  ;;  %401 = vmatprep.mubr.f32.mxu1 %v254_v52  ;;  %v4432_v52 = vpack.c.bf16 %v676_v46, %v673_v45  ;;  %v763_v45 = vld [vmem:[%s7332_s9 + $0x3d0] sm:$0xff]  ;;  %v766_v46 = vld [vmem:[%s7332_s9 + $0x3e8] sm:$0xff] }
 0x155   :  { %v5955_v2 = vadd.f32 %v555_v61, %v460_v51  ;;  %v557_v3 = vpop.f32.mrb[5].mxu0  ;;  %402 = vmatmul.mubr.f32.gmra.mrb[2].mxu1 %v252_v49  ;;  %v727_v49 = vld [vmem:[%s7332_s9 + $0x2b0] sm:$0xff]  ;;  %v733_v61 = vld [vmem:[%s7332_s9 + $0x2e0] sm:$0xff] }
 0x156   :  { %v5957_v4 = vadd.f32 %v557_v3, %v464_v53  ;;  %4417 = vmatpush3.bf16.msra.mxu1 %v4416_v54  ;;  %v764_v54 = vld [vmem:[%s7332_s9 + $0x3d8] sm:$0xff]  ;;  %v4434_v56 = vpack.c.bf16 %v730_v50, %v727_v49  ;;  %v767_v3 = vld [vmem:[%s7332_s9 + $0x3f0] sm:$0xff]  ;;  %v4438_v7 = vpack.c.bf16 %v736_v62, %v733_v61 }
 0x157   :  { %4419 = vmatprep.subr.bf16.mxu1 %v4418_v57  ;;  %v679_v57 = vld [vmem:[%s7332_s9 + $0x130] sm:$0xff]  ;;  %v772_v49 = vld [vmem:[%s7332_s9 + $0x418] sm:$0xff] }
 0x158   :  { %865 = vmatprep.mubr.f32.mxu0 %v5957_v4  ;;  %1019 = vmatprep.mubr.f32.mxu1 %v5957_v4  ;;  %v561_v17 = vpop.f32.mrb[6].mxu0  ;;  %v4436_v1 = vpack.c.bf16 %v682_v58, %v679_v57  ;;  %v775_v50 = vld [vmem:[%s7332_s9 + $0x430] sm:$0xff]  ;;  %v1284_v57 = vld [vmem:[%s7333_s10 + $0x88] sm:$0xff] }
 0x159   :  { %866 = vmatmul.mubr.f32.vlgmr.msra.gmra.mrb[10].mxu0 %v5955_v2  ;;  %v5986_v18 = vadd.f32 %v561_v17, %v460_v51  ;;  %v563_v19 = vpop.f32.mrb[7].mxu0  ;;  %v4392_v51 = vpack.c.bf16 %v758_v42, %v755_v40  ;;  %v4442_v17 = vpack.c.bf16 %v742_v13, %v739_v12  ;;  %v757_v42 = vld [vmem:[%s7332_s9 + $0x3a0] sm:$0xff]  ;;  %v1285_v62 = vld [vmem:[%s7333_s10 + $0x90] sm:$0xff] }
 0x15a   :  { %4381 = vmatpush1.bf16.msra.mxu0 %v4380_v5  ;;  %4421 = vmatpush3.bf16.msra.mxu1 %v4420_v6  ;;  %v5994_v24 = vadd.f32 %v563_v19, %v464_v53  ;;  %v761_v53 = vld [vmem:[%s7332_s9 + $0x3c0] sm:$0xff]  ;;  %v770_v5 = vld [vmem:[%s7332_s9 + $0x408] sm:$0xff]  ;;  %v4398_v6 = vpack.c.bf16 %v771_v60, %v768_v59  ;;  %v1289_v13 = vld [vmem:[%s7333_s10 + $0xb0] sm:$0xff] }
 0x15b   :  { %4383 = vmatprep.subr.bf16.mxu0 %v4382_v9  ;;  %4423 = vmatprep.subr.bf16.mxu1 %v4422_v10  ;;  %v4396_v63 = vpack.c.bf16 %v764_v54, %v761_v53  ;;  %v688_v9 = vld [vmem:[%s7332_s9 + $0x178] sm:$0xff]  ;;  %v774_v10 = vld [vmem:[%s7332_s9 + $0x428] sm:$0xff]  ;;  %v4400_v14 = vpack.c.bf16 %v770_v5, %v767_v3  ;;  %v773_v19 = vld [vmem:[%s7332_s9 + $0x420] sm:$0xff] }
 0x15c   :  { %871 = vmatprep.mubr.f32.mxu0 %v5994_v24  ;;  %v6015_v36 = vpop.f32.mrb[8].mxu0  ;;  %v4440_v15 = vpack.c.bf16 %v688_v9, %v685_v8  ;;  %v4402_v16 = vpack.c.bf16 %v777_v11, %v774_v10  ;;  %v781_v53 = vld [vmem:[%s7332_s9 + $0x460] sm:$0xff]  ;;  %v784_v54 = vld [vmem:[%s7332_s9 + $0x478] sm:$0xff]  ;;  %v1268_v60 = vld [vmem:[%s7333_s10 + $0x8] sm:$0xff] }
 0x15d   :  { %872 = vmatmul.mubr.f32.gmra.mrb[12].mxu0 %v5986_v18  ;;  %v6018_v37 = vpop.f32.mrb[9].mxu0  ;;  %v1267_v59 = vld [vmem:[%s7333_s10] sm:$0xff]  ;;  %v1269_v3 = vld [vmem:[%s7333_s10 + $0x10] sm:$0xff]  ;;  %v1270_v5 = vld [vmem:[%s7333_s10 + $0x18] sm:$0xff] }
 0x15e   :  { %4385 = vmatpush1.bf16.msra.mxu0 %v4384_v20  ;;  %4425 = vmatpush3.bf16.msra.mxu1 %v4424_v21  ;;  %v776_v20 = vld [vmem:[%s7332_s9 + $0x438] sm:$0xff]  ;;  %v4476_v61 = vpack.c.bf16 %v1268_v60, %v1267_v59  ;;  %v1288_v8 = vld [vmem:[%s7333_s10 + $0xa8] sm:$0xff]  ;;  %v1271_v10 = vld [vmem:[%s7333_s10 + $0x20] sm:$0xff] }
 0x15f   :  { %4387 = vmatprep.subr.bf16.mxu0 %v4386_v25  ;;  %4427 = vmatprep.subr.bf16.mxu1 %v4426_v26  ;;  %v780_v21 = vld [vmem:[%s7332_s9 + $0x458] sm:$0xff]  ;;  %v6112_v26 = vsub.s32 2, %v5891_v27  ;;  %v4404_v29 = vpack.c.bf16 %v776_v20, %v773_v19  ;;  %v751_v27 = vld [vmem:[%s7332_s9 + $0x370] sm:$0xff]  ;;  %v1272_v11 = vld [vmem:[%s7333_s10 + $0x28] sm:$0xff] }
 0x160   :  { %942 = vmatprep.mubr.f32.mxu0 %v5277_v0  ;;  %v748_v25 = vld [vmem:[%s7332_s9 + $0x358] sm:$0xff]  ;;  %v4406_v31 = vpack.c.bf16 %v783_v22, %v780_v21  ;;  %v4450_v40 = vpack.c.bf16 %v754_v35, %v751_v27  ;;  %v4484_v12 = vpack.c.bf16 %v1272_v11, %v1271_v10  ;;  %v1291_v20 = vld [vmem:[%s7333_s10 + $0xc0] sm:$0xff]  ;;  %v1292_v21 = vld [vmem:[%s7333_s10 + $0xc8] sm:$0xff] }
 0x161   :  { %v4446_v32 = vpack.c.bf16 %v748_v25, %v745_v23  ;;  %v4490_v22 = vpack.c.bf16 %v1292_v21, %v1291_v20  ;;  %v1275_v23 = vld [vmem:[%s7333_s10 + $0x40] sm:$0xff]  ;;  %v1276_v25 = vld [vmem:[%s7333_s10 + $0x48] sm:$0xff]  ;;  %v1278_v27 = vld [vmem:[%s7333_s10 + $0x58] sm:$0xff] }
 0x162   :  { %4389 = vmatpush1.bf16.msra.mxu0 %v4388_v38  ;;  %4429 = vmatpush3.bf16.msra.mxu1 %v4428_v39  ;;  %v468_v38 = vrot.slane %v5913_v41, %v6112_v26  ;;  %v4408_v39 = vpack.c.bf16 %v782_v34, %v779_v33  ;;  %v1277_v34 = vld [vmem:[%s7333_s10 + $0x50] sm:$0xff]  ;;  %v1306_v60 = vld [vmem:[%s7333_s10 + $0x138] sm:$0xff] }
 0x163   :  { %4391 = vmatprep.subr.bf16.mxu0 %v4390_v43  ;;  %4431 = vmatprep.subr.bf16.mxu1 %v4430_v44  ;;  %v760_v43 = vld [vmem:[%s7332_s9 + $0x3b8] sm:$0xff]  ;;  %v4496_v35 = vpack.c.bf16 %v1278_v27, %v1277_v34  ;;  %v1305_v59 = vld [vmem:[%s7333_s10 + $0x130] sm:$0xff] }
 0x164   :  { %v6137_v44 = vadd.f32 %v6018_v37, %v468_v38  ;;  %v4454_v41 = vpack.c.bf16 %v760_v43, %v757_v42  ;;  %v6148_v47 = vadd.f32 %v6015_v36, %v468_v38  ;;  %v4458_v37 = vpack.c.bf16 %v766_v46, %v763_v45  ;;  %v1295_v38 = vld [vmem:[%s7333_s10 + $0xe0] sm:$0xff]  ;;  %v1300_v43 = vld [vmem:[%s7333_s10 + $0x108] sm:$0xff]  ;;  %v1313_v10 = vld [vmem:[%s7333_s10 + $0x170] sm:$0xff] }
 0x165   :  { %v4462_v36 = vpack.c.bf16 %v772_v49, %v769_v48  ;;  %v1280_v45 = vld [vmem:[%s7333_s10 + $0x68] sm:$0xff]  ;;  %v1297_v48 = vld [vmem:[%s7333_s10 + $0xf0] sm:$0xff]  ;;  %v1298_v49 = vld [vmem:[%s7333_s10 + $0xf8] sm:$0xff] }
 0x166   :  { %4393 = vmatpush1.bf16.msra.mxu0 %v4392_v51  ;;  %4433 = vmatpush3.bf16.msra.mxu1 %v4432_v52  ;;  %v778_v51 = vld [vmem:[%s7332_s9 + $0x448] sm:$0xff]  ;;  %v1314_v11 = vld [vmem:[%s7333_s10 + $0x178] sm:$0xff] }
 0x167   :  { %4395 = vmatprep.subr.bf16.mxu0 %v4394_v55  ;;  %4435 = vmatprep.subr.bf16.mxu1 %v4434_v56  ;;  %v4466_v52 = vpack.c.bf16 %v778_v51, %v775_v50  ;;  %v4470_v55 = vpack.c.bf16 %v784_v54, %v781_v53  ;;  %v1283_v56 = vld [vmem:[%s7333_s10 + $0x80] sm:$0xff]  ;;  %v4502_v50 = vpack.c.bf16 %v1298_v49, %v1297_v48  ;;  %v1302_v51 = vld [vmem:[%s7333_s10 + $0x118] sm:$0xff] }
 0x168   :  { %v4474_v58 = vpack.c.bf16 %v1284_v57, %v1283_v56  ;;  %v1282_v53 = vld [vmem:[%s7333_s10 + $0x78] sm:$0xff]  ;;  %v1303_v56 = vld [vmem:[%s7333_s10 + $0x120] sm:$0xff]  ;;  %v1304_v57 = vld [vmem:[%s7333_s10 + $0x128] sm:$0xff] }
 0x169   :  { %v143_v21 = vld [vmem:[#allocation2 + $0x3] ss:$8 sm:$0x7] }
 0x16a   :  { %4397 = vmatpush1.bf16.msra.mxu0 %v4396_v63  ;;  %4437 = vmatpush3.bf16.msra.mxu1 %v4436_v1  ;;  %v1286_v63 = vld [vmem:[%s7333_s10 + $0x98] sm:$0xff] }
 0x16b   :  { %4399 = vmatprep.subr.bf16.mxu0 %v4398_v6  ;;  %4439 = vmatprep.subr.bf16.mxu1 %v4438_v7  ;;  %v4478_v1 = vpack.c.bf16 %v1286_v63, %v1285_v62  ;;  %v4480_v6 = vpack.c.bf16 %v1270_v5, %v1269_v3  ;;  %v1287_v7 = vld [vmem:[%s7333_s10 + $0xa0] sm:$0xff]  ;;  %v1308_v63 = vld [vmem:[%s7333_s10 + $0x148] sm:$0xff]  ;;  %v1309_v3 = vld [vmem:[%s7333_s10 + $0x150] sm:$0xff] }
 0x16c   :  { %v4482_v9 = vpack.c.bf16 %v1288_v8, %v1287_v7  ;;  %v1307_v62 = vld [vmem:[%s7333_s10 + $0x140] sm:$0xff]  ;;  %v1310_v5 = vld [vmem:[%s7333_s10 + $0x158] sm:$0xff]  ;;  %v1312_v8 = vld [vmem:[%s7333_s10 + $0x168] sm:$0xff] }
 0x16d   :  { %v1311_v7 = vld [vmem:[%s7333_s10 + $0x160] sm:$0xff] }
 0x16e   :  { %4401 = vmatpush1.bf16.msra.mxu0 %v4400_v14  ;;  %4441 = vmatpush3.bf16.msra.mxu1 %v4440_v15  ;;  %v1290_v14 = vld [vmem:[%s7333_s10 + $0xb8] sm:$0xff] }
 0x16f   :  { %4403 = vmatprep.subr.bf16.mxu0 %v4402_v16  ;;  %4443 = vmatprep.subr.bf16.mxu1 %v4442_v17  ;;  %v4486_v15 = vpack.c.bf16 %v1290_v14, %v1289_v13  ;;  %v1273_v16 = vld [vmem:[%s7333_s10 + $0x30] sm:$0xff] }
 0x171   :  { %1020 = vmatmul.mubr.f32.vlgmr.msra.gmra.mrb[4].mxu1 %v5955_v2 }
 0x172   :  { %4405 = vmatpush1.bf16.msra.mxu0 %v4404_v29  ;;  %4445 = vmatpush3.bf16.msra.mxu1 %v4442_v17  ;;  %v1274_v17 = vld [vmem:[%s7333_s10 + $0x38] sm:$0xff]  ;;  %v4492_v29 = vpack.c.bf16 %v1276_v25, %v1275_v23  ;;  %v789_v23 = vrot.slane %v143_v21, %v5897_v30 }
 0x173   :  { %4407 = vmatprep.subr.bf16.mxu0 %v4406_v31  ;;  %4447 = vmatprep.subr.bf16.mxu1 %v4446_v32  ;;  %v4488_v19 = vpack.c.bf16 %v1274_v17, %v1273_v16  ;;  %v1293_v31 = vld [vmem:[%s7333_s10 + $0xd0] sm:$0xff] }
 0x174   :  { %1024 = vmatprep.mubr.f32.mxu1 %v5994_v24 }
 0x175   :  { %1025 = vmatmul.mubr.f32.gmra.mrb[6].mxu1 %v5986_v18 }
 0x176   :  { %4409 = vmatpush1.bf16.msra.mxu0 %v4408_v39  ;;  %4449 = vmatpush3.bf16.msra.mxu1 %v4446_v32  ;;  %v1294_v32 = vld [vmem:[%s7333_s10 + $0xd8] sm:$0xff]  ;;  %v1296_v39 = vld [vmem:[%s7333_s10 + $0xe8] sm:$0xff] }
 0x177   :  { %4451 = vmatprep.subr.bf16.mxu1 %v4450_v40  ;;  %3900 = vmatprep.mubr.f32.mxu1 %v6137_v44  ;;  %v4494_v33 = vpack.c.bf16 %v1294_v32, %v1293_v31  ;;  %v4498_v42 = vpack.c.bf16 %v1296_v39, %v1295_v38 }
 0x178   :  { %4475 = vmatprep.subr.bf16.mxu0 %v4474_v58  ;;  %v4514_v58 = vpack.c.bf16 %v1304_v57, %v1303_v56 }
 0x179   :  { %943 = vmatmul.mubr.f32.vlgmr.msra.gmra.mrb[10].mxu0 %v6137_v44 }
 0x17a   :  { %4453 = vmatpush3.bf16.msra.mxu1 %v4450_v40  ;;  %948 = vmatprep.mubr.f32.mxu0 %v5277_v0  ;;  %v1299_v40 = vld [vmem:[%s7333_s10 + $0x100] sm:$0xff] }
 0x17b   :  { %4455 = vmatprep.subr.bf16.mxu1 %v4454_v41  ;;  %4477 = vmatpush3.bf16.msra.mxu0 %v4476_v61  ;;  %v4506_v46 = vpack.c.bf16 %v1300_v43, %v1299_v40  ;;  %v4518_v61 = vpack.c.bf16 %v1306_v60, %v1305_v59  ;;  %v797_v60 = vrot.slane %v143_v21, %v6112_v26 }
 0x17c   :  { %4479 = vmatprep.subr.bf16.mxu0 %v4478_v1  ;;  %v4522_v1 = vpack.c.bf16 %v1308_v63, %v1307_v62 }
 0x17d   :  { %949 = vmatmul.mubr.f32.gmra.mrb[12].mxu0 %v6148_v47 }
 0x17e   :  { %4457 = vmatpush3.bf16.msra.mxu1 %v4454_v41  ;;  %v1279_v41 = vld [vmem:[%s7333_s10 + $0x60] sm:$0xff] }
 0x17f   :  { %4459 = vmatprep.subr.bf16.mxu1 %v4458_v37  ;;  %4481 = vmatpush3.bf16.msra.mxu0 %v4480_v6  ;;  %v4526_v6 = vpack.c.bf16 %v1310_v5, %v1309_v3 }
 0x180   :  { %4483 = vmatprep.subr.bf16.mxu0 %v4482_v9  ;;  %v4530_v9 = vpack.c.bf16 %v1312_v8, %v1311_v7 }
 0x182   :  { %4461 = vmatpush3.bf16.msra.mxu1 %v4458_v37  ;;  %v4500_v37 = vpack.c.bf16 %v1280_v45, %v1279_v41 }
 0x183   :  { %4463 = vmatprep.subr.bf16.mxu1 %v4462_v36  ;;  %4485 = vmatpush3.bf16.msra.mxu0 %v4484_v12  ;;  %v4534_v12 = vpack.c.bf16 %v1314_v11, %v1313_v10 }
 0x184   :  { %4487 = vmatprep.subr.bf16.mxu0 %v4486_v15 }
 0x186   :  { %4465 = vmatpush3.bf16.msra.mxu1 %v4462_v36  ;;  %v1301_v36 = vld [vmem:[%s7333_s10 + $0x110] sm:$0xff] }
 0x187   :  { %4467 = vmatprep.subr.bf16.mxu1 %v4466_v52  ;;  %4489 = vmatpush3.bf16.msra.mxu0 %v4488_v19  ;;  %v4510_v54 = vpack.c.bf16 %v1302_v51, %v1301_v36 }
 0x188   :  { %4491 = vmatprep.subr.bf16.mxu0 %v4490_v22 }
 0x18a   :  { %4469 = vmatpush3.bf16.msra.mxu1 %v4466_v52  ;;  %v1281_v52 = vld [vmem:[%s7333_s10 + $0x70] sm:$0xff] }
 0x18b   :  { %4471 = vmatprep.subr.bf16.mxu1 %v4470_v55  ;;  %4493 = vmatpush3.bf16.msra.mxu0 %v4492_v29  ;;  %v793_v29 = vrot.slane %v143_v21, %v5894_v28 }
 0x18c   :  { %4495 = vmatprep.subr.bf16.mxu0 %v4494_v33 }
 0x18e   :  { %4473 = vmatpush3.bf16.msra.mxu1 %v4470_v55  ;;  %v4504_v55 = vpack.c.bf16 %v1282_v53, %v1281_v52 }
 0x18f   :  { %4497 = vmatpush3.bf16.msra.mxu0 %v4496_v35  ;;  %4507 = vmatprep.subr.bf16.mxu1 %v4506_v46 }
 0x190   :  { %4499 = vmatprep.subr.bf16.mxu0 %v4498_v42 }
 0x191   :  { %3901 = vmatmul.mubr.f32.vlgmr.msra.gmra.mrb[8].mxu1 %v6148_v47 }
 0x192   :  { %4509 = vmatpush3.bf16.msra.mxu1 %v4506_v46 }
 0x193   :  { %4501 = vmatpush3.bf16.msra.mxu0 %v4500_v37  ;;  %4511 = vmatprep.subr.bf16.mxu1 %v4510_v54 }
 0x194   :  { %4503 = vmatprep.subr.bf16.mxu0 %v4502_v50 }
 0x196   :  { %4513 = vmatpush3.bf16.msra.mxu1 %v4510_v54 }
 0x197   :  { %4505 = vmatpush3.bf16.msra.mxu0 %v4504_v55  ;;  %4515 = vmatprep.subr.bf16.mxu1 %v4514_v58 }
 0x19a   :  { %4517 = vmatpush3.bf16.msra.mxu1 %v4514_v58 }
 0x19b   :  { %4519 = vmatprep.subr.bf16.mxu1 %v4518_v61 }
 0x19e   :  { %4521 = vmatpush3.bf16.msra.mxu1 %v4518_v61 }
 0x19f   :  { %4523 = vmatprep.subr.bf16.mxu1 %v4522_v1 }
 0x1a2   :  { %4525 = vmatpush3.bf16.msra.mxu1 %v4522_v1 }
 0x1a3   :  { %4527 = vmatprep.subr.bf16.mxu1 %v4526_v6 }
 0x1a6   :  { %4529 = vmatpush3.bf16.msra.mxu1 %v4526_v6 }
 0x1a7   :  { %4531 = vmatprep.subr.bf16.mxu1 %v4530_v9 }
 0x1aa   :  { %4533 = vmatpush3.bf16.msra.mxu1 %v4530_v9 }
 0x1ab   :  { %4535 = vmatprep.subr.bf16.mxu1 %v4534_v12 }
 0x1ae   :  { %4537 = vmatpush3.bf16.msra.mxu1 %v4534_v12 }
 0x224   :  { %v6316_v13 = vpop.f32.mrb[0].mxu1 }
 0x225   :  { %v6318_v14 = vpop.f32.mrb[1].mxu1 }
 0x228   :  { %v6320_v15 = vpop.f32.mrb[2].mxu1 }
 0x229   :  { %v6322_v16 = vpop.f32.mrb[3].mxu1 }
 0x244   :  { %v3511_v17 = vpop.f32.mrb[4].mxu1 }
 0x245   :  { %v3512_v19 = vpop.f32.mrb[5].mxu1 }
 0x246   :  { %v3513_v20 = vadd.f32 %v3512_v19, %v3511_v17 }
 0x248   :  { %v3514_v22 = vpop.f32.mrb[6].mxu1  ;;  %v1022_v11 = vadd.f32 %v3513_v20, %v797_v60 }
 0x249   :  { %v3515_v25 = vpop.f32.mrb[7].mxu1 }
 0x24a   :  { %v3516_v31 = vadd.f32 %v3515_v25, %v3514_v22 }
 0x24c   :  { %v944_v32 = vpop.f32.mrb[10].mxu0  ;;  %v1027_v6 = vadd.f32 %v3516_v31, %v797_v60 }
 0x24d   :  { %v6326_v33 = vadd.f32 %v944_v32, %v789_v23  ;;  %v946_v34 = vpop.f32.mrb[11].mxu0 }
 0x24e   :  { %v6328_v27 = vadd.f32 %v946_v34, %v793_v29 }
 0x24f   :  { %v6331_v35 = vmul.f32 0.70710677, %v6326_v33 }
 0x250   :  { %v6334_v38 = vmul.f32 0.70710677, %v6328_v27  ;;  %v950_v39 = vpop.f32.mrb[12].mxu0 }
 0x251   :  { %v1117_v40 = vand.u32 2147483647, %v6331_v35  ;;  %v6337_v42 = vadd.f32 %v950_v39, %v789_v23  ;;  %v952_v43 = vpop.f32.mrb[13].mxu0  ;;  %vm1237_vm5 = vcmp.lt.f32.partialorder %v6331_v35, 0.0  ;;  %v1106_v35 = vmul.f32 0.5, %v6328_v27 }
 0x252   :  { %v1118_v41 = vand.u32 2147483647, %v6334_v38  ;;  %v6340_v45 = vadd.f32 %v952_v43, %v793_v29  ;;  %vm1238_vm6 = vcmp.lt.f32.partialorder %v6334_v38, 0.0  ;;  %v1105_v38 = vmul.f32 0.5, %v6326_v33 }
 0x253   :  { %v1123_v46 = vmul.f32 0.3275911, %v1117_v40  ;;  %v6343_v37 = vmul.f32 0.70710677, %v6337_v42  ;;  %v1201_v57 = vsub.f32 0.0, %v1117_v40 }
 0x254   :  { %v1124_v48 = vmul.f32 0.3275911, %v1118_v41  ;;  %v6346_v49 = vmul.f32 0.70710677, %v6340_v45  ;;  %v1202_v58 = vsub.f32 0.0, %v1118_v41  ;;  %v1109_v27 = vmul.f32 0.5, %v6340_v45 }
 0x255   :  { %v1129_v36 = vadd.f32 1.0, %v1123_v46  ;;  %v1120_v50 = vand.u32 2147483647, %v6343_v37  ;;  %v1207_v59 = vmul.f32 %v1201_v57, %v1117_v40  ;;  %vm1240_vm8 = vcmp.lt.f32.partialorder %v6343_v37, 0.0 }
 0x256   :  { %v1130_v51 = vadd.f32 1.0, %v1124_v48  ;;  %v1121_v52 = vand.u32 2147483647, %v6346_v49  ;;  %v1208_v62 = vmul.f32 %v1202_v58, %v1118_v41  ;;  %vm1241_vm7 = vcmp.lt.f32.partialorder %v6346_v49, 0.0 }
 0x257   :  { %5041 = vrcp.f32 %v1129_v36  ;;  %v1126_v53 = vmul.f32 0.3275911, %v1120_v50  ;;  %v1204_v63 = vsub.f32 0.0, %v1120_v50  ;;  %v1213_v9 = vmul.f32 1.442695, %v1207_v59 }
 0x258   :  { %5043 = vrcp.f32 %v1130_v51  ;;  %v1127_v54 = vmul.f32 0.3275911, %v1121_v52  ;;  %v1205_v5 = vsub.f32 0.0, %v1121_v52  ;;  %v1215_v17 = vmul.f32 1.442695, %v1208_v62 }
 0x259   :  { %v1132_v55 = vadd.f32 1.0, %v1126_v53  ;;  %v1210_v19 = vmul.f32 %v1204_v63, %v1120_v50 }
 0x25a   :  { %v1133_v56 = vadd.f32 1.0, %v1127_v54  ;;  %v1211_v32 = vmul.f32 %v1205_v5, %v1121_v52 }
 0x25b   :  { %5045 = vrcp.f32 %v1132_v55  ;;  %v1219_v46 = vmul.f32 1.442695, %v1210_v19 }
 0x25c   :  { %5047 = vrcp.f32 %v1133_v56  ;;  %v1221_v51 = vmul.f32 1.442695, %v1211_v32 }
 0x25d   :  { %5049 = vpow2.f32 %v1213_v9 }
 0x25e   :  { %5051 = vpow2.f32 %v1215_v17 }
 0x25f   :  { %5053 = vpow2.f32 %v1219_v46 }
 0x260   :  { %5055 = vpow2.f32 %v1221_v51 }
 0x261   :  { %v5042_v61 = vpop.eup %5041 }
 0x262   :  { %v5044_v1 = vpop.eup %5043  ;;  %v1147_v3 = vmul.f32 1.0614054, %v5042_v61 }
 0x263   :  { %v1148_v7 = vmul.f32 1.0614054, %v5044_v1 }
 0x264   :  { %v1153_v8 = vadd.f32 -1.4531521, %v1147_v3  ;;  %v3902_v10 = vpop.f32.mrb[8].mxu1 }
 0x265   :  { %v6351_v12 = vpop.eup %5045  ;;  %v6353_v22 = vadd.f32 %v3902_v10, %v1027_v6  ;;  %v1096_v23 = vpop.f32.mrb[9].mxu1  ;;  %v1154_v21 = vadd.f32 -1.4531521, %v1148_v7 }
 0x266   :  { %v5048_v25 = vpop.eup %5047  ;;  %v1159_v29 = vmul.f32 %v5042_v61, %v1153_v8  ;;  %v6355_v34 = vadd.f32 %v1096_v23, %v1022_v11  ;;  %v1150_v20 = vmul.f32 1.0614054, %v6351_v12 }
 0x267   :  { %v6358_v31 = vmul.f32 0.70710677, %v6353_v22  ;;  %v1160_v39 = vmul.f32 %v5044_v1, %v1154_v21  ;;  %v1151_v40 = vmul.f32 1.0614054, %v5048_v25  ;;  %v5050_v19 = vpop.eup %5049 }
 0x268   :  { %v1165_v43 = vadd.f32 1.4214138, %v1159_v29  ;;  %v6362_v41 = vmul.f32 0.70710677, %v6355_v34  ;;  %v1156_v56 = vadd.f32 -1.4531521, %v1150_v20  ;;  %v5052_v29 = vpop.eup %5051 }
 0x269   :  { %v1122_v48 = vand.u32 2147483647, %v6358_v31  ;;  %v1166_v36 = vadd.f32 1.4214138, %v1160_v39  ;;  %v1157_v53 = vadd.f32 -1.4531521, %v1151_v40 }
 0x26a   :  { %v1171_v50 = vmul.f32 %v5042_v61, %v1165_v43  ;;  %v1119_v52 = vand.u32 2147483647, %v6362_v41  ;;  %v1162_v63 = vmul.f32 %v6351_v12, %v1156_v56  ;;  %vm1242_vm9 = vcmp.lt.f32.partialorder %v6358_v31, 0.0  ;;  %v3444_v31 = vld [vmem:[%s7334_s11 + $0x68] sm:$0xff] }
 0x26b   :  { %v1128_v54 = vmul.f32 0.3275911, %v1122_v48  ;;  %v1172_v55 = vmul.f32 %v5044_v1, %v1166_v36  ;;  %v1163_v59 = vmul.f32 %v5048_v25, %v1157_v53  ;;  %v1206_v43 = vsub.f32 0.0, %v1122_v48 }
 0x26c   :  { %v1177_v57 = vadd.f32 -0.28449672, %v1171_v50  ;;  %v1125_v58 = vmul.f32 0.3275911, %v1119_v52  ;;  %v1168_v8 = vadd.f32 1.4214138, %v1162_v63 }
 0x26d   :  { %v1134_v60 = vadd.f32 1.0, %v1128_v54  ;;  %v1178_v62 = vadd.f32 -0.28449672, %v1172_v55  ;;  %v1169_v6 = vadd.f32 1.4214138, %v1163_v59  ;;  %v1203_v51 = vsub.f32 0.0, %v1119_v52  ;;  %v5054_v54 = vpop.eup %5053 }
 0x26e   :  { %v1183_v3 = vmul.f32 %v5042_v61, %v1177_v57  ;;  %v1131_v5 = vadd.f32 1.0, %v1125_v58  ;;  %v1174_v17 = vmul.f32 %v6351_v12, %v1168_v8  ;;  %v5056_v57 = vpop.eup %5055  ;;  %vm1239_vm10 = vcmp.lt.f32.partialorder %v6362_v41, 0.0 }
 0x26f   :  { %5057 = vrcp.f32 %v1134_v60  ;;  %v1184_v7 = vmul.f32 %v5044_v1, %v1178_v62  ;;  %v1175_v10 = vmul.f32 %v5048_v25, %v1169_v6  ;;  %v1209_v6 = vmul.f32 %v1203_v51, %v1119_v52 }
 0x270   :  { %v1189_v9 = vadd.f32 0.2548296, %v1183_v3  ;;  %5059 = vrcp.f32 %v1131_v5  ;;  %v1180_v39 = vadd.f32 -0.28449672, %v1174_v17  ;;  %v1108_v51 = vmul.f32 0.5, %v6337_v42 }
 0x271   :  { %v1190_v11 = vadd.f32 0.2548296, %v1184_v7  ;;  %v1181_v21 = vadd.f32 -0.28449672, %v1175_v10 }
 0x272   :  { %v1195_v23 = vmul.f32 %v5042_v61, %v1189_v9  ;;  %v1186_v36 = vmul.f32 %v6351_v12, %v1180_v39 }
 0x273   :  { %v1196_v32 = vmul.f32 %v5044_v1, %v1190_v11  ;;  %v1187_v20 = vmul.f32 %v5048_v25, %v1181_v21  ;;  %v1212_v1 = vmul.f32 %v1206_v43, %v1122_v48 }
 0x274   :  { %v1225_v40 = vmul.f32 %v5050_v19, %v1195_v23  ;;  %v1192_v56 = vadd.f32 0.2548296, %v1186_v36 }
 0x275   :  { %v1226_v46 = vmul.f32 %v5052_v29, %v1196_v32  ;;  %v1193_v53 = vadd.f32 0.2548296, %v1187_v20  ;;  %v1223_v48 = vmul.f32 1.442695, %v1212_v1  ;;  %v1217_v29 = vmul.f32 1.442695, %v1209_v6 }
 0x276   :  { %v1231_v50 = vsub.f32 1.0, %v1225_v40  ;;  %v1198_v62 = vmul.f32 %v6351_v12, %v1192_v56 }
 0x277   :  { %v1232_v55 = vsub.f32 1.0, %v1226_v46  ;;  %v1199_v58 = vmul.f32 %v5048_v25, %v1193_v53  ;;  %5061 = vpow2.f32 %v1223_v48  ;;  %v3443_v48 = vld [vmem:[%s7334_s11 + $0x60] sm:$0xff] }
 0x278   :  { %v1243_v61 = vsub.f32 0.0, %v1231_v50  ;;  %v1228_v10 = vmul.f32 %v5054_v54, %v1198_v62  ;;  %5063 = vpow2.f32 %v1217_v29  ;;  %v4562_v41 = vpack.c.bf16 %v3444_v31, %v3443_v48  ;;  %v1467_v29 = vld [vmem:[%s7334_s11 + $0x10] sm:$0xff]  ;;  %v1719_v31 = vld [vmem:[%s7335_s12 + $0x1c0] sm:$0xff] }
 0x279   :  { %v5058_v59 = vpop.eup %5057  ;;  %v1244_v60 = vsub.f32 0.0, %v1232_v55  ;;  %v1229_v7 = vmul.f32 %v5056_v57, %v1199_v58 }
 0x27a   :  { %v5060_v63 = vpop.eup %5059  ;;  %v1249_v3 = vsel %vm1237_vm5, %v1243_v61, %v1231_v50  ;;  %v1152_v5 = vmul.f32 1.0614054, %v5058_v59  ;;  %v1234_v23 = vsub.f32 1.0, %v1228_v10  ;;  %4563 = vmatprep.subr.bf16.mxu1 %v4562_v41 }
 0x27b   :  { %v1255_v8 = vadd.f32 1.0, %v1249_v3  ;;  %v1250_v9 = vsel %vm1238_vm6, %v1244_v60, %v1232_v55  ;;  %v1149_v11 = vmul.f32 1.0614054, %v5060_v63  ;;  %v1235_v19 = vsub.f32 1.0, %v1229_v7 }
 0x27c   :  { %v1158_v17 = vadd.f32 -1.4531521, %v1152_v5  ;;  %v1256_v25 = vadd.f32 1.0, %v1250_v9  ;;  %v1246_v40 = vsub.f32 0.0, %v1234_v23 }
 0x27d   :  { %v1155_v21 = vadd.f32 -1.4531521, %v1149_v11  ;;  %v1247_v39 = vsub.f32 0.0, %v1235_v19  ;;  %v1261_v52 = vmul.f32 %v1255_v8, %v1105_v38 }
 0x27e   :  { %v1164_v12 = vmul.f32 %v5058_v59, %v1158_v17  ;;  %v1262_v32 = vmul.f32 %v1256_v25, %v1106_v35  ;;  %v1252_v36 = vsel %vm1240_vm8, %v1246_v40, %v1234_v23  ;;  %v1107_v25 = vmul.f32 0.5, %v6355_v34  ;;  %v1465_v34 = vld [vmem:[%s7334_s11] sm:$0xff]  ;;  %v3448_v40 = vld [vmem:[%s7334_s11 + $0x88] sm:$0xff] }
 0x27f   :  { %v1161_v20 = vmul.f32 %v5060_v63, %v1155_v21  ;;  %v1253_v46 = vsel %vm1241_vm7, %v1247_v39, %v1235_v19  ;;  %v1258_v54 = vadd.f32 1.0, %v1252_v36  ;;  %v3445_v21 = vld [vmem:[%s7334_s11 + $0x70] sm:$0xff]  ;;  %v1468_v39 = vld [vmem:[%s7334_s11 + $0x18] sm:$0xff] }
 0x280   :  { %v1170_v43 = vadd.f32 1.4214138, %v1164_v12  ;;  %1379 = vmatprep.mubr.f32.mxu0 %v1262_v32  ;;  %v1259_v33 = vadd.f32 1.0, %v1253_v46  ;;  %v3446_v12 = vld [vmem:[%s7334_s11 + $0x78] sm:$0xff]  ;;  %v1470_v46 = vld [vmem:[%s7334_s11 + $0x28] sm:$0xff]  ;;  %v3449_v36 = vld [vmem:[%s7334_s11 + $0x90] sm:$0xff] }
 0x281   :  { %1380 = vmatmul.mubr.f32.vlgmr.msra.gmra.mrb[14].mxu0 %v1261_v52  ;;  %v1167_v50 = vadd.f32 1.4214138, %v1161_v20  ;;  %v1264_v57 = vmul.f32 %v1258_v54, %v1108_v51  ;;  %v5062_v62 = vpop.eup %5061  ;;  %v4566_v32 = vpack.c.bf16 %v3446_v12, %v3445_v21  ;;  %v3447_v52 = vld [vmem:[%s7334_s11 + $0x80] sm:$0xff]  ;;  %v4542_v20 = vpack.c.bf16 %v1468_v39, %v1467_v29  ;;  %v1471_v51 = vld [vmem:[%s7334_s11 + $0x30] sm:$0xff] }
 0x282   :  { %v1176_v53 = vmul.f32 %v5058_v59, %v1170_v43  ;;  %v1265_v49 = vmul.f32 %v1259_v33, %v1109_v27  ;;  %v5064_v5 = vpop.eup %5063  ;;  %v4570_v27 = vpack.c.bf16 %v3448_v40, %v3447_v52  ;;  %v1469_v43 = vld [vmem:[%s7334_s11 + $0x20] sm:$0xff]  ;;  %v1725_v39 = vld [vmem:[%s7335_s12 + $0x1f0] sm:$0xff]  ;;  %v1728_v52 = vld [vmem:[%s7335_s12 + $0x208] sm:$0xff] }
 0x283   :  { %v1173_v55 = vmul.f32 %v5060_v63, %v1167_v50  ;;  %v4546_v33 = vpack.c.bf16 %v1470_v46, %v1469_v43  ;;  %v3450_v50 = vld [vmem:[%s7334_s11 + $0x98] sm:$0xff]  ;;  %v1671_v29 = vld [vmem:[%s7335_s12 + $0x40] sm:$0xff]  ;;  %v1680_v43 = vld [vmem:[%s7335_s12 + $0x88] sm:$0xff] }
 0x284   :  { %v1182_v56 = vadd.f32 -0.28449672, %v1176_v53  ;;  %1384 = vmatprep.mubr.f32.mxu0 %v1265_v49  ;;  %v1472_v53 = vld [vmem:[%s7334_s11 + $0x38] sm:$0xff]  ;;  %v4574_v54 = vpack.c.bf16 %v3450_v50, %v3449_v36  ;;  %v1731_v46 = vld [vmem:[%s7335_s12 + $0x220] sm:$0xff] }
 0x285   :  { %v1179_v37 = vadd.f32 -0.28449672, %v1173_v55  ;;  %1385 = vmatmul.mubr.f32.gmra.mrb[16].mxu0 %v1264_v57  ;;  %v4550_v49 = vpack.c.bf16 %v1472_v53, %v1471_v51  ;;  %v3451_v55 = vld [vmem:[%s7334_s11 + $0xa0] sm:$0xff]  ;;  %v1686_v53 = vld [vmem:[%s7335_s12 + $0xb8] sm:$0xff] }
 0x286   :  { %v1188_v45 = vmul.f32 %v5058_v59, %v1182_v56  ;;  %v3452_v56 = vld [vmem:[%s7334_s11 + $0xa8] sm:$0xff]  ;;  %v1473_v57 = vld [vmem:[%s7334_s11 + $0x40] sm:$0xff] }
 0x287   :  { %v1185_v61 = vmul.f32 %v5060_v63, %v1179_v37  ;;  %v1474_v37 = vld [vmem:[%s7334_s11 + $0x48] sm:$0xff]  ;;  %v1683_v51 = vld [vmem:[%s7335_s12 + $0xa0] sm:$0xff] }
 0x288   :  { %v1194_v58 = vadd.f32 0.2548296, %v1188_v45  ;;  %v4578_v45 = vpack.c.bf16 %v3452_v56, %v3451_v55  ;;  %v4720_v55 = vpack.c.bf16 %v1686_v53, %v1683_v51 }
 0x289   :  { %v1191_v1 = vadd.f32 0.2548296, %v1185_v61  ;;  %v4554_v61 = vpack.c.bf16 %v1474_v37, %v1473_v57  ;;  %v1689_v57 = vld [vmem:[%s7335_s12 + $0xd0] sm:$0xff]  ;;  %v1692_v37 = vld [vmem:[%s7335_s12 + $0xe8] sm:$0xff] }
 0x28a   :  { %v1200_v60 = vmul.f32 %v5058_v59, %v1194_v58  ;;  %v1110_v59 = vmul.f32 0.5, %v6353_v22  ;;  %v1466_v22 = vld [vmem:[%s7334_s11 + $0x8] sm:$0xff]  ;;  %v3453_v58 = vld [vmem:[%s7334_s11 + $0xb0] sm:$0xff] }
 0x28b   :  { %v1197_v3 = vmul.f32 %v5060_v63, %v1191_v1  ;;  %v4538_v23 = vpack.c.bf16 %v1466_v22, %v1465_v34  ;;  %v3454_v1 = vld [vmem:[%s7334_s11 + $0xb8] sm:$0xff] }
 0x28c   :  { %v1230_v6 = vmul.f32 %v5062_v62, %v1200_v60  ;;  %v4582_v60 = vpack.c.bf16 %v3454_v1, %v3453_v58  ;;  %v1475_v62 = vld [vmem:[%s7334_s11 + $0x50] sm:$0xff]  ;;  %v4724_v58 = vpack.c.bf16 %v1692_v37, %v1689_v57 }
 0x28d   :  { %v1227_v42 = vmul.f32 %v5064_v5, %v1197_v3  ;;  %4539 = vmatprep.subr.bf16.mxu0 %v4538_v23  ;;  %v1476_v3 = vld [vmem:[%s7334_s11 + $0x58] sm:$0xff] }
 0x28e   :  { %v1236_v7 = vsub.f32 1.0, %v1230_v6  ;;  %4541 = vmatpush3.bf16.msra.mxu0 %v4538_v23  ;;  %v4558_v5 = vpack.c.bf16 %v1476_v3, %v1475_v62  ;;  %v1713_v6 = vld [vmem:[%s7335_s12 + $0x190] sm:$0xff]  ;;  %v1698_v62 = vld [vmem:[%s7335_s12 + $0x118] sm:$0xff] }
 0x28f   :  { %v1233_v8 = vsub.f32 1.0, %v1227_v42  ;;  %4543 = vmatprep.subr.bf16.mxu0 %v4542_v20  ;;  %v1716_v42 = vld [vmem:[%s7335_s12 + $0x1a8] sm:$0xff]  ;;  %v1749_v3 = vld [vmem:[%s7335_s12 + $0x2b0] sm:$0xff] }
 0x290   :  { %v1248_v9 = vsub.f32 0.0, %v1236_v7 }
 0x291   :  { %v1245_v10 = vsub.f32 0.0, %v1233_v8 }
 0x292   :  { %v1254_v11 = vsel %vm1242_vm9, %v1248_v9, %v1236_v7  ;;  %4545 = vmatpush3.bf16.msra.mxu0 %v4542_v20  ;;  %v4706_v7 = vpack.c.bf16 %v1716_v42, %v1713_v6  ;;  %v4714_v20 = vpack.c.bf16 %v1728_v52, %v1725_v39 }
 0x293   :  { %v1260_v35 = vadd.f32 1.0, %v1254_v11  ;;  %v1251_v17 = vsel %vm1239_vm10, %v1245_v10, %v1233_v8  ;;  %4547 = vmatprep.subr.bf16.mxu0 %v4546_v33 }
 0x294   :  { %v1257_v19 = vadd.f32 1.0, %v1251_v17 }
 0x295   :  { %v1266_v38 = vmul.f32 %v1260_v35, %v1110_v59  ;;  %v1665_v59 = vld [vmem:[%s7335_s12 + $0x10] sm:$0xff] }
 0x296   :  { %v1263_v63 = vmul.f32 %v1257_v19, %v1107_v25  ;;  %4549 = vmatpush3.bf16.msra.mxu0 %v4546_v33  ;;  %v144_v25 = vld [vmem:[#allocation2 + $0x4] ss:$0 sm:$0xff]  ;;  %v1734_v33 = vld [vmem:[%s7335_s12 + $0x238] sm:$0xff] }
 0x297   :  { %4551 = vmatprep.subr.bf16.mxu0 %v4550_v49  ;;  %v4718_v50 = vpack.c.bf16 %v1734_v33, %v1731_v46  ;;  %v1812_v46 = vld [vmem:[#allocation10 + $0x28] sm:$0xff] }
 0x298   :  { %3935 = vmatprep.mubr.f32.mxu1 %v1263_v63  ;;  %v1668_v63 = vld [vmem:[%s7335_s12 + $0x28] sm:$0xff] }
 0x299   :  { %3936 = vmatmul.mubr.f32.vlgmr.msra.gmra.mrb[10].mxu1 %v1266_v38  ;;  %v4708_v21 = vpack.c.bf16 %v1668_v63, %v1665_v59  ;;  %v1808_v59 = vld [vmem:[#allocation10 + $0x8] sm:$0xff]  ;;  %v1811_v63 = vld [vmem:[#allocation10 + $0x20] sm:$0xff] }
 0x29a   :  { %4565 = vmatpush3.bf16.msra.mxu1 %v4562_v41  ;;  %4553 = vmatpush3.bf16.msra.mxu0 %v4550_v49  ;;  %v1722_v41 = vld [vmem:[%s7335_s12 + $0x1d8] sm:$0xff]  ;;  %v1740_v49 = vld [vmem:[%s7335_s12 + $0x268] sm:$0xff] }
 0x29b   :  { %4567 = vmatprep.subr.bf16.mxu1 %v4566_v32  ;;  %4555 = vmatprep.subr.bf16.mxu0 %v4554_v61  ;;  %v4710_v12 = vpack.c.bf16 %v1722_v41, %v1719_v31  ;;  %v1810_v31 = vld [vmem:[#allocation10 + $0x18] sm:$0xff] }
 0x29c   :  { %v1814_v41 = vld [vmem:[#allocation10 + $0x38] sm:$0xff] }
 0x29e   :  { %4569 = vmatpush3.bf16.msra.mxu1 %v4566_v32  ;;  %4557 = vmatpush3.bf16.msra.mxu0 %v4554_v61  ;;  %v1674_v32 = vld [vmem:[%s7335_s12 + $0x58] sm:$0xff] }
 0x29f   :  { %4571 = vmatprep.subr.bf16.mxu1 %v4570_v27  ;;  %4559 = vmatprep.subr.bf16.mxu0 %v4558_v5  ;;  %v4712_v40 = vpack.c.bf16 %v1674_v32, %v1671_v29  ;;  %v1746_v61 = vld [vmem:[%s7335_s12 + $0x298] sm:$0xff]  ;;  %v1823_v32 = vld [vmem:[#allocation10 + $0x80] sm:$0xff] }
 0x2a0   :  { %v1820_v29 = vld [vmem:[#allocation10 + $0x68] sm:$0xff] }
 0x2a1   :  { %v4594_v52 = vpack.c.bf16 %v1823_v32, %v1820_v29  ;;  %v1666_v29 = vld [vmem:[%s7335_s12 + $0x18] sm:$0xff] }
 0x2a2   :  { %4573 = vmatpush3.bf16.msra.mxu1 %v4570_v27  ;;  %4561 = vmatpush3.bf16.msra.mxu0 %v4558_v5  ;;  %v1677_v27 = vld [vmem:[%s7335_s12 + $0x70] sm:$0xff]  ;;  %v1752_v5 = vld [vmem:[%s7335_s12 + $0x2c8] sm:$0xff]  ;;  %v1670_v32 = vld [vmem:[%s7335_s12 + $0x38] sm:$0xff] }
 0x2a3   :  { %4575 = vmatprep.subr.bf16.mxu1 %v4574_v54  ;;  %v4716_v36 = vpack.c.bf16 %v1680_v43, %v1677_v27  ;;  %v4730_v42 = vpack.c.bf16 %v1752_v5, %v1749_v3  ;;  %v1809_v43 = vld [vmem:[#allocation10 + $0x10] sm:$0xff] }
 0x2a4   :  { %v4598_v33 = vpack.c.bf16 %v1812_v46, %v1809_v43  ;;  %v1676_v43 = vld [vmem:[%s7335_s12 + $0x68] sm:$0xff]  ;;  %v1679_v46 = vld [vmem:[%s7335_s12 + $0x80] sm:$0xff] }
 0x2a6   :  { %4577 = vmatpush3.bf16.msra.mxu1 %v4574_v54  ;;  %v1737_v54 = vld [vmem:[%s7335_s12 + $0x250] sm:$0xff] }
 0x2a7   :  { %4579 = vmatprep.subr.bf16.mxu1 %v4578_v45  ;;  %v4722_v56 = vpack.c.bf16 %v1740_v49, %v1737_v54 }
 0x2aa   :  { %4581 = vmatpush3.bf16.msra.mxu1 %v4578_v45  ;;  %v1743_v45 = vld [vmem:[%s7335_s12 + $0x280] sm:$0xff] }
 0x2ab   :  { %4583 = vmatprep.subr.bf16.mxu1 %v4582_v60  ;;  %v4726_v1 = vpack.c.bf16 %v1746_v61, %v1743_v45  ;;  %v145_v61 = vld [vmem:[#allocation2 + $0x5] ss:$0 sm:$0xff] }
 0x2ae   :  { %4585 = vmatpush3.bf16.msra.mxu1 %v4582_v60  ;;  %v1695_v60 = vld [vmem:[%s7335_s12 + $0x100] sm:$0xff] }
 0x2af   :  { %4707 = vmatprep.subr.bf16.mxu1 %v4706_v7  ;;  %v4728_v6 = vpack.c.bf16 %v1698_v62, %v1695_v60  ;;  %v1701_v7 = vld [vmem:[%s7335_s12 + $0x130] sm:$0xff] }
 0x354   :  { %v3567_v8 = vpop.f32.mrb[14].mxu0 }
 0x355   :  { %v3568_v9 = vpop.f32.mrb[15].mxu0 }
 0x356   :  { %v3569_v10 = vadd.f32 %v3568_v9, %v3567_v8  ;;  %v1704_v8 = vld [vmem:[%s7335_s12 + $0x148] sm:$0xff]  ;;  %v1755_v9 = vld [vmem:[%s7335_s12 + $0x2e0] sm:$0xff] }
 0x358   :  { %v3570_v11 = vpop.f32.mrb[16].mxu0  ;;  %v1382_v48 = vadd.f32 %v3569_v10, %v144_v25  ;;  %v1758_v10 = vld [vmem:[%s7335_s12 + $0x2f8] sm:$0xff] }
 0x359   :  { %v3571_v35 = vpop.f32.mrb[17].mxu0 }
 0x35a   :  { %v3572_v17 = vadd.f32 %v3571_v35, %v3570_v11  ;;  %v4732_v11 = vpack.c.bf16 %v1704_v8, %v1701_v7  ;;  %v4734_v35 = vpack.c.bf16 %v1758_v10, %v1755_v9  ;;  %v1815_v7 = vld [vmem:[#allocation10 + $0x40] sm:$0xff]  ;;  %v1818_v8 = vld [vmem:[#allocation10 + $0x58] sm:$0xff] }
 0x35c   :  { %v1387_v19 = vadd.f32 %v3572_v17, %v144_v25  ;;  %v1707_v17 = vld [vmem:[%s7335_s12 + $0x160] sm:$0xff]  ;;  %v1710_v25 = vld [vmem:[%s7335_s12 + $0x178] sm:$0xff] }
 0x36c   :  { %v3937_v38 = vpop.f32.mrb[10].mxu1 }
 0x36d   :  { %v1462_v34 = vadd.f32 %v3937_v38, %v1387_v19  ;;  %v1456_v22 = vpop.f32.mrb[11].mxu1  ;;  %v4736_v19 = vpack.c.bf16 %v1710_v25, %v1707_v17  ;;  %v1807_v38 = vld [vmem:[#allocation10] sm:$0xff]  ;;  %v4602_v25 = vpack.c.bf16 %v1818_v8, %v1815_v7  ;;  %v1700_v7 = vld [vmem:[%s7335_s12 + $0x128] sm:$0xff]  ;;  %v1703_v8 = vld [vmem:[%s7335_s12 + $0x140] sm:$0xff] }
 0x36e   :  { %v1457_v23 = vadd.f32 %v1456_v22, %v1382_v48  ;;  %v4586_v48 = vpack.c.bf16 %v1811_v63, %v1808_v59  ;;  %v4588_v22 = vpack.c.bf16 %v1810_v31, %v1807_v38  ;;  %v1821_v59 = vld [vmem:[#allocation10 + $0x70] sm:$0xff]  ;;  %v1824_v63 = vld [vmem:[#allocation10 + $0x88] sm:$0xff] }
 0x36f   :  { %v4606_v31 = vpack.c.bf16 %v1824_v63, %v1821_v59  ;;  %v1705_v63 = vld [vmem:[%s7335_s12 + $0x150] sm:$0xff] }
 0x370   :  { %3962 = vmatprep.mubr.msk.f32.mxu0 %vm1477_vm11, %v1457_v23  ;;  %3989 = vmatprep.mubr.msk.f32.mxu1 %vm1477_vm11, %v1457_v23 }
 0x371   :  { %3963 = vmatmul.mubr.msk.f32.vlgmr.msra.gmra.mrb[18].mxu0 %vm1477_vm11, %v1462_v34  ;;  %3990 = vmatmul.mubr.msk.f32.vlgmr.msra.gmra.mrb[12].mxu1 %vm1477_vm11, %v1462_v34  ;;  %v1817_v34 = vld [vmem:[#allocation10 + $0x50] sm:$0xff] }
 0x372   :  { %4709 = vmatpush3.bf16.msra.mxu1 %v4708_v21  ;;  %2202 = vmatprep.mubr.f32.mxu1 %v5957_v4  ;;  %v4590_v23 = vpack.c.bf16 %v1817_v34, %v1814_v41  ;;  %v1813_v21 = vld [vmem:[#allocation10 + $0x30] sm:$0xff]  ;;  %v1664_v34 = vld [vmem:[%s7335_s12 + $0x8] sm:$0xff] }
 0x373   :  { %4711 = vmatprep.subr.bf16.mxu1 %v4710_v12  ;;  %1896 = vmatprep.mubr.f32.mxu0 %v5277_v0  ;;  %v1816_v12 = vld [vmem:[#allocation10 + $0x48] sm:$0xff] }
 0x374   :  { %4587 = vmatprep.subr.bf16.mxu0 %v4586_v48  ;;  %v4592_v39 = vpack.c.bf16 %v1816_v12, %v1813_v21  ;;  %v1663_v12 = vld [vmem:[%s7335_s12] sm:$0xff] }
 0x375   :  { %4589 = vmatpush1.bf16.msra.mxu0 %v4588_v22  ;;  %v1667_v22 = vld [vmem:[%s7335_s12 + $0x20] sm:$0xff] }
 0x376   :  { %4713 = vmatpush3.bf16.msra.mxu1 %v4712_v40  ;;  %4591 = vmatprep.subr.bf16.mxu0 %v4590_v23  ;;  %v1819_v40 = vld [vmem:[#allocation10 + $0x60] sm:$0xff]  ;;  %v4610_v21 = vpack.c.bf16 %v1667_v22, %v1664_v34 }
 0x377   :  { %4715 = vmatprep.subr.bf16.mxu1 %v4714_v20  ;;  %v1822_v20 = vld [vmem:[#allocation10 + $0x78] sm:$0xff] }
 0x378   :  { %v4596_v27 = vpack.c.bf16 %v1822_v20, %v1819_v40  ;;  %v1669_v20 = vld [vmem:[%s7335_s12 + $0x30] sm:$0xff] }
 0x379   :  { %4593 = vmatpush1.bf16.msra.mxu0 %v4592_v39  ;;  %v1673_v39 = vld [vmem:[%s7335_s12 + $0x50] sm:$0xff] }
 0x37a   :  { %4717 = vmatpush3.bf16.msra.mxu1 %v4716_v36  ;;  %4595 = vmatprep.subr.bf16.mxu0 %v4594_v52  ;;  %v146_v36 = vld [vmem:[#allocation2 + $0x6] ss:$0 sm:$0xff]  ;;  %v4612_v52 = vpack.c.bf16 %v1666_v29, %v1663_v12  ;;  %v4614_v40 = vpack.c.bf16 %v1673_v39, %v1670_v32  ;;  %v1714_v12 = vld [vmem:[%s7335_s12 + $0x198] sm:$0xff]  ;;  %v1721_v32 = vld [vmem:[%s7335_s12 + $0x1d0] sm:$0xff] }
 0x37b   :  { %4719 = vmatprep.subr.bf16.mxu1 %v4718_v50  ;;  %v1718_v29 = vld [vmem:[%s7335_s12 + $0x1b8] sm:$0xff] }
 0x37d   :  { %4597 = vmatpush1.bf16.msra.mxu0 %v4596_v27  ;;  %v1672_v27 = vld [vmem:[%s7335_s12 + $0x48] sm:$0xff] }
 0x37e   :  { %4721 = vmatpush3.bf16.msra.mxu1 %v4720_v55  ;;  %4599 = vmatprep.subr.bf16.mxu0 %v4598_v33 }
 0x37f   :  { %4723 = vmatprep.subr.bf16.mxu1 %v4722_v56 }
 0x382   :  { %4725 = vmatpush3.bf16.msra.mxu1 %v4724_v58 }
 0x383   :  { %4727 = vmatprep.subr.bf16.mxu1 %v4726_v1 }
 0x386   :  { %4729 = vmatpush3.bf16.msra.mxu1 %v4728_v6 }
 0x387   :  { %4731 = vmatprep.subr.bf16.mxu1 %v4730_v42 }
 0x38a   :  { %4733 = vmatpush3.bf16.msra.mxu1 %v4732_v11 }
 0x38b   :  { %4735 = vmatprep.subr.bf16.mxu1 %v4734_v35 }
 0x38e   :  { %4737 = vmatpush3.bf16.msra.mxu1 %v4736_v19 }
 0x391   :  { %2203 = vmatmul.mubr.f32.vlgmr.msra.gmra.mrb[14].mxu1 %v5955_v2 }
 0x392   :  { %2207 = vmatprep.mubr.f32.mxu1 %v5994_v24 }
 0x395   :  { %2208 = vmatmul.mubr.f32.gmra.mrb[16].mxu1 %v5986_v18 }
 0x444   :  { %v3964_v50 = vpop.f32.mrb[18].mxu0  ;;  %v3991_v51 = vpop.f32.mrb[12].mxu1 }
 0x445   :  { %v1644_v53 = vadd.f32 %v3991_v51, %v146_v36  ;;  %v1550_v54 = vpop.f32.mrb[19].mxu0  ;;  %v1638_v49 = vpop.f32.mrb[13].mxu1  ;;  %v1556_v58 = vadd.f32 %v3964_v50, %v145_v61  ;;  %v1675_v50 = vld [vmem:[%s7335_s12 + $0x60] sm:$0xff]  ;;  %v1678_v51 = vld [vmem:[%s7335_s12 + $0x78] sm:$0xff] }
 0x446   :  { %v1639_v55 = vadd.f32 %v1638_v49, %v146_v36  ;;  %v1551_v1 = vadd.f32 %v1550_v54, %v145_v61  ;;  %v4618_v36 = vpack.c.bf16 %v1679_v46, %v1676_v43  ;;  %v1685_v54 = vld [vmem:[%s7335_s12 + $0xb0] sm:$0xff]  ;;  %v1727_v43 = vld [vmem:[%s7335_s12 + $0x200] sm:$0xff] }
 0x447   :  { %v1650_v56 = vsub.f32 0.0, %v1644_v53  ;;  %v1682_v53 = vld [vmem:[%s7335_s12 + $0x98] sm:$0xff] }
 0x448   :  { %v1649_v57 = vsub.f32 0.0, %v1639_v55  ;;  %v4622_v49 = vpack.c.bf16 %v1685_v54, %v1682_v53  ;;  %v1681_v55 = vld [vmem:[%s7335_s12 + $0x90] sm:$0xff] }
 0x449   :  { %v1653_v37 = vmul.f32 1.442695, %v1650_v56  ;;  %v1684_v56 = vld [vmem:[%s7335_s12 + $0xa8] sm:$0xff]  ;;  %v1733_v53 = vld [vmem:[%s7335_s12 + $0x230] sm:$0xff] }
 0x44a   :  { %v1651_v45 = vmul.f32 1.442695, %v1649_v57  ;;  %v1688_v57 = vld [vmem:[%s7335_s12 + $0xc8] sm:$0xff] }
 0x44b   :  { %5065 = vpow2.f32 %v1653_v37  ;;  %v1691_v37 = vld [vmem:[%s7335_s12 + $0xe0] sm:$0xff] }
 0x44c   :  { %5067 = vpow2.f32 %v1651_v45  ;;  %v4624_v45 = vpack.c.bf16 %v1684_v56, %v1681_v55  ;;  %v4626_v61 = vpack.c.bf16 %v1691_v37, %v1688_v57  ;;  %v1732_v55 = vld [vmem:[%s7335_s12 + $0x228] sm:$0xff]  ;;  %v1739_v57 = vld [vmem:[%s7335_s12 + $0x260] sm:$0xff] }
 0x44d   :  { %5069 = vtanh.f32 %v1556_v58  ;;  %v1687_v58 = vld [vmem:[%s7335_s12 + $0xc0] sm:$0xff]  ;;  %v1736_v56 = vld [vmem:[%s7335_s12 + $0x248] sm:$0xff] }
 0x44e   :  { %5071 = vtanh.f32 %v1551_v1  ;;  %v1690_v1 = vld [vmem:[%s7335_s12 + $0xd8] sm:$0xff] }
 0x455   :  { %v5066_v60 = vpop.eup %5065 }
 0x456   :  { %v5068_v62 = vpop.eup %5067  ;;  %v1656_v3 = vadd.f32 1.0, %v5066_v60  ;;  %v1694_v60 = vld [vmem:[%s7335_s12 + $0xf8] sm:$0xff] }
 0x457   :  { %v1655_v5 = vadd.f32 1.0, %v5068_v62  ;;  %v5070_v6 = vpop.eup %5069  ;;  %v1697_v62 = vld [vmem:[%s7335_s12 + $0x110] sm:$0xff] }
 0x458   :  { %5073 = vrcp.f32 %v1656_v3  ;;  %v5072_v42 = vpop.eup %5071  ;;  %v4628_v3 = vpack.c.bf16 %v1690_v1, %v1687_v58  ;;  %v1738_v58 = vld [vmem:[%s7335_s12 + $0x258] sm:$0xff] }
 0x459   :  { %5075 = vrcp.f32 %v1655_v5  ;;  %v4630_v5 = vpack.c.bf16 %v1697_v62, %v1694_v60  ;;  %v1742_v1 = vld [vmem:[%s7335_s12 + $0x278] sm:$0xff]  ;;  %v1745_v60 = vld [vmem:[%s7335_s12 + $0x290] sm:$0xff] }
 0x462   :  { %v5074_v9 = vpop.eup %5073 }
 0x463   :  { %v5076_v10 = vpop.eup %5075  ;;  %v1662_v11 = vmul.f32 %v5074_v9, %v5070_v6  ;;  %v1693_v6 = vld [vmem:[%s7335_s12 + $0xf0] sm:$0xff] }
 0x464   :  { %v3659_v35 = vpop.f32.mrb[14].mxu1  ;;  %v1661_v17 = vmul.f32 %v5076_v10, %v5072_v42  ;;  %v1696_v42 = vld [vmem:[%s7335_s12 + $0x108] sm:$0xff]  ;;  %v4634_v10 = vpack.c.bf16 %v1703_v8, %v1700_v7  ;;  %v1751_v7 = vld [vmem:[%s7335_s12 + $0x2c0] sm:$0xff] }
 0x465   :  { %v3660_v19 = vpop.f32.mrb[15].mxu1  ;;  %v4632_v9 = vpack.c.bf16 %v1696_v42, %v1693_v6  ;;  %v1744_v6 = vld [vmem:[%s7335_s12 + $0x288] sm:$0xff] }
 0x466   :  { %v6555_v38 = vadd.f32 %v3660_v19, %v3659_v35  ;;  %3457 = vmatmul.mubr.msk.f32.vlgmr.msra.gmra.mrb[20].mxu0 %vm1825_vm12, %v1661_v17  ;;  %v1702_v35 = vld [vmem:[%s7335_s12 + $0x138] sm:$0xff]  ;;  %v1748_v42 = vld [vmem:[%s7335_s12 + $0x2a8] sm:$0xff] }
 0x467   :  { %4601 = vmatpush3.bf16.msra.mxu0 %v4598_v33  ;;  %1902 = vmatprep.mubr.f32.mxu0 %v5277_v0  ;;  %v4616_v33 = vpack.c.bf16 %v1672_v27, %v1669_v20  ;;  %v1720_v20 = vld [vmem:[%s7335_s12 + $0x1c8] sm:$0xff] }
 0x468   :  { %v3662_v48 = vpop.f32.mrb[16].mxu1  ;;  %4603 = vmatprep.subr.bf16.mxu0 %v4602_v25  ;;  %v1724_v27 = vld [vmem:[%s7335_s12 + $0x1e8] sm:$0xff] }
 0x469   :  { %v3663_v41 = vpop.f32.mrb[17].mxu1 }
 0x46a   :  { %v6565_v23 = vadd.f32 %v3663_v41, %v3662_v48  ;;  %3458 = vmatmul.mubr.msk.f32.gmra.mrb[22].mxu0 %vm1825_vm12, %v1662_v11  ;;  %v1708_v48 = vld [vmem:[%s7335_s12 + $0x168] sm:$0xff]  ;;  %v1715_v41 = vld [vmem:[%s7335_s12 + $0x1a0] sm:$0xff] }
 0x46b   :  { %4605 = vmatpush3.bf16.msra.mxu0 %v4602_v25  ;;  %4004 = vmatprep.mubr.msk.f32.mxu0 %vm1825_vm12, %v1661_v17  ;;  %v1706_v17 = vld [vmem:[%s7335_s12 + $0x158] sm:$0xff]  ;;  %v1709_v25 = vld [vmem:[%s7335_s12 + $0x170] sm:$0xff]  ;;  %v4640_v34 = vpack.c.bf16 %v1708_v48, %v1705_v63  ;;  %v1756_v63 = vld [vmem:[%s7335_s12 + $0x2e8] sm:$0xff] }
 0x46c   :  { %4607 = vmatprep.subr.bf16.mxu0 %v4606_v31  ;;  %v4638_v59 = vpack.c.bf16 %v1709_v25, %v1706_v17  ;;  %v1757_v17 = vld [vmem:[%s7335_s12 + $0x2f0] sm:$0xff]  ;;  %v1760_v48 = vld [vmem:[%s7335_s12 + $0x308] sm:$0xff] }
 0x46f   :  { %4609 = vmatpush3.bf16.msra.mxu0 %v4606_v31  ;;  %v1712_v31 = vld [vmem:[%s7335_s12 + $0x188] sm:$0xff] }
 0x470   :  { %4611 = vmatprep.subr.bf16.mxu0 %v4610_v21  ;;  %v4642_v22 = vpack.c.bf16 %v1715_v41, %v1712_v31  ;;  %v1711_v21 = vld [vmem:[%s7335_s12 + $0x180] sm:$0xff] }
 0x471   :  { %v4644_v39 = vpack.c.bf16 %v1714_v12, %v1711_v21  ;;  %v1763_v31 = vld [vmem:[%s7335_s12 + $0x320] sm:$0xff]  ;;  %v1762_v21 = vld [vmem:[%s7335_s12 + $0x318] sm:$0xff] }
 0x472   :  { %4005 = vmatmul.mubr.msk.f32.vlgmr.msra.gmra.mrb[24].mxu0 %vm1825_vm12, %v1662_v11  ;;  %v1699_v11 = vld [vmem:[%s7335_s12 + $0x120] sm:$0xff]  ;;  %v1766_v12 = vld [vmem:[%s7335_s12 + $0x338] sm:$0xff] }
 0x473   :  { %4613 = vmatpush1.bf16.msra.mxu0 %v4612_v52  ;;  %2048 = vmatprep.mubr.f32.mxu0 %v5957_v4  ;;  %v4620_v4 = vpack.c.bf16 %v1678_v51, %v1675_v50  ;;  %v4636_v19 = vpack.c.bf16 %v1702_v35, %v1699_v11  ;;  %v4646_v52 = vpack.c.bf16 %v1721_v32, %v1718_v29  ;;  %v1726_v50 = vld [vmem:[%s7335_s12 + $0x1f8] sm:$0xff]  ;;  %v1769_v29 = vld [vmem:[%s7335_s12 + $0x350] sm:$0xff] }
 0x474   :  { %4615 = vmatprep.subr.bf16.mxu0 %v4614_v40  ;;  %v1717_v40 = vld [vmem:[%s7335_s12 + $0x1b0] sm:$0xff]  ;;  %v1730_v51 = vld [vmem:[%s7335_s12 + $0x218] sm:$0xff] }
 0x475   :  { %v4648_v46 = vpack.c.bf16 %v1720_v20, %v1717_v40  ;;  %v1750_v11 = vld [vmem:[%s7335_s12 + $0x2b8] sm:$0xff]  ;;  %v1768_v40 = vld [vmem:[%s7335_s12 + $0x348] sm:$0xff] }
 0x476   :  { %v1754_v35 = vld [vmem:[%s7335_s12 + $0x2d8] sm:$0xff]  ;;  %v1772_v20 = vld [vmem:[%s7335_s12 + $0x368] sm:$0xff] }
 0x477   :  { %4617 = vmatpush1.bf16.msra.mxu0 %v4616_v33  ;;  %v4650_v33 = vpack.c.bf16 %v1727_v43, %v1724_v27  ;;  %v1775_v27 = vld [vmem:[%s7335_s12 + $0x380] sm:$0xff] }
 0x478   :  { %4619 = vmatprep.subr.bf16.mxu0 %v4618_v36  ;;  %v1723_v36 = vld [vmem:[%s7335_s12 + $0x1e0] sm:$0xff] }
 0x479   :  { %v4652_v54 = vpack.c.bf16 %v1726_v50, %v1723_v36  ;;  %v1774_v36 = vld [vmem:[%s7335_s12 + $0x378] sm:$0xff] }
 0x47a   :  { %v1778_v50 = vld [vmem:[%s7335_s12 + $0x398] sm:$0xff] }
 0x47b   :  { %4621 = vmatpush1.bf16.msra.mxu0 %v4620_v4  ;;  %v4654_v4 = vpack.c.bf16 %v1733_v53, %v1730_v51  ;;  %v1777_v53 = vld [vmem:[%s7335_s12 + $0x390] sm:$0xff] }
 0x47c   :  { %4623 = vmatprep.subr.bf16.mxu0 %v4622_v49  ;;  %v1729_v49 = vld [vmem:[%s7335_s12 + $0x210] sm:$0xff] }
 0x47d   :  { %v4656_v37 = vpack.c.bf16 %v1732_v55, %v1729_v49 }
 0x47f   :  { %4625 = vmatpush1.bf16.msra.mxu0 %v4624_v45  ;;  %v4658_v45 = vpack.c.bf16 %v1739_v57, %v1736_v56  ;;  %v1783_v56 = vld [vmem:[%s7335_s12 + $0x3c0] sm:$0xff]  ;;  %v1786_v57 = vld [vmem:[%s7335_s12 + $0x3d8] sm:$0xff] }
 0x480   :  { %4627 = vmatprep.subr.bf16.mxu0 %v4626_v61  ;;  %v1735_v61 = vld [vmem:[%s7335_s12 + $0x240] sm:$0xff] }
 0x481   :  { %v4660_v62 = vpack.c.bf16 %v1738_v58, %v1735_v61  ;;  %v4692_v61 = vpack.c.bf16 %v1786_v57, %v1783_v56  ;;  %v2475_v56 = vld [vmem:[%s7337_s14 + $0x18] sm:$0xff] }
 0x483   :  { %4629 = vmatpush1.bf16.msra.mxu0 %v4628_v3  ;;  %v4662_v3 = vpack.c.bf16 %v1745_v60, %v1742_v1  ;;  %v1789_v1 = vld [vmem:[%s7335_s12 + $0x3f0] sm:$0xff]  ;;  %v1792_v60 = vld [vmem:[%s7335_s12 + $0x408] sm:$0xff] }
 0x484   :  { %4631 = vmatprep.subr.bf16.mxu0 %v4630_v5  ;;  %v1741_v5 = vld [vmem:[%s7335_s12 + $0x270] sm:$0xff] }
 0x485   :  { %v4664_v8 = vpack.c.bf16 %v1744_v6, %v1741_v5  ;;  %v4696_v5 = vpack.c.bf16 %v1792_v60, %v1789_v1  ;;  %v2477_v1 = vld [vmem:[%s7337_s14 + $0x28] sm:$0xff] }
 0x487   :  { %4633 = vmatpush1.bf16.msra.mxu0 %v4632_v9  ;;  %v4666_v9 = vpack.c.bf16 %v1751_v7, %v1748_v42  ;;  %v1795_v42 = vld [vmem:[%s7335_s12 + $0x420] sm:$0xff]  ;;  %v1798_v7 = vld [vmem:[%s7335_s12 + $0x438] sm:$0xff] }
 0x488   :  { %4635 = vmatprep.subr.bf16.mxu0 %v4634_v10  ;;  %v1747_v10 = vld [vmem:[%s7335_s12 + $0x2a0] sm:$0xff] }
 0x489   :  { %v4668_v25 = vpack.c.bf16 %v1750_v11, %v1747_v10  ;;  %v4700_v10 = vpack.c.bf16 %v1798_v7, %v1795_v42  ;;  %v2479_v42 = vld [vmem:[%s7337_s14 + $0x38] sm:$0xff] }
 0x48b   :  { %4637 = vmatpush1.bf16.msra.mxu0 %v4636_v19  ;;  %v4670_v19 = vpack.c.bf16 %v1757_v17, %v1754_v35  ;;  %v1801_v35 = vld [vmem:[%s7335_s12 + $0x450] sm:$0xff]  ;;  %v1804_v17 = vld [vmem:[%s7335_s12 + $0x468] sm:$0xff] }
 0x48c   :  { %4639 = vmatprep.subr.bf16.mxu0 %v4638_v59  ;;  %v1753_v59 = vld [vmem:[%s7335_s12 + $0x2d0] sm:$0xff] }
 0x48d   :  { %v4672_v41 = vpack.c.bf16 %v1756_v63, %v1753_v59  ;;  %v4704_v59 = vpack.c.bf16 %v1804_v17, %v1801_v35  ;;  %v2481_v35 = vld [vmem:[%s7337_s14 + $0x48] sm:$0xff] }
 0x48f   :  { %4641 = vmatpush1.bf16.msra.mxu0 %v4640_v34  ;;  %v4674_v34 = vpack.c.bf16 %v1763_v31, %v1760_v48  ;;  %v1767_v48 = vld [vmem:[%s7335_s12 + $0x340] sm:$0xff]  ;;  %v1770_v31 = vld [vmem:[%s7335_s12 + $0x358] sm:$0xff] }
 0x490   :  { %4643 = vmatprep.subr.bf16.mxu0 %v4642_v22  ;;  %v1759_v22 = vld [vmem:[%s7335_s12 + $0x300] sm:$0xff] }
 0x491   :  { %v4676_v32 = vpack.c.bf16 %v1762_v21, %v1759_v22  ;;  %v1776_v22 = vld [vmem:[%s7335_s12 + $0x388] sm:$0xff] }
 0x493   :  { %4645 = vmatpush1.bf16.msra.mxu0 %v4644_v39  ;;  %v4678_v39 = vpack.c.bf16 %v1769_v29, %v1766_v12  ;;  %v1779_v12 = vld [vmem:[%s7335_s12 + $0x3a0] sm:$0xff]  ;;  %v1782_v29 = vld [vmem:[%s7335_s12 + $0x3b8] sm:$0xff] }
 0x494   :  { %4647 = vmatprep.subr.bf16.mxu0 %v4646_v52  ;;  %v1765_v52 = vld [vmem:[%s7335_s12 + $0x330] sm:$0xff] }
 0x495   :  { %v4680_v43 = vpack.c.bf16 %v1768_v40, %v1765_v52  ;;  %v1791_v40 = vld [vmem:[%s7335_s12 + $0x400] sm:$0xff] }
 0x497   :  { %4649 = vmatpush1.bf16.msra.mxu0 %v4648_v46  ;;  %v4682_v46 = vpack.c.bf16 %v1775_v27, %v1772_v20  ;;  %v1797_v27 = vld [vmem:[%s7335_s12 + $0x430] sm:$0xff] }
 0x498   :  { %4651 = vmatprep.subr.bf16.mxu0 %v4650_v33  ;;  %v1771_v33 = vld [vmem:[%s7335_s12 + $0x360] sm:$0xff] }
 0x49b   :  { %4653 = vmatpush1.bf16.msra.mxu0 %v4652_v54  ;;  %v1780_v54 = vld [vmem:[%s7335_s12 + $0x3a8] sm:$0xff] }
 0x49c   :  { %4655 = vmatprep.subr.bf16.mxu0 %v4654_v4  ;;  %v1784_v4 = vld [vmem:[%s7335_s12 + $0x3c8] sm:$0xff]  ;;  %v4688_v49 = vpack.c.bf16 %v1780_v54, %v1777_v53  ;;  %v2472_v53 = vld [vmem:[%s7337_s14] sm:$0xff] }
 0x49d   :  { %v2473_v54 = vld [vmem:[%s7337_s14 + $0x8] sm:$0xff] }
 0x49f   :  { %4657 = vmatpush1.bf16.msra.mxu0 %v4656_v37  ;;  %v1790_v37 = vld [vmem:[%s7335_s12 + $0x3f8] sm:$0xff] }
 0x4a0   :  { %4659 = vmatprep.subr.bf16.mxu0 %v4658_v45  ;;  %v1793_v45 = vld [vmem:[%s7335_s12 + $0x410] sm:$0xff] }
 0x4a1   :  { %v4694_v58 = vpack.c.bf16 %v1793_v45, %v1790_v37  ;;  %v2492_v37 = vld [vmem:[%s7337_s14 + $0xa0] sm:$0xff]  ;;  %v2493_v45 = vld [vmem:[%s7337_s14 + $0xa8] sm:$0xff] }
 0x4a3   :  { %4661 = vmatpush1.bf16.msra.mxu0 %v4660_v62  ;;  %v1796_v62 = vld [vmem:[%s7335_s12 + $0x428] sm:$0xff] }
 0x4a4   :  { %4663 = vmatprep.subr.bf16.mxu0 %v4662_v3  ;;  %v1799_v3 = vld [vmem:[%s7335_s12 + $0x440] sm:$0xff] }
 0x4a5   :  { %v4698_v6 = vpack.c.bf16 %v1799_v3, %v1796_v62  ;;  %v2494_v62 = vld [vmem:[%s7337_s14 + $0xb0] sm:$0xff]  ;;  %v2495_v3 = vld [vmem:[%s7337_s14 + $0xb8] sm:$0xff] }
 0x4a7   :  { %4665 = vmatpush1.bf16.msra.mxu0 %v4664_v8  ;;  %v1802_v8 = vld [vmem:[%s7335_s12 + $0x458] sm:$0xff] }
 0x4a8   :  { %4667 = vmatprep.subr.bf16.mxu0 %v4666_v9  ;;  %v1805_v9 = vld [vmem:[%s7335_s12 + $0x470] sm:$0xff] }
 0x4a9   :  { %v4702_v11 = vpack.c.bf16 %v1805_v9, %v1802_v8  ;;  %v2496_v8 = vld [vmem:[%s7337_s14 + $0xc0] sm:$0xff]  ;;  %v2497_v9 = vld [vmem:[%s7337_s14 + $0xc8] sm:$0xff] }
 0x4ab   :  { %4669 = vmatpush1.bf16.msra.mxu0 %v4668_v25  ;;  %v1761_v25 = vld [vmem:[%s7335_s12 + $0x310] sm:$0xff] }
 0x4ac   :  { %4671 = vmatprep.subr.bf16.mxu0 %v4670_v19  ;;  %v1764_v19 = vld [vmem:[%s7335_s12 + $0x328] sm:$0xff] }
 0x4ad   :  { %v4738_v63 = vpack.c.bf16 %v1764_v19, %v1761_v25  ;;  %v2498_v25 = vld [vmem:[%s7337_s14 + $0xd0] sm:$0xff]  ;;  %v2499_v19 = vld [vmem:[%s7337_s14 + $0xd8] sm:$0xff] }
 0x4af   :  { %4673 = vmatpush1.bf16.msra.mxu0 %v4672_v41  ;;  %v4742_v41 = vpack.c.bf16 %v1770_v31, %v1767_v48  ;;  %v2483_v48 = vld [vmem:[%s7337_s14 + $0x58] sm:$0xff] }
 0x4b0   :  { %4675 = vmatprep.subr.bf16.mxu0 %v4674_v34  ;;  %v1773_v34 = vld [vmem:[%s7335_s12 + $0x370] sm:$0xff] }
 0x4b1   :  { %v4746_v21 = vpack.c.bf16 %v1776_v22, %v1773_v34  ;;  %v2501_v34 = vld [vmem:[%s7337_s14 + $0xe8] sm:$0xff] }
 0x4b2   :  { %2049 = vmatmul.mubr.f32.vlgmr.msra.gmra.mrb[20].mxu0 %v5955_v2  ;;  %v1781_v2 = vld [vmem:[%s7335_s12 + $0x3b0] sm:$0xff] }
 0x4b3   :  { %2054 = vmatprep.mubr.f32.mxu0 %v5994_v24  ;;  %4677 = vmatpush1.bf16.msra.mxu0 %v4676_v32  ;;  %v4684_v24 = vpack.c.bf16 %v1774_v36, %v1771_v33  ;;  %v4686_v51 = vpack.c.bf16 %v1781_v2, %v1778_v50  ;;  %v4750_v32 = vpack.c.bf16 %v1782_v29, %v1779_v12  ;;  %v1803_v33 = vld [vmem:[%s7335_s12 + $0x460] sm:$0xff]  ;;  %v1806_v36 = vld [vmem:[%s7335_s12 + $0x478] sm:$0xff]  ;;  %v2485_v12 = vld [vmem:[%s7337_s14 + $0x68] sm:$0xff] }
 0x4b4   :  { %4679 = vmatprep.subr.bf16.mxu0 %v4678_v39  ;;  %v1788_v39 = vld [vmem:[%s7335_s12 + $0x3e8] sm:$0xff]  ;;  %v4766_v50 = vpack.c.bf16 %v1806_v36, %v1803_v33  ;;  %v2488_v2 = vld [vmem:[%s7337_s14 + $0x80] sm:$0xff] }
 0x4b6   :  { %2055 = vmatmul.mubr.f32.gmra.mrb[22].mxu0 %v5986_v18  ;;  %v1787_v18 = vld [vmem:[%s7335_s12 + $0x3e0] sm:$0xff] }
 0x4b7   :  { %4681 = vmatpush1.bf16.msra.mxu0 %v4680_v43  ;;  %2125 = vmatprep.mubr.f32.mxu0 %v5277_v0  ;;  %v4690_v55 = vpack.c.bf16 %v1787_v18, %v1784_v4  ;;  %v1800_v43 = vld [vmem:[%s7335_s12 + $0x448] sm:$0xff]  ;;  %v4772_v4 = vpack.c.bf16 %v2473_v54, %v2472_v53  ;;  %v2491_v18 = vld [vmem:[%s7337_s14 + $0x98] sm:$0xff] }
 0x4b8   :  { %4683 = vmatprep.subr.bf16.mxu0 %v4682_v46  ;;  %v4762_v46 = vpack.c.bf16 %v1800_v43, %v1797_v27  ;;  %v2505_v27 = vld [vmem:[%s7337_s14 + $0x108] sm:$0xff] }
 0x4bb   :  { %4685 = vmatpush1.bf16.msra.mxu0 %v4684_v24  ;;  %v2489_v24 = vld [vmem:[%s7337_s14 + $0x88] sm:$0xff] }
 0x4bc   :  { %4687 = vmatprep.subr.bf16.mxu0 %v4686_v51  ;;  %v4770_v51 = vpack.c.bf16 %v2489_v24, %v2488_v2 }
 0x4be   :  { %4771 = vmatprep.subr.bf16.mxu1 %v4770_v51 }
 0x4bf   :  { %4689 = vmatpush1.bf16.msra.mxu0 %v4688_v49  ;;  %4773 = vmatpush3.bf16.msra.mxu1 %v4772_v4 }
 0x4c0   :  { %4691 = vmatprep.subr.bf16.mxu0 %v4690_v55  ;;  %v2474_v55 = vld [vmem:[%s7337_s14 + $0x10] sm:$0xff] }
 0x4c1   :  { %v4776_v57 = vpack.c.bf16 %v2475_v56, %v2474_v55 }
 0x4c3   :  { %4693 = vmatpush1.bf16.msra.mxu0 %v4692_v61  ;;  %v4778_v61 = vpack.c.bf16 %v2493_v45, %v2492_v37 }
 0x4c4   :  { %4695 = vmatprep.subr.bf16.mxu0 %v4694_v58  ;;  %v2476_v58 = vld [vmem:[%s7337_s14 + $0x20] sm:$0xff] }
 0x4c5   :  { %v4780_v60 = vpack.c.bf16 %v2477_v1, %v2476_v58 }
 0x4c7   :  { %4697 = vmatpush1.bf16.msra.mxu0 %v4696_v5  ;;  %v4782_v5 = vpack.c.bf16 %v2495_v3, %v2494_v62 }
 0x4c8   :  { %4699 = vmatprep.subr.bf16.mxu0 %v4698_v6  ;;  %v2478_v6 = vld [vmem:[%s7337_s14 + $0x30] sm:$0xff] }
 0x4c9   :  { %v4784_v7 = vpack.c.bf16 %v2479_v42, %v2478_v6 }
 0x4cb   :  { %4701 = vmatpush1.bf16.msra.mxu0 %v4700_v10  ;;  %v4786_v10 = vpack.c.bf16 %v2497_v9, %v2496_v8 }
 0x4cc   :  { %4703 = vmatprep.subr.bf16.mxu0 %v4702_v11  ;;  %v2480_v11 = vld [vmem:[%s7337_s14 + $0x40] sm:$0xff] }
 0x4cd   :  { %v4788_v17 = vpack.c.bf16 %v2481_v35, %v2480_v11 }
 0x4cf   :  { %4705 = vmatpush1.bf16.msra.mxu0 %v4704_v59  ;;  %v4790_v59 = vpack.c.bf16 %v2499_v19, %v2498_v25 }
 0x4d0   :  { %4739 = vmatprep.subr.bf16.mxu0 %v4738_v63 }
 0x4d2   :  { %2126 = vmatmul.mubr.f32.vlgmr.msra.gmra.mrb[20].mxu0 %v6137_v44 }
 0x4d3   :  { %4741 = vmatpush3.bf16.msra.mxu0 %v4738_v63  ;;  %2131 = vmatprep.mubr.f32.mxu0 %v5277_v0  ;;  %v1785_v0 = vld [vmem:[%s7335_s12 + $0x3d0] sm:$0xff] }
 0x4d4   :  { %4743 = vmatprep.subr.bf16.mxu0 %v4742_v41  ;;  %v4754_v52 = vpack.c.bf16 %v1788_v39, %v1785_v0  ;;  %v2482_v63 = vld [vmem:[%s7337_s14 + $0x50] sm:$0xff]  ;;  %v2503_v0 = vld [vmem:[%s7337_s14 + $0xf8] sm:$0xff] }
 0x4d5   :  { %v4792_v31 = vpack.c.bf16 %v2483_v48, %v2482_v63 }
 0x4d6   :  { %2132 = vmatmul.mubr.f32.gmra.mrb[22].mxu0 %v6148_v47 }
 0x4d7   :  { %4745 = vmatpush3.bf16.msra.mxu0 %v4742_v41  ;;  %4039 = vmatprep.mubr.f32.mxu0 %v6137_v44  ;;  %v1794_v44 = vld [vmem:[%s7335_s12 + $0x418] sm:$0xff]  ;;  %v2500_v41 = vld [vmem:[%s7337_s14 + $0xe0] sm:$0xff] }
 0x4d8   :  { %4747 = vmatprep.subr.bf16.mxu0 %v4746_v21  ;;  %v4758_v20 = vpack.c.bf16 %v1794_v44, %v1791_v40  ;;  %v4794_v22 = vpack.c.bf16 %v2501_v34, %v2500_v41  ;;  %v2487_v40 = vld [vmem:[%s7337_s14 + $0x78] sm:$0xff] }
 0x4db   :  { %4749 = vmatpush3.bf16.msra.mxu0 %v4746_v21  ;;  %v2484_v21 = vld [vmem:[%s7337_s14 + $0x60] sm:$0xff] }
 0x4dc   :  { %4751 = vmatprep.subr.bf16.mxu0 %v4750_v32  ;;  %v4796_v29 = vpack.c.bf16 %v2485_v12, %v2484_v21 }
 0x4df   :  { %4753 = vmatpush3.bf16.msra.mxu0 %v4750_v32  ;;  %v2502_v32 = vld [vmem:[%s7337_s14 + $0xf0] sm:$0xff] }
 0x4e0   :  { %4755 = vmatprep.subr.bf16.mxu0 %v4754_v52  ;;  %v4798_v39 = vpack.c.bf16 %v2503_v0, %v2502_v32 }
 0x4e3   :  { %4757 = vmatpush3.bf16.msra.mxu0 %v4754_v52  ;;  %v2486_v52 = vld [vmem:[%s7337_s14 + $0x70] sm:$0xff] }
 0x4e4   :  { %4759 = vmatprep.subr.bf16.mxu0 %v4758_v20  ;;  %v4800_v44 = vpack.c.bf16 %v2487_v40, %v2486_v52 }
 0x4e7   :  { %4761 = vmatpush3.bf16.msra.mxu0 %v4758_v20  ;;  %v2504_v20 = vld [vmem:[%s7337_s14 + $0x100] sm:$0xff] }
 0x4e8   :  { %4763 = vmatprep.subr.bf16.mxu0 %v4762_v46  ;;  %v7012_v43 = vpack.c.bf16 %v2505_v27, %v2504_v20 }
 0x4eb   :  { %4765 = vmatpush3.bf16.msra.mxu0 %v4762_v46  ;;  %v7015_v46 = vld [vmem:[#allocation2 + $0x7] ss:$8 sm:$0x7] }
 0x4ec   :  { %4767 = vmatprep.subr.bf16.mxu0 %v4766_v50  ;;  %v2292_v33 = vrot.slane %v7015_v46, %v5897_v30  ;;  %v2296_v36 = vrot.slane %v7015_v46, %v5894_v28 }
 0x4ef   :  { %4769 = vmatpush3.bf16.msra.mxu0 %v4766_v50 }
 0x4f2   :  { %4040 = vmatmul.mubr.f32.vlgmr.msra.gmra.mrb[24].mxu0 %v6148_v47  ;;  %v2490_v47 = vld [vmem:[%s7337_s14 + $0x90] sm:$0xff] }
 0x4f3   :  { %v4774_v49 = vpack.c.bf16 %v2491_v18, %v2490_v47 }
 0x4f5   :  { %4775 = vmatprep.subr.bf16.mxu1 %v4774_v49 }
 0x4f6   :  { %4777 = vmatpush3.bf16.msra.mxu1 %v4776_v57 }
 0x4f7   :  { %4779 = vmatprep.subr.bf16.mxu1 %v4778_v61 }
 0x4fa   :  { %4781 = vmatpush3.bf16.msra.mxu1 %v4780_v60 }
 0x4fb   :  { %4783 = vmatprep.subr.bf16.mxu1 %v4782_v5 }
 0x4fe   :  { %4785 = vmatpush3.bf16.msra.mxu1 %v4784_v7 }
 0x4ff   :  { %4787 = vmatprep.subr.bf16.mxu1 %v4786_v10 }
 0x502   :  { %4789 = vmatpush3.bf16.msra.mxu1 %v4788_v17 }
 0x503   :  { %4791 = vmatprep.subr.bf16.mxu1 %v4790_v59 }
 0x506   :  { %4793 = vmatpush3.bf16.msra.mxu1 %v4792_v31 }
 0x507   :  { %4795 = vmatprep.subr.bf16.mxu1 %v4794_v22 }
 0x50a   :  { %4797 = vmatpush3.bf16.msra.mxu1 %v4796_v29 }
 0x50b   :  { %4799 = vmatprep.subr.bf16.mxu1 %v4798_v39 }
 0x50e   :  { %4801 = vmatpush3.bf16.msra.mxu1 %v4800_v44 }
 0x50f   :  { %4803 = vmatprep.subr.bf16.mxu1 %v7012_v43 }
 0x5a5   :  { %v2127_v50 = vpop.f32.mrb[20].mxu0 }
 0x5a6   :  { %v7021_v2 = vadd.f32 %v2292_v33, %v2127_v50  ;;  %v2129_v24 = vpop.f32.mrb[21].mxu0 }
 0x5a7   :  { %v7023_v51 = vadd.f32 %v2296_v36, %v2129_v24  ;;  %v2300_v24 = vrot.slane %v7015_v46, %v6112_v26 }
 0x5a8   :  { %v7026_v53 = vmul.f32 0.70710677, %v7021_v2 }
 0x5a9   :  { %v7029_v54 = vmul.f32 0.70710677, %v7023_v51  ;;  %v2133_v4 = vpop.f32.mrb[22].mxu0 }
 0x5aa   :  { %v2322_v47 = vand.u32 2147483647, %v7026_v53  ;;  %v7032_v18 = vadd.f32 %v2292_v33, %v2133_v4  ;;  %v2135_v49 = vpop.f32.mrb[23].mxu0  ;;  %vm2442_vm13 = vcmp.lt.f32.partialorder %v7026_v53, 0.0  ;;  %v2311_v53 = vmul.f32 0.5, %v7023_v51 }
 0x5ab   :  { %v2323_v55 = vand.u32 2147483647, %v7029_v54  ;;  %v7035_v56 = vadd.f32 %v2296_v36, %v2135_v49  ;;  %vm2443_vm14 = vcmp.lt.f32.partialorder %v7029_v54, 0.0 }
 0x5ac   :  { %v2328_v57 = vmul.f32 0.3275911, %v2322_v47  ;;  %v7038_v37 = vmul.f32 0.70710677, %v7032_v18  ;;  %v2406_v7 = vsub.f32 0.0, %v2322_v47 }
 0x5ad   :  { %v2329_v45 = vmul.f32 0.3275911, %v2323_v55  ;;  %v7041_v61 = vmul.f32 0.70710677, %v7035_v56  ;;  %v2407_v8 = vsub.f32 0.0, %v2323_v55  ;;  %v2314_v51 = vmul.f32 0.5, %v7035_v56 }
 0x5ae   :  { %v2334_v58 = vadd.f32 1.0, %v2328_v57  ;;  %v2325_v1 = vand.u32 2147483647, %v7038_v37  ;;  %v2412_v10 = vmul.f32 %v2406_v7, %v2322_v47  ;;  %vm2445_vm15 = vcmp.lt.f32.partialorder %v7038_v37, 0.0  ;;  %v2509_v37 = vld [vmem:[%s7337_s14 + $0x128] sm:$0xff] }
 0x5af   :  { %v2335_v60 = vadd.f32 1.0, %v2329_v45  ;;  %v2326_v62 = vand.u32 2147483647, %v7041_v61  ;;  %v2413_v17 = vmul.f32 %v2407_v8, %v2323_v55  ;;  %vm2446_vm0 = vcmp.lt.f32.partialorder %v7041_v61, 0.0 }
 0x5b0   :  { %5077 = vrcp.f32 %v2334_v58  ;;  %v2331_v3 = vmul.f32 0.3275911, %v2325_v1  ;;  %v2409_v25 = vsub.f32 0.0, %v2325_v1  ;;  %v2418_v31 = vmul.f32 1.442695, %v2412_v10 }
 0x5b1   :  { %5079 = vrcp.f32 %v2335_v60  ;;  %v2332_v5 = vmul.f32 0.3275911, %v2326_v62  ;;  %v2410_v19 = vsub.f32 0.0, %v2326_v62  ;;  %v2420_v21 = vmul.f32 1.442695, %v2413_v17 }
 0x5b2   :  { %v2337_v6 = vadd.f32 1.0, %v2331_v3  ;;  %v2415_v12 = vmul.f32 %v2409_v25, %v2325_v1  ;;  %v2313_v61 = vmul.f32 0.5, %v7032_v18  ;;  %v2511_v18 = vld [vmem:[%s7337_s14 + $0x138] sm:$0xff] }
 0x5b3   :  { %v2338_v42 = vadd.f32 1.0, %v2332_v5  ;;  %v2416_v32 = vmul.f32 %v2410_v19, %v2326_v62 }
 0x5b4   :  { %5081 = vrcp.f32 %v2337_v6  ;;  %v2424_v33 = vmul.f32 1.442695, %v2415_v12 }
 0x5b5   :  { %5083 = vrcp.f32 %v2338_v42  ;;  %v2426_v50 = vmul.f32 1.442695, %v2416_v32 }
 0x5b6   :  { %5085 = vpow2.f32 %v2418_v31 }
 0x5b7   :  { %5087 = vpow2.f32 %v2420_v21 }
 0x5b8   :  { %5089 = vpow2.f32 %v2424_v33 }
 0x5b9   :  { %5091 = vpow2.f32 %v2426_v50 }
 0x5ba   :  { %v5078_v9 = vpop.eup %5077 }
 0x5bb   :  { %v5080_v11 = vpop.eup %5079  ;;  %v2352_v35 = vmul.f32 1.0614054, %v5078_v9 }
 0x5bc   :  { %v2353_v59 = vmul.f32 1.0614054, %v5080_v11 }
 0x5bd   :  { %v2358_v63 = vadd.f32 -1.4531521, %v2352_v35 }
 0x5be   :  { %v7045_v48 = vpop.eup %5081  ;;  %v2359_v41 = vadd.f32 -1.4531521, %v2353_v59 }
 0x5bf   :  { %v7047_v34 = vpop.eup %5083  ;;  %v2364_v22 = vmul.f32 %v5078_v9, %v2358_v63  ;;  %v2355_v29 = vmul.f32 1.0614054, %v7045_v48 }
 0x5c0   :  { %v2365_v0 = vmul.f32 %v5080_v11, %v2359_v41  ;;  %v2356_v39 = vmul.f32 1.0614054, %v7047_v34  ;;  %v5086_v25 = vpop.eup %5085 }
 0x5c1   :  { %v2370_v52 = vadd.f32 1.4214138, %v2364_v22  ;;  %v2361_v40 = vadd.f32 -1.4531521, %v2355_v29  ;;  %v5088_v31 = vpop.eup %5087 }
 0x5c2   :  { %v2371_v44 = vadd.f32 1.4214138, %v2365_v0  ;;  %v2362_v20 = vadd.f32 -1.4531521, %v2356_v39 }
 0x5c3   :  { %v2376_v27 = vmul.f32 %v5078_v9, %v2370_v52  ;;  %v2367_v36 = vmul.f32 %v7045_v48, %v2361_v40 }
 0x5c4   :  { %v2377_v4 = vmul.f32 %v5080_v11, %v2371_v44  ;;  %v2368_v47 = vmul.f32 %v7047_v34, %v2362_v20  ;;  %v5090_v20 = vpop.eup %5089 }
 0x5c5   :  { %v2382_v49 = vadd.f32 -0.28449672, %v2376_v27  ;;  %v4041_v55 = vpop.f32.mrb[24].mxu0  ;;  %v2373_v57 = vadd.f32 1.4214138, %v2367_v36  ;;  %v5092_v36 = vpop.eup %5091 }
 0x5c6   :  { %v5010_v45 = vadd.f32 %v4041_v55, %v6565_v23  ;;  %v2279_v58 = vpop.f32.mrb[25].mxu0  ;;  %v2383_v1 = vadd.f32 -0.28449672, %v2377_v4  ;;  %v2374_v60 = vadd.f32 1.4214138, %v2368_v47 }
 0x5c7   :  { %v2388_v62 = vmul.f32 %v5078_v9, %v2382_v49  ;;  %v5011_v3 = vadd.f32 %v6555_v38, %v2279_v58  ;;  %v2379_v5 = vmul.f32 %v7045_v48, %v2373_v57 }
 0x5c8   :  { %v7058_v6 = vadd.f32 %v5010_v45, %v2300_v24  ;;  %v2389_v26 = vmul.f32 %v5080_v11, %v2383_v1  ;;  %v2380_v46 = vmul.f32 %v7047_v34, %v2374_v60  ;;  %v2310_v1 = vmul.f32 0.5, %v7021_v2  ;;  %v2508_v2 = vld [vmem:[%s7337_s14 + $0x120] sm:$0xff] }
 0x5c9   :  { %v2394_v42 = vadd.f32 0.2548296, %v2388_v62  ;;  %v7061_v7 = vadd.f32 %v5011_v3, %v2300_v24  ;;  %v2385_v8 = vadd.f32 -0.28449672, %v2379_v5 }
 0x5ca   :  { %v7064_v23 = vmul.f32 0.70710677, %v7058_v6  ;;  %v2395_v10 = vadd.f32 0.2548296, %v2389_v26  ;;  %v2386_v38 = vadd.f32 -0.28449672, %v2380_v46 }
 0x5cb   :  { %v2400_v35 = vmul.f32 %v5078_v9, %v2394_v42  ;;  %v7067_v17 = vmul.f32 0.70710677, %v7061_v7  ;;  %v2391_v63 = vmul.f32 %v7045_v48, %v2385_v8 }
 0x5cc   :  { %v2327_v19 = vand.u32 2147483647, %v7064_v23  ;;  %v2401_v59 = vmul.f32 %v5080_v11, %v2395_v10  ;;  %v2392_v21 = vmul.f32 %v7047_v34, %v2386_v38  ;;  %vm2447_vm1 = vcmp.lt.f32.partialorder %v7064_v23, 0.0 }
 0x5cd   :  { %v2430_v41 = vmul.f32 %v5086_v25, %v2400_v35  ;;  %v2324_v22 = vand.u32 2147483647, %v7067_v17  ;;  %v2397_v32 = vadd.f32 0.2548296, %v2391_v63  ;;  %vm2444_vm2 = vcmp.lt.f32.partialorder %v7067_v17, 0.0  ;;  %v434_v17 = vld [vmem:[%s7330_s7 + $0x90] sm:$0xff] }
 0x5ce   :  { %v2333_v12 = vmul.f32 0.3275911, %v2327_v19  ;;  %v2431_v29 = vmul.f32 %v5088_v31, %v2401_v59  ;;  %v2398_v39 = vadd.f32 0.2548296, %v2392_v21  ;;  %v2411_v26 = vsub.f32 0.0, %v2327_v19 }
 0x5cf   :  { %v2436_v9 = vsub.f32 1.0, %v2430_v41  ;;  %v2330_v0 = vmul.f32 0.3275911, %v2324_v22  ;;  %v2403_v44 = vmul.f32 %v7045_v48, %v2397_v32  ;;  %v2506_v48 = vld [vmem:[%s7337_s14 + $0x110] sm:$0xff]  ;;  %v2408_v42 = vsub.f32 0.0, %v2324_v22 }
 0x5d0   :  { %v2339_v52 = vadd.f32 1.0, %v2333_v12  ;;  %v2437_v40 = vsub.f32 1.0, %v2431_v29  ;;  %v2404_v33 = vmul.f32 %v7047_v34, %v2398_v39  ;;  %v2507_v34 = vld [vmem:[%s7337_s14 + $0x118] sm:$0xff]  ;;  %v2417_v25 = vmul.f32 %v2411_v26, %v2327_v19  ;;  %v2510_v12 = vld [vmem:[%s7337_s14 + $0x130] sm:$0xff]  ;;  %v2512_v39 = vld [vmem:[%s7337_s14 + $0x140] sm:$0xff] }
 0x5d1   :  { %v2448_v11 = vsub.f32 0.0, %v2436_v9  ;;  %v2336_v27 = vadd.f32 1.0, %v2330_v0  ;;  %v2433_v24 = vmul.f32 %v5090_v20, %v2403_v44  ;;  %v4806_v3 = vpack.c.bf16 %v2507_v34, %v2506_v48  ;;  %v7126_v26 = vld [vmem:[#allocation2 + $0x2] ss:$8 sm:$0x3] }
 0x5d2   :  { %5093 = vrcp.f32 %v2339_v52  ;;  %v2449_v50 = vsub.f32 0.0, %v2437_v40  ;;  %v2434_v47 = vmul.f32 %v5092_v36, %v2404_v33  ;;  %v2414_v31 = vmul.f32 %v2408_v42, %v2324_v22  ;;  %v2513_v52 = vld [vmem:[%s7337_s14 + $0x148] sm:$0xff]  ;;  %v2514_v33 = vld [vmem:[%s7337_s14 + $0x150] sm:$0xff]  ;;  %v2515_v36 = vld [vmem:[%s7337_s14 + $0x158] sm:$0xff] }
 0x5d3   :  { %v2454_v4 = vsel %vm2442_vm13, %v2448_v11, %v2436_v9  ;;  %5095 = vrcp.f32 %v2336_v27  ;;  %v2439_v57 = vsub.f32 1.0, %v2433_v24  ;;  %v4810_v21 = vpack.c.bf16 %v2509_v37, %v2508_v2 }
 0x5d4   :  { %v2460_v49 = vadd.f32 1.0, %v2454_v4  ;;  %v2455_v55 = vsel %vm2443_vm14, %v2449_v50, %v2437_v40  ;;  %v2440_v58 = vsub.f32 1.0, %v2434_v47  ;;  %v2428_v19 = vmul.f32 1.442695, %v2417_v25 }
 0x5d5   :  { %v2461_v45 = vadd.f32 1.0, %v2455_v55  ;;  %v2451_v54 = vsub.f32 0.0, %v2439_v57  ;;  %v2422_v0 = vmul.f32 1.442695, %v2414_v31  ;;  %v4814_v22 = vpack.c.bf16 %v2511_v18, %v2510_v12  ;;  %v2516_v55 = vld [vmem:[%s7337_s14 + $0x160] sm:$0xff]  ;;  %v409_v12 = vld [vmem:[#allocation7 + $0x8] sm:$0xff] }
 0x5d6   :  { %v2452_v62 = vsub.f32 0.0, %v2440_v58  ;;  %v2466_v5 = vmul.f32 %v2460_v49, %v2310_v1  ;;  %5097 = vpow2.f32 %v2428_v19  ;;  %v4818_v27 = vpack.c.bf16 %v2513_v52, %v2512_v39  ;;  %v420_v52 = vld [vmem:[%s7330_s7 + $0x20] sm:$0xff] }
 0x5d7   :  { %v2467_v60 = vmul.f32 %v2461_v45, %v2311_v53  ;;  %v2457_v46 = vsel %vm2445_vm15, %v2451_v54, %v2439_v57  ;;  %5099 = vpow2.f32 %v2422_v0  ;;  %v4822_v49 = vpack.c.bf16 %v2515_v36, %v2514_v33  ;;  %v2517_v57 = vld [vmem:[%s7337_s14 + $0x168] sm:$0xff]  ;;  %v2518_v54 = vld [vmem:[%s7337_s14 + $0x170] sm:$0xff]  ;;  %v423_v36 = vld [vmem:[%s7330_s7 + $0x38] sm:$0xff] }
 0x5d8   :  { %v2458_v8 = vsel %vm2446_vm0, %v2452_v62, %v2440_v58  ;;  %v2463_v10 = vadd.f32 1.0, %v2457_v46  ;;  %v4826_v58 = vpack.c.bf16 %v2517_v57, %v2516_v55  ;;  %v7136_v2 = vrot.slane %v7126_v26, %v5894_v28  ;;  %v417_v28 = vld [vmem:[%s7330_s7 + $0x8] sm:$0xff]  ;;  %v422_v33 = vld [vmem:[%s7330_s7 + $0x30] sm:$0xff] }
 0x5d9   :  { %2584 = vmatprep.mubr.f32.mxu1 %v2467_v60  ;;  %v2464_v35 = vadd.f32 1.0, %v2458_v8  ;;  %v2519_v60 = vld [vmem:[%s7337_s14 + $0x178] sm:$0xff]  ;;  %v2312_v31 = vmul.f32 0.5, %v7061_v7  ;;  %v2315_v18 = vmul.f32 0.5, %v7058_v6  ;;  %v418_v7 = vld [vmem:[%s7330_s7 + $0x10] sm:$0xff]  ;;  %v436_v6 = vld [vmem:[%s7330_s7 + $0xa0] sm:$0xff] }
 0x5da   :  { %2585 = vmatmul.mubr.f32.vlgmr.msra.gmra.mrb[18].mxu1 %v2466_v5  ;;  %v2469_v41 = vmul.f32 %v2463_v10, %v2313_v61  ;;  %v4830_v8 = vpack.c.bf16 %v2519_v60, %v2518_v54  ;;  %v400_v23 = vadd.f32 %v6318_v14, %v7136_v2  ;;  %v437_v0 = vld [vmem:[%s7330_s7 + $0xa8] sm:$0xff]  ;;  %v442_v57 = vld [vmem:[%s7330_s7 + $0xd0] sm:$0xff] }
 0x5db   :  { %4805 = vmatpush3.bf16.msra.mxu1 %v7012_v43  ;;  %v2470_v59 = vmul.f32 %v2464_v35, %v2314_v51  ;;  %v432_v51 = vld [vmem:[%s7330_s7 + $0x80] sm:$0xff]  ;;  %v433_v35 = vld [vmem:[%s7330_s7 + $0x88] sm:$0xff]  ;;  %v4842_v39 = vpack.c.bf16 %v437_v0, %v436_v6 }
 0x5dc   :  { %v5094_v38 = vpop.eup %5093  ;;  %4807 = vmatprep.subr.bf16.mxu1 %v4806_v3  ;;  %v4834_v25 = vpack.c.bf16 %v433_v35, %v432_v51  ;;  %v425_v55 = vld [vmem:[%s7330_s7 + $0x48] sm:$0xff]  ;;  %v430_v35 = vld [vmem:[%s7330_s7 + $0x70] sm:$0xff]  ;;  %v2846_v6 = vld [vmem:[#allocation11 + $0x60] sm:$0xff] }
 0x5dd   :  { %v5096_v63 = vpop.eup %5095  ;;  %v2357_v56 = vmul.f32 1.0614054, %v5094_v38  ;;  %2589 = vmatprep.mubr.f32.mxu1 %v2470_v59  ;;  %v445_v54 = vld [vmem:[%s7330_s7 + $0xe8] sm:$0xff] }
 0x5de   :  { %v2354_v29 = vmul.f32 1.0614054, %v5096_v63  ;;  %2590 = vmatmul.mubr.f32.gmra.mrb[20].mxu1 %v2469_v41 }
 0x5df   :  { %v2363_v43 = vadd.f32 -1.4531521, %v2357_v56  ;;  %4809 = vmatpush3.bf16.msra.mxu1 %v4806_v3  ;;  %v416_v56 = vld [vmem:[%s7330_s7] sm:$0xff] }
 0x5e0   :  { %v2360_v32 = vadd.f32 -1.4531521, %v2354_v29  ;;  %4811 = vmatprep.subr.bf16.mxu1 %v4810_v21  ;;  %v5098_v1 = vpop.eup %5097 }
 0x5e1   :  { %v2369_v9 = vmul.f32 %v5094_v38, %v2363_v43  ;;  %v5100_v3 = vpop.eup %5099  ;;  %v4836_v43 = vpack.c.bf16 %v417_v28, %v416_v56  ;;  %v410_v56 = vld [vmem:[#allocation7 + $0x10] sm:$0xff] }
 0x5e2   :  { %v2366_v40 = vmul.f32 %v5096_v63, %v2360_v32  ;;  %v419_v32 = vld [vmem:[%s7330_s7 + $0x18] sm:$0xff] }
 0x5e3   :  { %v2375_v44 = vadd.f32 1.4214138, %v2369_v9  ;;  %4813 = vmatpush3.bf16.msra.mxu1 %v4810_v21  ;;  %v435_v21 = vld [vmem:[%s7330_s7 + $0x98] sm:$0xff]  ;;  %v413_v9 = vmul.f32 %v409_v12, %v400_v23 }
 0x5e4   :  { %v2372_v20 = vadd.f32 1.4214138, %v2366_v40  ;;  %4815 = vmatprep.subr.bf16.mxu1 %v4814_v22  ;;  %v4838_v14 = vpack.c.bf16 %v435_v21, %v434_v17  ;;  %v421_v40 = vld [vmem:[%s7330_s7 + $0x28] sm:$0xff]  ;;  %v2751_v17 = vld [vmem:[#allocation11 + $0x10] sm:$0xff]  ;;  %v2752_v21 = vld [vmem:[#allocation11 + $0x18] sm:$0xff] }
 0x5e5   :  { %v2381_v11 = vmul.f32 %v5094_v38, %v2375_v44  ;;  %v438_v44 = vld [vmem:[%s7330_s7 + $0xb0] sm:$0xff]  ;;  %v4870_v12 = vpack.c.bf16 %v2752_v21, %v2751_v17 }
 0x5e6   :  { %v2378_v50 = vmul.f32 %v5096_v63, %v2372_v20  ;;  %v439_v20 = vld [vmem:[%s7330_s7 + $0xb8] sm:$0xff] }
 0x5e7   :  { %v2387_v24 = vadd.f32 -0.28449672, %v2381_v11  ;;  %4817 = vmatpush3.bf16.msra.mxu1 %v4814_v22  ;;  %v4840_v22 = vpack.c.bf16 %v419_v32, %v418_v7  ;;  %v4844_v11 = vpack.c.bf16 %v421_v40, %v420_v52  ;;  %v2844_v32 = vld [vmem:[#allocation11 + $0x50] sm:$0xff]  ;;  %v2849_v40 = vld [vmem:[#allocation11 + $0x78] sm:$0xff] }
 0x5e8   :  { %v2384_v4 = vadd.f32 -0.28449672, %v2378_v50  ;;  %4819 = vmatprep.subr.bf16.mxu1 %v4818_v27  ;;  %v440_v50 = vld [vmem:[%s7330_s7 + $0xc0] sm:$0xff]  ;;  %v2848_v52 = vld [vmem:[#allocation11 + $0x70] sm:$0xff] }
 0x5e9   :  { %v2393_v47 = vmul.f32 %v5094_v38, %v2387_v24  ;;  %v441_v24 = vld [vmem:[%s7330_s7 + $0xc8] sm:$0xff] }
 0x5ea   :  { %v2390_v48 = vmul.f32 %v5096_v63, %v2384_v4  ;;  %v4848_v4 = vpack.c.bf16 %v423_v36, %v422_v33 }
 0x5eb   :  { %v2399_v34 = vadd.f32 0.2548296, %v2393_v47  ;;  %4821 = vmatpush3.bf16.msra.mxu1 %v4818_v27  ;;  %v4846_v27 = vpack.c.bf16 %v439_v20, %v438_v44  ;;  %v4850_v47 = vpack.c.bf16 %v441_v24, %v440_v50  ;;  %v4894_v44 = vpack.c.bf16 %v2849_v40, %v2848_v52  ;;  %v2850_v20 = vld [vmem:[#allocation11 + $0x80] sm:$0xff] }
 0x5ec   :  { %v2396_v53 = vadd.f32 0.2548296, %v2390_v48  ;;  %4823 = vmatprep.subr.bf16.mxu1 %v4822_v49  ;;  %v443_v48 = vld [vmem:[%s7330_s7 + $0xd8] sm:$0xff]  ;;  %v3040_v40 = vld [vmem:[#allocation11 + $0x120] sm:$0xff] }
 0x5ed   :  { %v2405_v45 = vmul.f32 %v5094_v38, %v2399_v34 }
 0x5ee   :  { %v2402_v62 = vmul.f32 %v5096_v63, %v2396_v53  ;;  %v4854_v53 = vpack.c.bf16 %v443_v48, %v442_v57 }
 0x5ef   :  { %v2435_v5 = vmul.f32 %v5098_v1, %v2405_v45  ;;  %4825 = vmatpush3.bf16.msra.mxu1 %v4822_v49  ;;  %v424_v49 = vld [vmem:[%s7330_s7 + $0x40] sm:$0xff]  ;;  %v426_v45 = vld [vmem:[%s7330_s7 + $0x50] sm:$0xff] }
 0x5f0   :  { %v2432_v46 = vmul.f32 %v5100_v3, %v2402_v62  ;;  %4827 = vmatprep.subr.bf16.mxu1 %v4826_v58  ;;  %v4852_v34 = vpack.c.bf16 %v425_v55, %v424_v49  ;;  %v444_v1 = vld [vmem:[%s7330_s7 + $0xe0] sm:$0xff]  ;;  %v149_v49 = vld [vmem:[#allocation2 + $0x18] ss:$0 sm:$0xff] }
 0x5f1   :  { %v2441_v42 = vsub.f32 1.0, %v2435_v5  ;;  %v4858_v62 = vpack.c.bf16 %v445_v54, %v444_v1  ;;  %v428_v3 = vld [vmem:[%s7330_s7 + $0x60] sm:$0xff]  ;;  %v429_v5 = vld [vmem:[%s7330_s7 + $0x68] sm:$0xff] }
 0x5f2   :  { %v2438_v10 = vsub.f32 1.0, %v2432_v46  ;;  %v446_v46 = vld [vmem:[%s7330_s7 + $0xf0] sm:$0xff] }
 0x5f3   :  { %v2453_v37 = vsub.f32 0.0, %v2441_v42  ;;  %4829 = vmatpush3.bf16.msra.mxu1 %v4826_v58  ;;  %v427_v58 = vld [vmem:[%s7330_s7 + $0x58] sm:$0xff] }
 0x5f4   :  { %v2450_v61 = vsub.f32 0.0, %v2438_v10  ;;  %4831 = vmatprep.subr.bf16.mxu1 %v4830_v8  ;;  %v4856_v60 = vpack.c.bf16 %v427_v58, %v426_v45 }
 0x5f5   :  { %v2459_v38 = vsel %vm2447_vm1, %v2453_v37, %v2441_v42  ;;  %v447_v42 = vld [vmem:[%s7330_s7 + $0xf8] sm:$0xff] }
 0x5f6   :  { %v2465_v59 = vadd.f32 1.0, %v2459_v38  ;;  %v2456_v63 = vsel %vm2444_vm2, %v2450_v61, %v2438_v10  ;;  %v324_v10 = vrot.slane %v7126_v26, %v5897_v30  ;;  %v4862_v51 = vpack.c.bf16 %v447_v42, %v446_v46  ;;  %v431_v37 = vld [vmem:[%s7330_s7 + $0x78] sm:$0xff] }
 0x5f7   :  { %v2462_v41 = vadd.f32 1.0, %v2456_v63  ;;  %4833 = vmatpush3.bf16.msra.mxu1 %v4830_v8  ;;  %v4860_v8 = vpack.c.bf16 %v429_v5, %v428_v3  ;;  %v4864_v61 = vpack.c.bf16 %v431_v37, %v430_v35  ;;  %v411_v30 = vld [vmem:[#allocation7 + $0x18] sm:$0xff]  ;;  %v2852_v35 = vld [vmem:[#allocation11 + $0x90] sm:$0xff] }
 0x5f8   :  { %4835 = vmatprep.subr.bf16.mxu1 %v4834_v25  ;;  %v2471_v19 = vmul.f32 %v2465_v59, %v2315_v18  ;;  %v398_v38 = vadd.f32 %v6316_v13, %v324_v10  ;;  %v408_v25 = vld [vmem:[#allocation7] sm:$0xff]  ;;  %v406_v59 = vadd.f32 %v6322_v16, %v7136_v2  ;;  %v404_v63 = vadd.f32 %v6320_v15, %v324_v10  ;;  %v2754_v2 = vld [vmem:[#allocation11 + $0x28] sm:$0xff]  ;;  %v2755_v15 = vld [vmem:[#allocation11 + $0x30] sm:$0xff] }
 0x5f9   :  { %v2468_v29 = vmul.f32 %v2462_v41, %v2312_v31  ;;  %v2749_v31 = vld [vmem:[#allocation11] sm:$0xff]  ;;  %v2750_v41 = vld [vmem:[#allocation11 + $0x8] sm:$0xff]  ;;  %v2853_v37 = vld [vmem:[#allocation11 + $0x98] sm:$0xff] }
 0x5fa   :  { %v412_v26 = vmul.f32 %v408_v25, %v398_v38  ;;  %v415_v28 = vmul.f32 %v411_v30, %v406_v59  ;;  %v414_v23 = vmul.f32 %v410_v56, %v404_v63  ;;  %v4866_v13 = vpack.c.bf16 %v2750_v41, %v2749_v31  ;;  %v2753_v16 = vld [vmem:[#allocation11 + $0x20] sm:$0xff]  ;;  %v2941_v25 = vld [vmem:[#allocation11 + $0xa8] sm:$0xff]  ;;  %v2942_v59 = vld [vmem:[#allocation11 + $0xb0] sm:$0xff] }
 0x5fb   :  { %4074 = vmatprep.mubr.f32.mxu1 %v2468_v29  ;;  %v4874_v18 = vpack.c.bf16 %v2754_v2, %v2753_v16  ;;  %v2756_v29 = vld [vmem:[#allocation11 + $0x38] sm:$0xff]  ;;  %v2940_v38 = vld [vmem:[#allocation11 + $0xa0] sm:$0xff]  ;;  %v2946_v31 = vld [vmem:[#allocation11 + $0xd0] sm:$0xff] }
 0x5fc   :  { %4075 = vmatmul.mubr.f32.vlgmr.msra.gmra.mrb[22].mxu1 %v2471_v19  ;;  %v2757_v19 = vld [vmem:[#allocation11 + $0x40] sm:$0xff]  ;;  %v4906_v30 = vpack.c.bf16 %v2941_v25, %v2940_v38  ;;  %v2947_v41 = vld [vmem:[#allocation11 + $0xd8] sm:$0xff]  ;;  %v3139_v38 = vld [vmem:[#allocation11 + $0x188] sm:$0xff] }
 0x5fd   :  { %4837 = vmatpush3.bf16.msra.mxu1 %v4836_v43  ;;  %2734 = vmatprep.mubr.f32.mxu1 %v413_v9  ;;  %v4878_v43 = vpack.c.bf16 %v2756_v29, %v2755_v15  ;;  %v2845_v9 = vld [vmem:[#allocation11 + $0x58] sm:$0xff]  ;;  %v2944_v56 = vld [vmem:[#allocation11 + $0xc0] sm:$0xff]  ;;  %v4918_v17 = vpack.c.bf16 %v2947_v41, %v2946_v31 }
 0x5fe   :  { %4839 = vmatprep.subr.bf16.mxu1 %v4838_v14  ;;  %v2758_v14 = vld [vmem:[#allocation11 + $0x48] sm:$0xff]  ;;  %v4886_v0 = vpack.c.bf16 %v2845_v9, %v2844_v32  ;;  %v2948_v29 = vld [vmem:[#allocation11 + $0xe0] sm:$0xff]  ;;  %v3229_v31 = vld [vmem:[#allocation11 + $0x1b8] sm:$0xff] }
 0x5ff   :  { %v4882_v7 = vpack.c.bf16 %v2758_v14, %v2757_v19  ;;  %v3034_v14 = vld [vmem:[#allocation11 + $0xf0] sm:$0xff]  ;;  %v3036_v32 = vld [vmem:[#allocation11 + $0x100] sm:$0xff] }
 0x600   :  { %4887 = vmatprep.subr.bf16.mxu0 %v4886_v0 }
 0x601   :  { %4841 = vmatpush3.bf16.msra.mxu1 %v4840_v22  ;;  %v2847_v22 = vld [vmem:[#allocation11 + $0x68] sm:$0xff]  ;;  %4889 = vmatpush3.bf16.msra.mxu0 %v4886_v0 }
 0x602   :  { %4843 = vmatprep.subr.bf16.mxu1 %v4842_v39  ;;  %v4890_v39 = vpack.c.bf16 %v2847_v22, %v2846_v6  ;;  %v3037_v6 = vld [vmem:[#allocation11 + $0x108] sm:$0xff]  ;;  %v3038_v22 = vld [vmem:[#allocation11 + $0x110] sm:$0xff] }
 0x603   :  { %v4930_v0 = vpack.c.bf16 %v3037_v6, %v3036_v32  ;;  %v3319_v32 = vld [vmem:[%s7339_s16] sm:$0xff]  ;;  %v3321_v6 = vld [vmem:[%s7339_s16 + $0x10] sm:$0xff] }
 0x604   :  { %4891 = vmatprep.subr.bf16.mxu0 %v4890_v39 }
 0x605   :  { %4845 = vmatpush3.bf16.msra.mxu1 %v4844_v11  ;;  %v2851_v11 = vld [vmem:[#allocation11 + $0x88] sm:$0xff]  ;;  %4893 = vmatpush3.bf16.msra.mxu0 %v4890_v39  ;;  %v3039_v39 = vld [vmem:[#allocation11 + $0x118] sm:$0xff] }
 0x606   :  { %4847 = vmatprep.subr.bf16.mxu1 %v4846_v27  ;;  %4895 = vmatprep.subr.bf16.mxu0 %v4894_v44  ;;  %v4898_v27 = vpack.c.bf16 %v2851_v11, %v2850_v20  ;;  %v4934_v52 = vpack.c.bf16 %v3039_v39, %v3038_v22  ;;  %v3322_v22 = vld [vmem:[%s7339_s16 + $0x18] sm:$0xff] }
 0x607   :  { %v4990_v39 = vpack.c.bf16 %v3322_v22, %v3321_v6 }
 0x609   :  { %4849 = vmatpush3.bf16.msra.mxu1 %v4848_v4  ;;  %4897 = vmatpush3.bf16.msra.mxu0 %v4894_v44  ;;  %v3041_v44 = vld [vmem:[#allocation11 + $0x128] sm:$0xff] }
 0x60a   :  { %4851 = vmatprep.subr.bf16.mxu1 %v4850_v47  ;;  %4899 = vmatprep.subr.bf16.mxu0 %v4898_v27  ;;  %v4938_v20 = vpack.c.bf16 %v3041_v44, %v3040_v40  ;;  %v3324_v40 = vld [vmem:[%s7339_s16 + $0x28] sm:$0xff] }
 0x60d   :  { %4853 = vmatpush3.bf16.msra.mxu1 %v4852_v34  ;;  %4901 = vmatpush3.bf16.msra.mxu0 %v4898_v27  ;;  %v151_v27 = vld [vmem:[#allocation2 + $0x1a] ss:$0 sm:$0xff] }
 0x60e   :  { %4855 = vmatprep.subr.bf16.mxu1 %v4854_v53 }
 0x611   :  { %4857 = vmatpush3.bf16.msra.mxu1 %v4856_v60  ;;  %v2745_v60 = vld [vmem:[%s7325_s2] sm:$0xff] }
 0x612   :  { %4859 = vmatprep.subr.bf16.mxu1 %v4858_v62 }
 0x615   :  { %4861 = vmatpush3.bf16.msra.mxu1 %v4860_v8  ;;  %v2746_v8 = vld [vmem:[%s7325_s2 + $0x8] sm:$0xff] }
 0x616   :  { %4863 = vmatprep.subr.bf16.mxu1 %v4862_v51 }
 0x619   :  { %4865 = vmatpush3.bf16.msra.mxu1 %v4864_v61  ;;  %v4902_v61 = vpack.c.bf16 %v2853_v37, %v2852_v35 }
 0x61a   :  { %4867 = vmatprep.subr.bf16.mxu1 %v4866_v13 }
 0x61b   :  { %4903 = vmatprep.subr.bf16.mxu0 %v4902_v61 }
 0x61c   :  { %2735 = vmatmul.mubr.f32.vlgmr.msra.gmra.mrb[24].mxu1 %v412_v26  ;;  %4905 = vmatpush3.bf16.msra.mxu0 %v4902_v61  ;;  %v2943_v26 = vld [vmem:[#allocation11 + $0xb8] sm:$0xff]  ;;  %v3138_v61 = vld [vmem:[#allocation11 + $0x180] sm:$0xff] }
 0x61d   :  { %2739 = vmatprep.mubr.f32.mxu1 %v415_v28  ;;  %4869 = vmatpush3.bf16.msra.mxu1 %v4866_v13  ;;  %v4910_v63 = vpack.c.bf16 %v2943_v26, %v2942_v59  ;;  %v2945_v28 = vld [vmem:[#allocation11 + $0xc8] sm:$0xff]  ;;  %v150_v13 = vld [vmem:[#allocation2 + $0x19] ss:$0 sm:$0xff]  ;;  %v4962_v25 = vpack.c.bf16 %v3139_v38, %v3138_v61  ;;  %v3224_v59 = vld [vmem:[#allocation11 + $0x190] sm:$0xff] }
 0x61e   :  { %4871 = vmatprep.subr.bf16.mxu1 %v4870_v12  ;;  %v3226_v26 = vld [vmem:[#allocation11 + $0x1a0] sm:$0xff] }
 0x620   :  { %2740 = vmatmul.mubr.f32.gmra.mrb[26].mxu1 %v414_v23  ;;  %v4914_v23 = vpack.c.bf16 %v2945_v28, %v2944_v56  ;;  %v3227_v56 = vld [vmem:[#allocation11 + $0x1a8] sm:$0xff] }
 0x621   :  { %4873 = vmatpush3.bf16.msra.mxu1 %v4870_v12  ;;  %v4970_v28 = vpack.c.bf16 %v3227_v56, %v3226_v26 }
 0x622   :  { %4875 = vmatprep.subr.bf16.mxu1 %v4874_v18 }
 0x625   :  { %4877 = vmatpush3.bf16.msra.mxu1 %v4874_v18 }
 0x626   :  { %4879 = vmatprep.subr.bf16.mxu1 %v4878_v43 }
 0x629   :  { %4881 = vmatpush3.bf16.msra.mxu1 %v4878_v43  ;;  %v2949_v43 = vld [vmem:[#allocation11 + $0xe8] sm:$0xff] }
 0x62a   :  { %4883 = vmatprep.subr.bf16.mxu1 %v4882_v7  ;;  %v4922_v19 = vpack.c.bf16 %v2949_v43, %v2948_v29 }
 0x62d   :  { %4885 = vmatpush3.bf16.msra.mxu1 %v4882_v7  ;;  %v3035_v7 = vld [vmem:[#allocation11 + $0xf8] sm:$0xff] }
 0x62e   :  { %4907 = vmatprep.subr.bf16.mxu1 %v4906_v30  ;;  %v4926_v9 = vpack.c.bf16 %v3035_v7, %v3034_v14  ;;  %v3233_v14 = vld [vmem:[#allocation11 + $0x1d8] sm:$0xff] }
 0x630   :  { %4927 = vmatprep.subr.bf16.mxu0 %v4926_v9 }
 0x6ad   :  { %v3715_v33 = vpop.f32.mrb[18].mxu1 }
 0x6ae   :  { %v3716_v36 = vpop.f32.mrb[19].mxu1 }
 0x6af   :  { %v3717_v50 = vadd.f32 %v3716_v36, %v3715_v33 }
 0x6b1   :  { %v3718_v24 = vpop.f32.mrb[20].mxu1  ;;  %v2587_v48 = vadd.f32 %v3717_v50, %v149_v49 }
 0x6b2   :  { %v3719_v4 = vpop.f32.mrb[21].mxu1 }
 0x6b3   :  { %v3720_v47 = vadd.f32 %v3719_v4, %v3718_v24 }
 0x6b5   :  { %v2592_v55 = vadd.f32 %v3720_v47, %v149_v49  ;;  %v3042_v47 = vld [vmem:[#allocation11 + $0x130] sm:$0xff]  ;;  %v3043_v49 = vld [vmem:[#allocation11 + $0x138] sm:$0xff] }
 0x6cf   :  { %v4076_v57 = vpop.f32.mrb[22].mxu1 }
 0x6d0   :  { %v2667_v34 = vadd.f32 %v4076_v57, %v2592_v55  ;;  %v2661_v53 = vpop.f32.mrb[23].mxu1  ;;  %v4942_v55 = vpack.c.bf16 %v3043_v49, %v3042_v47  ;;  %v3130_v57 = vld [vmem:[#allocation11 + $0x140] sm:$0xff] }
 0x6d1   :  { %v2662_v45 = vadd.f32 %v2661_v53, %v2587_v48  ;;  %v3131_v48 = vld [vmem:[#allocation11 + $0x148] sm:$0xff] }
 0x6d2   :  { %v4946_v53 = vpack.c.bf16 %v3131_v48, %v3130_v57  ;;  %v3328_v57 = vld [vmem:[%s7339_s16 + $0x48] sm:$0xff] }
 0x6ef   :  { %v3771_v58 = vpop.f32.mrb[24].mxu1 }
 0x6f0   :  { %v3772_v1 = vpop.f32.mrb[25].mxu1 }
 0x6f1   :  { %v3773_v54 = vadd.f32 %v3772_v1, %v3771_v58  ;;  %v3134_v1 = vld [vmem:[#allocation11 + $0x160] sm:$0xff] }
 0x6f3   :  { %v2737_v62 = vadd.f32 %v3773_v54, %v2662_v45  ;;  %v3774_v3 = vpop.f32.mrb[26].mxu1  ;;  %v3133_v45 = vld [vmem:[#allocation11 + $0x158] sm:$0xff]  ;;  %v3135_v54 = vld [vmem:[#allocation11 + $0x168] sm:$0xff] }
 0x6f4   :  { %v3775_v5 = vpop.f32.mrb[27].mxu1 }
 0x6f5   :  { %v7243_v46 = vadd.f32 %v2745_v60, %v2737_v62  ;;  %v3776_v42 = vadd.f32 %v3775_v5, %v3774_v3  ;;  %v4954_v60 = vpack.c.bf16 %v3135_v54, %v3134_v1  ;;  %v3136_v62 = vld [vmem:[#allocation11 + $0x170] sm:$0xff]  ;;  %v3137_v3 = vld [vmem:[#allocation11 + $0x178] sm:$0xff] }
 0x6f6   :  { %v4958_v5 = vpack.c.bf16 %v3137_v3, %v3136_v62  ;;  %v156_v62 = vld [vmem:[#allocation2 + $0x1f] ss:$0 sm:$0xff] }
 0x6f7   :  { %v2742_v10 = vadd.f32 %v3776_v42, %v2667_v34  ;;  %4097 = vmatprep.mubr.msk.f32.mxu1 %vm2759_vm3, %v7243_v46  ;;  %v3132_v34 = vld [vmem:[#allocation11 + $0x150] sm:$0xff] }
 0x6f8   :  { %v4950_v58 = vpack.c.bf16 %v3133_v45, %v3132_v34 }
 0x6f9   :  { %v7250_v51 = vadd.f32 %v2746_v8, %v2742_v10 }
 0x6fb   :  { %4098 = vmatmul.mubr.msk.f32.vlgmr.msra.gmra.mrb[28].mxu1 %vm2759_vm3, %v7250_v51 }
 0x6fc   :  { %4909 = vmatpush3.bf16.msra.mxu1 %v4906_v30  ;;  %v3225_v30 = vld [vmem:[#allocation11 + $0x198] sm:$0xff] }
 0x6fd   :  { %4911 = vmatprep.subr.bf16.mxu1 %v4910_v63 }
 0x700   :  { %4913 = vmatpush3.bf16.msra.mxu1 %v4910_v63  ;;  %v4966_v63 = vpack.c.bf16 %v3225_v30, %v3224_v59 }
 0x701   :  { %4915 = vmatprep.subr.bf16.mxu1 %v4914_v23 }
 0x704   :  { %4917 = vmatpush3.bf16.msra.mxu1 %v4914_v23  ;;  %v3228_v23 = vld [vmem:[#allocation11 + $0x1b0] sm:$0xff] }
 0x705   :  { %4919 = vmatprep.subr.bf16.mxu1 %v4918_v17  ;;  %v4974_v41 = vpack.c.bf16 %v3229_v31, %v3228_v23 }
 0x708   :  { %4921 = vmatpush3.bf16.msra.mxu1 %v4918_v17  ;;  %v3230_v17 = vld [vmem:[#allocation11 + $0x1c0] sm:$0xff] }
 0x709   :  { %4923 = vmatprep.subr.bf16.mxu1 %v4922_v19 }
 0x70c   :  { %4925 = vmatpush3.bf16.msra.mxu1 %v4922_v19  ;;  %v3232_v19 = vld [vmem:[#allocation11 + $0x1d0] sm:$0xff] }
 0x70d   :  { %4947 = vmatprep.subr.bf16.mxu1 %v4946_v53  ;;  %v4982_v7 = vpack.c.bf16 %v3233_v14, %v3232_v19 }
 0x7ce   :  { %v4099_v21 = vpop.f32.mrb[28].mxu1 }
 0x7cf   :  { %v2838_v12 = vadd.f32 %v4099_v21, %v150_v13  ;;  %v2832_v16 = vpop.f32.mrb[29].mxu1 }
 0x7d0   :  { %v2833_v2 = vadd.f32 %v2832_v16, %v150_v13  ;;  %v3231_v13 = vld [vmem:[#allocation11 + $0x1c8] sm:$0xff]  ;;  %v153_v16 = vld [vmem:[#allocation2 + $0x1c] ss:$0 sm:$0xff] }
 0x7d1   :  { %v2842_v15 = vmax.f32 %v2838_v12, 0.0  ;;  %v4978_v21 = vpack.c.bf16 %v3231_v13, %v3230_v17 }
 0x7d2   :  { %v2841_v18 = vmax.f32 %v2833_v2, 0.0 }
 0x7d4   :  { %4120 = vmatprep.mubr.msk.f32.mxu0 %vm2759_vm3, %v2841_v18 }
 0x7d5   :  { %4121 = vmatmul.mubr.msk.f32.vlgmr.msra.gmra.mrb[26].mxu0 %vm2759_vm3, %v2842_v15 }
 0x7d6   :  { %4929 = vmatpush3.bf16.msra.mxu0 %v4926_v9  ;;  %v3320_v9 = vld [vmem:[%s7339_s16 + $0x8] sm:$0xff] }
 0x7d7   :  { %4931 = vmatprep.subr.bf16.mxu0 %v4930_v0 }
 0x7da   :  { %4933 = vmatpush3.bf16.msra.mxu0 %v4930_v0  ;;  %v4986_v0 = vpack.c.bf16 %v3320_v9, %v3319_v32 }
 0x7db   :  { %4935 = vmatprep.subr.bf16.mxu0 %v4934_v52 }
 0x7de   :  { %4937 = vmatpush3.bf16.msra.mxu0 %v4934_v52  ;;  %v3323_v52 = vld [vmem:[%s7339_s16 + $0x20] sm:$0xff] }
 0x7df   :  { %4939 = vmatprep.subr.bf16.mxu0 %v4938_v20  ;;  %v4994_v44 = vpack.c.bf16 %v3324_v40, %v3323_v52 }
 0x7e2   :  { %4941 = vmatpush3.bf16.msra.mxu0 %v4938_v20  ;;  %v3325_v20 = vld [vmem:[%s7339_s16 + $0x30] sm:$0xff] }
 0x7e3   :  { %4943 = vmatprep.subr.bf16.mxu0 %v4942_v55 }
 0x7e6   :  { %4945 = vmatpush3.bf16.msra.mxu0 %v4942_v55  ;;  %v3327_v55 = vld [vmem:[%s7339_s16 + $0x40] sm:$0xff] }
 0x7e7   :  { %4967 = vmatprep.subr.bf16.mxu0 %v4966_v63  ;;  %v5002_v48 = vpack.c.bf16 %v3328_v57, %v3327_v55 }
 0x8a8   :  { %v4122_v11 = vpop.f32.mrb[26].mxu0 }
 0x8a9   :  { %v2936_v33 = vadd.f32 %v4122_v11, %v7250_v51  ;;  %v2926_v36 = vpop.f32.mrb[27].mxu0  ;;  %v3326_v11 = vld [vmem:[%s7339_s16 + $0x38] sm:$0xff]  ;;  %s5233_s16 = scalar_lea.vmem %s3418_s30, 256 }
 0x8aa   :  { %v2935_v50 = vadd.f32 %v2926_v36, %v7243_v46  ;;  %v152_v46 = vld [vmem:[#allocation2 + $0x1b] ss:$0 sm:$0xff]  ;;  %p5234_p6 = scmp.ne.s32.totalorder %s3418_s30, %s5233_s16  ;;  %p5239_p8 = scmp.lt.s32.totalorder %s5233_s16, %s5233_s16 }
 0x8ab   :  { %v7260_v4 = vadd.f32 %v2936_v33, %v151_v27  ;;  %v154_v33 = vld [vmem:[#allocation2 + $0x1d] ss:$0 sm:$0xff] }
 0x8ac   :  { %v7258_v24 = vadd.f32 %v2935_v50, %v151_v27  ;;  %v4998_v27 = vpack.c.bf16 %v3326_v11, %v3325_v20  ;;  %p5240_p9 = por %p5239_p8, %p5238_p7 }
 0x8ae   :  { %4143 = vmatprep.mubr.msk.f32.mxu1 %vm2759_vm3, %v7258_v24  ;;  %p5241_p10 = pnand %p5240_p9, %p5234_p6 }
 0x8af   :  { %4144 = vmatmul.mubr.msk.f32.vlgmr.msra.gmra.mrb[30].mxu1 %vm2759_vm3, %v7260_v4 }
 0x8b0   :  { %4949 = vmatpush3.bf16.msra.mxu1 %v4946_v53  ;;  %v155_v53 = vld [vmem:[#allocation2 + $0x1e] ss:$0 sm:$0xff] }
 0x8b1   :  { %4951 = vmatprep.subr.bf16.mxu1 %v4950_v58 }
 0x8b4   :  { %4953 = vmatpush3.bf16.msra.mxu1 %v4950_v58 }
 0x8b5   :  { %4955 = vmatprep.subr.bf16.mxu1 %v4954_v60 }
 0x8b8   :  { %4957 = vmatpush3.bf16.msra.mxu1 %v4954_v60 }
 0x8b9   :  { %4959 = vmatprep.subr.bf16.mxu1 %v4958_v5 }
 0x8bc   :  { %4961 = vmatpush3.bf16.msra.mxu1 %v4958_v5 }
 0x8bd   :  { %4963 = vmatprep.subr.bf16.mxu1 %v4962_v25 }
 0x8c0   :  { %4965 = vmatpush3.bf16.msra.mxu1 %v4962_v25 }
 0x8c1   :  { %4987 = vmatprep.subr.bf16.mxu1 %v4986_v0 }
 0x982   :  { %v4145_v42 = vpop.f32.mrb[30].mxu1 }
 0x983   :  { %v3028_v8 = vadd.f32 %v4145_v42, %v152_v46  ;;  %v3022_v10 = vpop.f32.mrb[31].mxu1 }
 0x984   :  { %v3023_v51 = vadd.f32 %v3022_v10, %v152_v46 }
 0x985   :  { %v3032_v37 = vmax.f32 %v3028_v8, 0.0 }
 0x986   :  { %v3031_v35 = vmax.f32 %v3023_v51, 0.0 }
 0x988   :  { %4166 = vmatprep.mubr.msk.f32.mxu0 %vm2759_vm3, %v3031_v35 }
 0x989   :  { %4167 = vmatmul.mubr.msk.f32.vlgmr.msra.gmra.mrb[28].mxu0 %vm2759_vm3, %v3032_v37 }
 0x98a   :  { %4969 = vmatpush3.bf16.msra.mxu0 %v4966_v63 }
 0x98b   :  { %4971 = vmatprep.subr.bf16.mxu0 %v4970_v28 }
 0x98e   :  { %4973 = vmatpush3.bf16.msra.mxu0 %v4970_v28 }
 0x98f   :  { %4975 = vmatprep.subr.bf16.mxu0 %v4974_v41 }
 0x992   :  { %4977 = vmatpush3.bf16.msra.mxu0 %v4974_v41 }
 0x993   :  { %4979 = vmatprep.subr.bf16.mxu0 %v4978_v21 }
 0x996   :  { %4981 = vmatpush3.bf16.msra.mxu0 %v4978_v21 }
 0x997   :  { %4983 = vmatprep.subr.bf16.mxu0 %v4982_v7 }
 0x99a   :  { %4985 = vmatpush3.bf16.msra.mxu0 %v4982_v7 }
 0xa5c   :  { %v4168_v12 = vpop.f32.mrb[28].mxu0 }
 0xa5d   :  { %v3126_v2 = vadd.f32 %v4168_v12, %v7260_v4  ;;  %v3116_v18 = vpop.f32.mrb[29].mxu0 }
 0xa5e   :  { %v3125_v15 = vadd.f32 %v3116_v18, %v7258_v24 }
 0xa5f   :  { %v3128_v43 = vadd.f32 %v3126_v2, %v153_v16 }
 0xa60   :  { %v3127_v29 = vadd.f32 %v3125_v15, %v153_v16 }
 0xa62   :  { %4189 = vmatprep.mubr.msk.f32.mxu1 %vm2759_vm3, %v3127_v29 }
 0xa63   :  { %4190 = vmatmul.mubr.msk.f32.vlgmr.msra.gmra.mrb[32].mxu1 %vm2759_vm3, %v3128_v43 }
 0xa64   :  { %4989 = vmatpush3.bf16.msra.mxu1 %v4986_v0 }
 0xa65   :  { %4991 = vmatprep.subr.bf16.mxu1 %v4990_v39 }
 0xa68   :  { %4993 = vmatpush3.bf16.msra.mxu1 %v4990_v39 }
 0xa69   :  { %4995 = vmatprep.subr.bf16.mxu1 %v4994_v44 }
 0xa6c   :  { %4997 = vmatpush3.bf16.msra.mxu1 %v4994_v44 }
 0xa6d   :  { %4999 = vmatprep.subr.bf16.mxu1 %v4998_v27 }
 0xa70   :  { %5001 = vmatpush3.bf16.msra.mxu1 %v4998_v27 }
 0xa71   :  { %5003 = vmatprep.subr.bf16.mxu1 %v5002_v48 }
 0xa74   :  { %5005 = vmatpush3.bf16.msra.mxu1 %v5002_v48 }
 0xb36   :  { %v4191_v36 = vpop.f32.mrb[32].mxu1 }
 0xb37   :  { %v3218_v50 = vadd.f32 %v4191_v36, %v154_v33  ;;  %v3212_v24 = vpop.f32.mrb[33].mxu1 }
 0xb38   :  { %v3213_v4 = vadd.f32 %v3212_v24, %v154_v33 }
 0xb39   :  { %v3222_v49 = vmax.f32 %v3218_v50, 0.0 }
 0xb3a   :  { %v3221_v47 = vmax.f32 %v3213_v4, 0.0 }
 0xb3c   :  { %4212 = vmatprep.mubr.msk.f32.mxu0 %vm2759_vm3, %v3221_v47 }
 0xb3d   :  { %4213 = vmatmul.mubr.msk.f32.vlgmr.msra.gmra.mrb[30].mxu0 %vm2759_vm3, %v3222_v49 }
 0xc10   :  { %v4214_v34 = vpop.f32.mrb[30].mxu0 }
 0xc11   :  { %v3316_v45 = vadd.f32 %v4214_v34, %v3128_v43  ;;  %v3306_v58 = vpop.f32.mrb[31].mxu0 }
 0xc12   :  { %v3315_v1 = vadd.f32 %v3306_v58, %v3127_v29 }
 0xc13   :  { %v3318_v60 = vadd.f32 %v3316_v45, %v155_v53 }
 0xc14   :  { %v3317_v54 = vadd.f32 %v3315_v1, %v155_v53 }
 0xc16   :  { %4235 = vmatprep.mubr.msk.f32.mxu1 %vm2759_vm3, %v3317_v54 }
 0xc17   :  { %4236 = vmatmul.mubr.msk.f32.vlgmr.msra.gmra.mrb[34].mxu1 %vm2759_vm3, %v3318_v60 }
 0xcea   :  { %v4237_v3 = vpop.f32.mrb[34].mxu1 }
 0xceb   :  { %v3407_v5 = vadd.f32 %v4237_v3, %v156_v62  ;;  %v3401_v46 = vpop.f32.mrb[35].mxu1 }
 0xcec   :  { %v3402_v42 = vadd.f32 %v3401_v46, %v156_v62 }
 0xced   :  { %3411 = vst.msk [vmem:[#allocation13 + $0x8] sm:$0xff] %vm472_vm4, %v3407_v5 }
 0xcee   :  { %3410 = vst.msk [vmem:[#allocation13] sm:$0xff] %vm472_vm4, %v3402_v42 }
 0xcef   :  { %5244 = shalt.err (!%p5241_p10)
}
 0xcf0   :  { %s5245_s18 = scalar_lea.hbm %s7340_s17, 256 }
 0xcf1   :  { %p5246_p11 = scmp.ne.s32.totalorder %s7340_s17, %s5245_s18  ;;  %p5249_p12 = scmp.lt.u32.totalorder %s5245_s18, %s7340_s17 }
 0xcf3   :  { %p5251_p13 = pnand %p5249_p12, %p5246_p11 }
 0xcf5   :  { %5254 = shalt.err (!%p5251_p13)
}
 0xcf6   :  { %3423 = dma.vmem_to_hbm [thread:$0]  %s3418_s30, 256, %s7340_s17, [#allocation4], %s5275_s13, %s5275_s13, %s5276_s25  }
 0xcf7   :  { %5263 = dma.done.wait [#allocation4], 256  }
 0xcf8   :  { %5264 = vsyncadd [#allocation4], 4294967040 }
 0xcf9   :  { %3427 = vsyncpa [#allocation3], 1 }
 0xcfa   :  { %3428 = vsyncpa [#allocation6], 1 }
 0xcfb   :  { %3429 = vsyncpa [#allocation9], 1 }
 0xcfc   :  { %3430 = vsyncpa [#allocation12], 1 }
 0xcfd   :  { %3431 = vsyncpa [#allocation4], 1 }

</bundles_post_ra>
